<compile_context>
chip_gen: v6e
topology: v6e:2x2x1
jax: 0.10.0
libtpu: 0.0.40
codegen_flags: <defaults>
</compile_context>

<pallas_src>
import jax
import jax.numpy as jnp
import numpy as np
from jax import lax
from jax.experimental import pallas as pl
from jax.experimental.pallas import tpu as pltpu


# ---------------------------------------------------------------------------
# helpers
# ---------------------------------------------------------------------------
def _pick_row_tile(H, W, C, cbytes, obytes, row_target=None,
                   budget=24 * 1024 * 1024):
    """Row tile TH: divides H, TH*W >= ~256 (fill the MXU M dim), per-tile VMEM
    working set under `budget`.  Falls back to TH == H (never TH == 1 cliffs)
    for awkward H values."""
    # TODO(synk): non-divisible H with a pl.cdiv grid + masked last tile; for
    # now awkward H falls back to a single full-height tile.
    if row_target is None:
        row_target = max(1, -(-256 // W))
    divs = [d for d in range(1, H + 1) if H % d == 0]
    cand = [d for d in divs if d >= row_target]
    th = cand[0] if cand else H

    def tile_bytes(t):
        return (2 * t * W * C * cbytes           # centre tile (double buffered)
                + 3 * (t + 2) * W * C * cbytes   # window + 2 column-shifted copies
                + t * W * 4 * C * cbytes         # fused-K (im2col) scratch
                + t * W * C * 4                  # f32 matmul result
                + 2 * t * 4 * W * C * obytes)    # output tile (double buffered)

    while tile_bytes(th) > budget:
        smaller = [d for d in divs if d < th]
        if not smaller:
            break
        th = smaller[-1]
    return th


def _pack_phase_weights(weight_oihw, cdt):
    """(C,C,3,3) OIHW -> (2, 2, 4C, C): per output phase (di, dj) the 2x2
    effective kernel, packed along the contraction dim in tap order
    (a, b) = (0,0), (0,1), (1,0), (1,1)."""
    C = weight_oihw.shape[0]
    w_hwio = jnp.transpose(weight_oihw, (2, 3, 1, 0)).astype(jnp.float32)
    groups = (((0,), (1, 2)),      # phase 0: source offsets (-1, 0)
              ((0, 1), (2,)))      # phase 1: source offsets (0, +1)
    dis = []
    for di in (0, 1):
        djs = []
        for dj in (0, 1):
            taps = []
            for a in (0, 1):
                for b in (0, 1):
                    w_eff = jnp.zeros((C, C), jnp.float32)
                    for kh in groups[di][a]:
                        for kw in groups[dj][b]:
                            w_eff = w_eff + w_hwio[kh, kw]
                    taps.append(w_eff)
            djs.append(jnp.concatenate(taps, axis=0))     # (4C, C)
        dis.append(jnp.stack(djs))                        # (2, 4C, C)
    return jnp.stack(dis).astype(cdt)                     # (2, 2, 4C, C)


# ---------------------------------------------------------------------------
# with_conv=True : nearest-2x upsample + 3x3 conv via 2x2 phase decomposition
# ---------------------------------------------------------------------------
def _upsample_conv_kernel(xc_ref, xt_ref, xb_ref, w_ref, b_ref, o_ref,
                          xwin_ref, lhs_ref):
    """Grid step (t, n): input rows [t*TH, (t+1)*TH) of image n -> output rows
    [2*t*TH, 2*(t+1)*TH) in phase-planar layout.

    xc_ref  : (1, TH, W, C)     centre input rows (compute dtype)
    xt_ref  : (1, 1, W, C)      row t*TH - 1  (index clamped at the top border)
    xb_ref  : (1, 1, W, C)      row t*TH + TH (index clamped at the bottom border)
    w_ref   : (2, 2, 4C, C)     packed per-phase effective 2x2 kernels
    b_ref   : (1, C)            f32 bias
    o_ref   : (TH, 2, 2, W, C)  output tile, layout [i, di, dj, j, c]
    xwin_ref: (TH+2, W, C)      scratch: row window with 1-row halo
    lhs_ref : (TH, W, 4C)       scratch: fused-contraction LHS (2x2 patch im2col)
    """
    TH, _, _, W, C = o_ref.shape
    t = pl.program_id(0)
    nt = pl.num_programs(0)

    # ---- assemble the row window; halo rows are zero at the image borders
    xwin_ref[1:TH + 1] = xc_ref[0]
    top = xt_ref[0]
    bot = xb_ref[0]
    xwin_ref[0:1] = jnp.where(t > 0, top, jnp.zeros_like(top))
    xwin_ref[TH + 1:TH + 2] = jnp.where(t < nt - 1, bot, jnp.zeros_like(bot))

    # ---- column-shifted copies of the window, computed ONCE in compute dtype
    xw = xwin_ref[...]
    zcol = jnp.zeros((TH + 2, 1, C), dtype=xw.dtype)
    xs = {
        -1: jnp.concatenate([zcol, xw[:, :W - 1, :]], axis=1),   # value at col j-1
        0: xw,
        1: jnp.concatenate([xw[:, 1:, :], zcol], axis=1),        # value at col j+1
    }

    bias = b_ref[...]                                            # (1, C) f32
    for di in (0, 1):                    # output row phase
        for dj in (0, 1):                # output column phase
            s0 = xs[dj - 1]              # column tap b=0 (offset dj-1)
            s1 = xs[dj]                  # column tap b=1 (offset dj)
            # 2x2 patch packed along K; row tap a uses window rows [di+a, di+a+TH)
            lhs_ref[:, :, 0 * C:1 * C] = s0[di:di + TH]
            lhs_ref[:, :, 1 * C:2 * C] = s1[di:di + TH]
            lhs_ref[:, :, 2 * C:3 * C] = s0[di + 1:di + 1 + TH]
            lhs_ref[:, :, 3 * C:4 * C] = s1[di + 1:di + 1 + TH]
            y = jnp.dot(lhs_ref[...].reshape(TH * W, 4 * C), w_ref[di, dj],
                        preferred_element_type=jnp.float32)
            y = y + bias
            o_ref[:, di, dj] = y.reshape(TH, W, C).astype(o_ref.dtype)


def _upsample_with_conv(x_nchw, weight_oihw, bias, compute_dtype, row_tile):
    N, C, H, W = x_nchw.shape
    cdt = jnp.bfloat16 if compute_dtype is None else compute_dtype
    out_dtype = x_nchw.dtype
    cb = np.dtype(cdt).itemsize
    ob = np.dtype(out_dtype).itemsize

    TH = _pick_row_tile(H, W, C, cb, ob, row_tile)
    NT = H // TH

    x_nhwc = jnp.transpose(x_nchw, (0, 2, 3, 1)).astype(cdt)    # NCHW -> NHWC
    w_pack = _pack_phase_weights(weight_oihw, cdt)               # (2, 2, 4C, C)
    b_f32 = bias.astype(jnp.float32).reshape(1, C)

    tile_bytes = (2 * TH * W * C * cb + 2 * 2 * W * C * cb
                  + 3 * (TH + 2) * W * C * cb + TH * W * 4 * C * cb
                  + TH * W * C * 4 + 2 * TH * 4 * W * C * ob)
    weight_bytes = 16 * C * C * cb + 4 * C
    vmem_limit = int(min(max(tile_bytes + weight_bytes + (8 << 20), 32 << 20),
                         100 << 20))

    out5 = pl.pallas_call(
        _upsample_conv_kernel,
        out_shape=jax.ShapeDtypeStruct((N * H, 2, 2, W, C), out_dtype),
        grid_spec=pltpu.PrefetchScalarGridSpec(
            num_scalar_prefetch=0,
            grid=(NT, N),                 # row tiles outermost -> megacore split
            in_specs=[
                pl.BlockSpec((1, TH, W, C), lambda t, n: (n, t, 0, 0)),
                pl.BlockSpec((1, 1, W, C),
                             lambda t, n: (n, jnp.maximum(t * TH - 1, 0), 0, 0)),
                pl.BlockSpec((1, 1, W, C),
                             lambda t, n: (n, jnp.minimum(t * TH + TH, H - 1), 0, 0)),
                pl.BlockSpec((2, 2, 4 * C, C), lambda t, n: (0, 0, 0, 0),
                             pipeline_mode=pl.Buffered(1)),       # single-buffered
                pl.BlockSpec((1, C), lambda t, n: (0, 0),
                             pipeline_mode=pl.Buffered(1)),       # single-buffered
            ],
            out_specs=pl.BlockSpec((TH, 2, 2, W, C),
                                   lambda t, n: (n * NT + t, 0, 0, 0, 0)),
            scratch_shapes=[
                pltpu.VMEM((TH + 2, W, C), cdt),      # row window with halo
                pltpu.VMEM((TH, W, 4 * C), cdt),      # fused-K LHS
            ],
        ),
        compiler_params=pltpu.CompilerParams(
            dimension_semantics=("parallel", "parallel"),
            vmem_limit_bytes=vmem_limit,
        ),
    )(x_nhwc, x_nhwc, x_nhwc, w_pack, b_f32)

    # fold the 2x2 phase interleave into the (mandatory) NHWC -> NCHW transpose
    out = out5.reshape(N, H, 2, 2, W, C)
    out = jnp.transpose(out, (0, 5, 1, 2, 4, 3))      # (N, C, H, di, W, dj)
    return out.reshape(N, C, 2 * H, 2 * W)


# ---------------------------------------------------------------------------
# with_conv=False : pure nearest-2x upsample (HBM-bandwidth bound, NCHW native)
# ---------------------------------------------------------------------------
def _upsample_only_kernel(x_ref, o_ref):
    """x_ref: (TB, H, W); o_ref: (TB, H, 2, 2W) — row duplication via two dense
    stores, column duplication via one in-register interleave."""
    xb = x_ref[...]
    tb, h, w = xb.shape
    dbl = jnp.concatenate([xb[..., None], xb[..., None]], axis=-1)
    dbl = dbl.reshape(tb, h, 2 * w).astype(o_ref.dtype)
    o_ref[:, :, 0, :] = dbl
    o_ref[:, :, 1, :] = dbl


def _upsample_no_conv(x_nchw):
    N, C, H, W = x_nchw.shape
    NC = N * C
    x2 = x_nchw.reshape(NC, H, W)
    itemsize = np.dtype(x2.dtype).itemsize
    budget = 4 * 1024 * 1024            # a few MiB per input tile
    tb = 1
    for d in range(1, NC + 1):
        if NC % d == 0 and d * H * W * itemsize <= budget:
            tb = d
    out3 = pl.pallas_call(
        _upsample_only_kernel,
        out_shape=jax.ShapeDtypeStruct((NC, H, 2, 2 * W), x2.dtype),
        grid_spec=pltpu.PrefetchScalarGridSpec(
            num_scalar_prefetch=0,
            grid=(NC // tb,),
            in_specs=[pl.BlockSpec((tb, H, W), lambda i: (i, 0, 0))],
            out_specs=pl.BlockSpec((tb, H, 2, 2 * W), lambda i: (i, 0, 0, 0)),
        ),
        compiler_params=pltpu.CompilerParams(
            dimension_semantics=("parallel",),
            vmem_limit_bytes=int(min(10 * tb * H * W * itemsize + (8 << 20),
                                     100 << 20)),
        ),
    )(x2)
    return out3.reshape(N, C, 2 * H, 2 * W)    # free row-major reshape


# ---------------------------------------------------------------------------
# Public wrapper (matches the PyTorch module: NCHW in, NCHW out)
# ---------------------------------------------------------------------------
def upsample_forward(x_nchw, weight_oihw=None, bias=None, *, with_conv=True,
                     compute_dtype=jnp.bfloat16, row_tile=None):
    """Pallas equivalent of Upsample.forward.

    compute_dtype: MXU operand dtype (default bf16); accumulation + bias-add
                   are f32 and the output keeps the input dtype.
    row_tile     : optional input-row tile target (None = auto: TH*W >= 256
                   under a VMEM budget).
    """
    if with_conv:
        return _upsample_with_conv(x_nchw, weight_oihw, bias, compute_dtype,
                                   row_tile)
    return _upsample_no_conv(x_nchw)


def _reference(x_nchw, weight_oihw, bias, with_conv):
    """Pure-JAX reference matching the PyTorch forward."""
    up = jnp.repeat(jnp.repeat(x_nchw, 2, axis=2), 2, axis=3)    # nearest 2x
    if not with_conv:
        return up
    y = lax.conv_general_dilated(
        up, weight_oihw, window_strides=(1, 1), padding=((1, 1), (1, 1)),
        dimension_numbers=("NCHW", "OIHW", "NCHW"))
    return y + bias.reshape(1, -1, 1, 1)


if __name__ == "__main__":
    key = jax.random.PRNGKey(0)
    kx, kw, kb = jax.random.split(key, 3)

    N, C, H, W = 2, 4, 16, 16
    x = jax.random.normal(kx, (N, C, H, W), dtype=jnp.float32)

    # deterministic synthetic Conv2d(C, C, kernel_size=3, padding=1) params
    fan_in = C * 3 * 3
    weight = jax.random.normal(kw, (C, C, 3, 3), dtype=jnp.float32) / jnp.sqrt(fan_in)
    bias = jax.random.normal(kb, (C,), dtype=jnp.float32) * 0.1

    ref = _reference(x, weight, bias, True)

    # with_conv=True, f32 MXU operands (tight check)
    out_f32 = upsample_forward(x, weight, bias, with_conv=True,
                               compute_dtype=jnp.float32)
    jax.block_until_ready(out_f32)
    assert out_f32.shape == (N, C, 2 * H, 2 * W)
    assert jnp.allclose(out_f32, ref, atol=1e-4, rtol=1e-4)

    # with_conv=True, default bf16 MXU operands / f32 accumulation (loose check)
    out_bf16 = upsample_forward(x, weight, bias, with_conv=True)
    jax.block_until_ready(out_bf16)
    assert out_bf16.dtype == x.dtype
    assert jnp.allclose(out_bf16, ref, atol=1e-1, rtol=1e-1)

    # with_conv=False (pure nearest-2x copy, exact)
    out_up = upsample_forward(x, with_conv=False)
    jax.block_until_ready(out_up)
    ref_up = _reference(x, weight, bias, False)
    assert out_up.shape == (N, C, 2 * H, 2 * W)
    assert jnp.allclose(out_up, ref_up)

    print("KERNEL_OK")
</pallas_src>

<mosaic_0001>
module attributes {stable_mosaic.version = 11 : i64} {
  func.func @_upsample_conv_kernel(%arg0: i32, %arg1: i32, %arg2: memref<1x16x16x4xf32, #tpu.memory_space<vmem>>, %arg3: memref<1x1x16x4xf32, #tpu.memory_space<vmem>>, %arg4: memref<1x1x16x4xf32, #tpu.memory_space<vmem>>, %arg5: memref<2x2x16x4xf32, #tpu.memory_space<vmem>>, %arg6: memref<1x4xf32, #tpu.memory_space<vmem>>, %arg7: memref<16x2x2x16x4xf32, #tpu.memory_space<vmem>>, %arg8: memref<18x16x4xf32, #tpu.memory_space<vmem>>, %arg9: memref<16x16x16xf32, #tpu.memory_space<vmem>>) attributes {dimension_semantics = [#tpu.dimension_semantics<parallel>, #tpu.dimension_semantics<parallel>], iteration_bounds = array<i64: 1, 2>, scalar_prefetch = 0 : i64, scratch_operands = 2 : i64, tpu.core_type = #tpu.core_type<tc>, window_params = [{transform_indices = @transform_0, window_bounds = array<i64: 1, 16, 16, 4>}, {transform_indices = @transform_1, window_bounds = array<i64: 1, 1, 16, 4>}, {transform_indices = @transform_2, window_bounds = array<i64: 1, 1, 16, 4>}, {pipeline_mode = #tpu.pipeline_mode<synchronous>, transform_indices = @transform_3, window_bounds = array<i64: 2, 2, 16, 4>}, {pipeline_mode = #tpu.pipeline_mode<synchronous>, transform_indices = @transform_4, window_bounds = array<i64: 1, 4>}, {transform_indices = @transform_5, window_bounds = array<i64: 16, 2, 2, 16, 4>}]} {
    %c0 = arith.constant 0 : index
    %c0_0 = arith.constant 0 : index
    %c0_1 = arith.constant 0 : index
    %c0_2 = arith.constant 0 : index
    %0 = vector.load %arg2[%c0, %c0_0, %c0_1, %c0_2] : memref<1x16x16x4xf32, #tpu.memory_space<vmem>>, vector<1x16x16x4xf32>
    %1 = vector.shape_cast %0 : vector<1x16x16x4xf32> to vector<16x16x4xf32>
    %c1 = arith.constant 1 : index
    %c0_3 = arith.constant 0 : index
    %c0_4 = arith.constant 0 : index
    %2 = vector.load %arg8[%c1, %c0_3, %c0_4] : memref<18x16x4xf32, #tpu.memory_space<vmem>>, vector<16x16x4xf32>
    tpu.vector_store %arg8[%c1, %c0_3, %c0_4], %1 {strides = array<i32>} : memref<18x16x4xf32, #tpu.memory_space<vmem>>, vector<16x16x4xf32>,
    %c0_5 = arith.constant 0 : index
    %c0_6 = arith.constant 0 : index
    %c0_7 = arith.constant 0 : index
    %c0_8 = arith.constant 0 : index
    %3 = vector.load %arg3[%c0_5, %c0_6, %c0_7, %c0_8] : memref<1x1x16x4xf32, #tpu.memory_space<vmem>>, vector<1x1x16x4xf32>
    %4 = vector.shape_cast %3 : vector<1x1x16x4xf32> to vector<1x16x4xf32>
    %c0_9 = arith.constant 0 : index
    %c0_10 = arith.constant 0 : index
    %c0_11 = arith.constant 0 : index
    %c0_12 = arith.constant 0 : index
    %5 = vector.load %arg4[%c0_9, %c0_10, %c0_11, %c0_12] : memref<1x1x16x4xf32, #tpu.memory_space<vmem>>, vector<1x1x16x4xf32>
    %6 = vector.shape_cast %5 : vector<1x1x16x4xf32> to vector<1x16x4xf32>
    %c0_i32 = arith.constant 0 : i32
    %7 = arith.cmpi sgt, %arg0, %c0_i32 : i32
    %cst = arith.constant 0.000000e+00 : f32
    %8 = vector.broadcast %cst : f32 to vector<1x16x4xf32>
    %9 = arith.select %7, %4, %8 : vector<1x16x4xf32>
    %c0_13 = arith.constant 0 : index
    %c0_14 = arith.constant 0 : index
    %c0_15 = arith.constant 0 : index
    %10 = vector.load %arg8[%c0_13, %c0_14, %c0_15] : memref<18x16x4xf32, #tpu.memory_space<vmem>>, vector<1x16x4xf32>
    tpu.vector_store %arg8[%c0_13, %c0_14, %c0_15], %9 {strides = array<i32>} : memref<18x16x4xf32, #tpu.memory_space<vmem>>, vector<1x16x4xf32>,
    %c0_i32_16 = arith.constant 0 : i32
    %11 = arith.cmpi slt, %arg0, %c0_i32_16 : i32
    %cst_17 = arith.constant 0.000000e+00 : f32
    %12 = vector.broadcast %cst_17 : f32 to vector<1x16x4xf32>
    %13 = arith.select %11, %6, %12 : vector<1x16x4xf32>
    %c17 = arith.constant 17 : index
    %c0_18 = arith.constant 0 : index
    %c0_19 = arith.constant 0 : index
    %14 = vector.load %arg8[%c17, %c0_18, %c0_19] : memref<18x16x4xf32, #tpu.memory_space<vmem>>, vector<1x16x4xf32>
    tpu.vector_store %arg8[%c17, %c0_18, %c0_19], %13 {strides = array<i32>} : memref<18x16x4xf32, #tpu.memory_space<vmem>>, vector<1x16x4xf32>,
    %c0_20 = arith.constant 0 : index
    %c0_21 = arith.constant 0 : index
    %c0_22 = arith.constant 0 : index
    %15 = vector.load %arg8[%c0_20, %c0_21, %c0_22] : memref<18x16x4xf32, #tpu.memory_space<vmem>>, vector<18x16x4xf32>
    %cst_23 = arith.constant 0.000000e+00 : f32
    %16 = vector.broadcast %cst_23 : f32 to vector<18x1x4xf32>
    %17 = vector.extract_strided_slice %15 {offsets = [0, 0, 0], sizes = [18, 15, 4], strides = [1, 1, 1]} : vector<18x16x4xf32> to vector<18x15x4xf32>
    %18 = tpu.concatenate %16, %17 in 1 : vector<18x1x4xf32>, vector<18x15x4xf32> -> vector<18x16x4xf32>
    %19 = vector.extract_strided_slice %15 {offsets = [0, 1, 0], sizes = [18, 15, 4], strides = [1, 1, 1]} : vector<18x16x4xf32> to vector<18x15x4xf32>
    %20 = tpu.concatenate %19, %16 in 1 : vector<18x15x4xf32>, vector<18x1x4xf32> -> vector<18x16x4xf32>
    %c0_24 = arith.constant 0 : index
    %c0_25 = arith.constant 0 : index
    %21 = vector.load %arg6[%c0_24, %c0_25] : memref<1x4xf32, #tpu.memory_space<vmem>>, vector<1x4xf32>
    %22 = vector.extract_strided_slice %18 {offsets = [0, 0, 0], sizes = [16, 16, 4], strides = [1, 1, 1]} : vector<18x16x4xf32> to vector<16x16x4xf32>
    %c0_26 = arith.constant 0 : index
    %c0_27 = arith.constant 0 : index
    %c0_28 = arith.constant 0 : index
    %23 = vector.load %arg9[%c0_26, %c0_27, %c0_28] : memref<16x16x16xf32, #tpu.memory_space<vmem>>, vector<16x16x4xf32>
    tpu.vector_store %arg9[%c0_26, %c0_27, %c0_28], %22 {strides = array<i32>} : memref<16x16x16xf32, #tpu.memory_space<vmem>>, vector<16x16x4xf32>,
    %24 = vector.extract_strided_slice %15 {offsets = [0, 0, 0], sizes = [16, 16, 4], strides = [1, 1, 1]} : vector<18x16x4xf32> to vector<16x16x4xf32>
    %c0_29 = arith.constant 0 : index
    %c0_30 = arith.constant 0 : index
    %c4 = arith.constant 4 : index
    %25 = vector.load %arg9[%c0_29, %c0_30, %c4] : memref<16x16x16xf32, #tpu.memory_space<vmem>>, vector<16x16x4xf32>
    tpu.vector_store %arg9[%c0_29, %c0_30, %c4], %24 {strides = array<i32>} : memref<16x16x16xf32, #tpu.memory_space<vmem>>, vector<16x16x4xf32>,
    %26 = vector.extract_strided_slice %18 {offsets = [1, 0, 0], sizes = [16, 16, 4], strides = [1, 1, 1]} : vector<18x16x4xf32> to vector<16x16x4xf32>
    %c0_31 = arith.constant 0 : index
    %c0_32 = arith.constant 0 : index
    %c8 = arith.constant 8 : index
    %27 = vector.load %arg9[%c0_31, %c0_32, %c8] : memref<16x16x16xf32, #tpu.memory_space<vmem>>, vector<16x16x4xf32>
    tpu.vector_store %arg9[%c0_31, %c0_32, %c8], %26 {strides = array<i32>} : memref<16x16x16xf32, #tpu.memory_space<vmem>>, vector<16x16x4xf32>,
    %28 = vector.extract_strided_slice %15 {offsets = [1, 0, 0], sizes = [16, 16, 4], strides = [1, 1, 1]} : vector<18x16x4xf32> to vector<16x16x4xf32>
    %c0_33 = arith.constant 0 : index
    %c0_34 = arith.constant 0 : index
    %c12 = arith.constant 12 : index
    %29 = vector.load %arg9[%c0_33, %c0_34, %c12] : memref<16x16x16xf32, #tpu.memory_space<vmem>>, vector<16x16x4xf32>
    tpu.vector_store %arg9[%c0_33, %c0_34, %c12], %28 {strides = array<i32>} : memref<16x16x16xf32, #tpu.memory_space<vmem>>, vector<16x16x4xf32>,
    %c0_35 = arith.constant 0 : index
    %c0_36 = arith.constant 0 : index
    %c0_37 = arith.constant 0 : index
    %30 = vector.load %arg9[%c0_35, %c0_36, %c0_37] : memref<16x16x16xf32, #tpu.memory_space<vmem>>, vector<16x16x16xf32>
    %31 = vector.shape_cast %30 : vector<16x16x16xf32> to vector<256x16xf32>
    %c0_38 = arith.constant 0 : index
    %c0_39 = arith.constant 0 : index
    %c0_40 = arith.constant 0 : index
    %c0_41 = arith.constant 0 : index
    %32 = vector.load %arg5[%c0_38, %c0_39, %c0_40, %c0_41] : memref<2x2x16x4xf32, #tpu.memory_space<vmem>>, vector<1x1x16x4xf32>
    %33 = vector.shape_cast %32 : vector<1x1x16x4xf32> to vector<16x4xf32>
    %cst_42 = arith.constant dense<0.000000e+00> : vector<256x4xf32>
    %34 = tpu.matmul %31, %33, %cst_42 {dimension_numbers = #tpu.dot_dimension_numbers<[1], [0], [0], [1], [0, 0, 1, 1], [], []>} : vector<256x16xf32>, vector<16x4xf32>, vector<256x4xf32> -> vector<256x4xf32>
    %35 = vector.broadcast %21 : vector<1x4xf32> to vector<256x4xf32>
    %36 = arith.addf %34, %35 : vector<256x4xf32>
    %37 = vector.shape_cast %36 : vector<256x4xf32> to vector<16x16x4xf32>
    %c0_43 = arith.constant 0 : index
    %c0_44 = arith.constant 0 : index
    %c0_45 = arith.constant 0 : index
    %c0_46 = arith.constant 0 : index
    %c0_47 = arith.constant 0 : index
    %38 = vector.load %arg7[%c0_43, %c0_44, %c0_45, %c0_46, %c0_47] : memref<16x2x2x16x4xf32, #tpu.memory_space<vmem>>, vector<16x1x1x16x4xf32>
    %39 = vector.shape_cast %38 : vector<16x1x1x16x4xf32> to vector<16x16x4xf32>
    %40 = vector.shape_cast %37 : vector<16x16x4xf32> to vector<16x1x1x16x4xf32>
    tpu.vector_store %arg7[%c0_43, %c0_44, %c0_45, %c0_46, %c0_47], %40 {strides = array<i32>} : memref<16x2x2x16x4xf32, #tpu.memory_space<vmem>>, vector<16x1x1x16x4xf32>,
    %41 = vector.extract_strided_slice %15 {offsets = [0, 0, 0], sizes = [16, 16, 4], strides = [1, 1, 1]} : vector<18x16x4xf32> to vector<16x16x4xf32>
    %c0_48 = arith.constant 0 : index
    %c0_49 = arith.constant 0 : index
    %c0_50 = arith.constant 0 : index
    %42 = vector.load %arg9[%c0_48, %c0_49, %c0_50] : memref<16x16x16xf32, #tpu.memory_space<vmem>>, vector<16x16x4xf32>
    tpu.vector_store %arg9[%c0_48, %c0_49, %c0_50], %41 {strides = array<i32>} : memref<16x16x16xf32, #tpu.memory_space<vmem>>, vector<16x16x4xf32>,
    %43 = vector.extract_strided_slice %20 {offsets = [0, 0, 0], sizes = [16, 16, 4], strides = [1, 1, 1]} : vector<18x16x4xf32> to vector<16x16x4xf32>
    %c0_51 = arith.constant 0 : index
    %c0_52 = arith.constant 0 : index
    %c4_53 = arith.constant 4 : index
    %44 = vector.load %arg9[%c0_51, %c0_52, %c4_53] : memref<16x16x16xf32, #tpu.memory_space<vmem>>, vector<16x16x4xf32>
    tpu.vector_store %arg9[%c0_51, %c0_52, %c4_53], %43 {strides = array<i32>} : memref<16x16x16xf32, #tpu.memory_space<vmem>>, vector<16x16x4xf32>,
    %45 = vector.extract_strided_slice %15 {offsets = [1, 0, 0], sizes = [16, 16, 4], strides = [1, 1, 1]} : vector<18x16x4xf32> to vector<16x16x4xf32>
    %c0_54 = arith.constant 0 : index
    %c0_55 = arith.constant 0 : index
    %c8_56 = arith.constant 8 : index
    %46 = vector.load %arg9[%c0_54, %c0_55, %c8_56] : memref<16x16x16xf32, #tpu.memory_space<vmem>>, vector<16x16x4xf32>
    tpu.vector_store %arg9[%c0_54, %c0_55, %c8_56], %45 {strides = array<i32>} : memref<16x16x16xf32, #tpu.memory_space<vmem>>, vector<16x16x4xf32>,
    %47 = vector.extract_strided_slice %20 {offsets = [1, 0, 0], sizes = [16, 16, 4], strides = [1, 1, 1]} : vector<18x16x4xf32> to vector<16x16x4xf32>
    %c0_57 = arith.constant 0 : index
    %c0_58 = arith.constant 0 : index
    %c12_59 = arith.constant 12 : index
    %48 = vector.load %arg9[%c0_57, %c0_58, %c12_59] : memref<16x16x16xf32, #tpu.memory_space<vmem>>, vector<16x16x4xf32>
    tpu.vector_store %arg9[%c0_57, %c0_58, %c12_59], %47 {strides = array<i32>} : memref<16x16x16xf32, #tpu.memory_space<vmem>>, vector<16x16x4xf32>,
    %c0_60 = arith.constant 0 : index
    %c0_61 = arith.constant 0 : index
    %c0_62 = arith.constant 0 : index
    %49 = vector.load %arg9[%c0_60, %c0_61, %c0_62] : memref<16x16x16xf32, #tpu.memory_space<vmem>>, vector<16x16x16xf32>
    %50 = vector.shape_cast %49 : vector<16x16x16xf32> to vector<256x16xf32>
    %c0_63 = arith.constant 0 : index
    %c1_64 = arith.constant 1 : index
    %c0_65 = arith.constant 0 : index
    %c0_66 = arith.constant 0 : index
    %51 = vector.load %arg5[%c0_63, %c1_64, %c0_65, %c0_66] : memref<2x2x16x4xf32, #tpu.memory_space<vmem>>, vector<1x1x16x4xf32>
    %52 = vector.shape_cast %51 : vector<1x1x16x4xf32> to vector<16x4xf32>
    %cst_67 = arith.constant dense<0.000000e+00> : vector<256x4xf32>
    %53 = tpu.matmul %50, %52, %cst_67 {dimension_numbers = #tpu.dot_dimension_numbers<[1], [0], [0], [1], [0, 0, 1, 1], [], []>} : vector<256x16xf32>, vector<16x4xf32>, vector<256x4xf32> -> vector<256x4xf32>
    %54 = vector.broadcast %21 : vector<1x4xf32> to vector<256x4xf32>
    %55 = arith.addf %53, %54 : vector<256x4xf32>
    %56 = vector.shape_cast %55 : vector<256x4xf32> to vector<16x16x4xf32>
    %c0_68 = arith.constant 0 : index
    %c0_69 = arith.constant 0 : index
    %c1_70 = arith.constant 1 : index
    %c0_71 = arith.constant 0 : index
    %c0_72 = arith.constant 0 : index
    %57 = vector.load %arg7[%c0_68, %c0_69, %c1_70, %c0_71, %c0_72] : memref<16x2x2x16x4xf32, #tpu.memory_space<vmem>>, vector<16x1x1x16x4xf32>
    %58 = vector.shape_cast %57 : vector<16x1x1x16x4xf32> to vector<16x16x4xf32>
    %59 = vector.shape_cast %56 : vector<16x16x4xf32> to vector<16x1x1x16x4xf32>
    tpu.vector_store %arg7[%c0_68, %c0_69, %c1_70, %c0_71, %c0_72], %59 {strides = array<i32>} : memref<16x2x2x16x4xf32, #tpu.memory_space<vmem>>, vector<16x1x1x16x4xf32>,
    %60 = vector.extract_strided_slice %18 {offsets = [1, 0, 0], sizes = [16, 16, 4], strides = [1, 1, 1]} : vector<18x16x4xf32> to vector<16x16x4xf32>
    %c0_73 = arith.constant 0 : index
    %c0_74 = arith.constant 0 : index
    %c0_75 = arith.constant 0 : index
    %61 = vector.load %arg9[%c0_73, %c0_74, %c0_75] : memref<16x16x16xf32, #tpu.memory_space<vmem>>, vector<16x16x4xf32>
    tpu.vector_store %arg9[%c0_73, %c0_74, %c0_75], %60 {strides = array<i32>} : memref<16x16x16xf32, #tpu.memory_space<vmem>>, vector<16x16x4xf32>,
    %62 = vector.extract_strided_slice %15 {offsets = [1, 0, 0], sizes = [16, 16, 4], strides = [1, 1, 1]} : vector<18x16x4xf32> to vector<16x16x4xf32>
    %c0_76 = arith.constant 0 : index
    %c0_77 = arith.constant 0 : index
    %c4_78 = arith.constant 4 : index
    %63 = vector.load %arg9[%c0_76, %c0_77, %c4_78] : memref<16x16x16xf32, #tpu.memory_space<vmem>>, vector<16x16x4xf32>
    tpu.vector_store %arg9[%c0_76, %c0_77, %c4_78], %62 {strides = array<i32>} : memref<16x16x16xf32, #tpu.memory_space<vmem>>, vector<16x16x4xf32>,
    %64 = vector.extract_strided_slice %18 {offsets = [2, 0, 0], sizes = [16, 16, 4], strides = [1, 1, 1]} : vector<18x16x4xf32> to vector<16x16x4xf32>
    %c0_79 = arith.constant 0 : index
    %c0_80 = arith.constant 0 : index
    %c8_81 = arith.constant 8 : index
    %65 = vector.load %arg9[%c0_79, %c0_80, %c8_81] : memref<16x16x16xf32, #tpu.memory_space<vmem>>, vector<16x16x4xf32>
    tpu.vector_store %arg9[%c0_79, %c0_80, %c8_81], %64 {strides = array<i32>} : memref<16x16x16xf32, #tpu.memory_space<vmem>>, vector<16x16x4xf32>,
    %66 = vector.extract_strided_slice %15 {offsets = [2, 0, 0], sizes = [16, 16, 4], strides = [1, 1, 1]} : vector<18x16x4xf32> to vector<16x16x4xf32>
    %c0_82 = arith.constant 0 : index
    %c0_83 = arith.constant 0 : index
    %c12_84 = arith.constant 12 : index
    %67 = vector.load %arg9[%c0_82, %c0_83, %c12_84] : memref<16x16x16xf32, #tpu.memory_space<vmem>>, vector<16x16x4xf32>
    tpu.vector_store %arg9[%c0_82, %c0_83, %c12_84], %66 {strides = array<i32>} : memref<16x16x16xf32, #tpu.memory_space<vmem>>, vector<16x16x4xf32>,
    %c0_85 = arith.constant 0 : index
    %c0_86 = arith.constant 0 : index
    %c0_87 = arith.constant 0 : index
    %68 = vector.load %arg9[%c0_85, %c0_86, %c0_87] : memref<16x16x16xf32, #tpu.memory_space<vmem>>, vector<16x16x16xf32>
    %69 = vector.shape_cast %68 : vector<16x16x16xf32> to vector<256x16xf32>
    %c1_88 = arith.constant 1 : index
    %c0_89 = arith.constant 0 : index
    %c0_90 = arith.constant 0 : index
    %c0_91 = arith.constant 0 : index
    %70 = vector.load %arg5[%c1_88, %c0_89, %c0_90, %c0_91] : memref<2x2x16x4xf32, #tpu.memory_space<vmem>>, vector<1x1x16x4xf32>
    %71 = vector.shape_cast %70 : vector<1x1x16x4xf32> to vector<16x4xf32>
    %cst_92 = arith.constant dense<0.000000e+00> : vector<256x4xf32>
    %72 = tpu.matmul %69, %71, %cst_92 {dimension_numbers = #tpu.dot_dimension_numbers<[1], [0], [0], [1], [0, 0, 1, 1], [], []>} : vector<256x16xf32>, vector<16x4xf32>, vector<256x4xf32> -> vector<256x4xf32>
    %73 = vector.broadcast %21 : vector<1x4xf32> to vector<256x4xf32>
    %74 = arith.addf %72, %73 : vector<256x4xf32>
    %75 = vector.shape_cast %74 : vector<256x4xf32> to vector<16x16x4xf32>
    %c0_93 = arith.constant 0 : index
    %c1_94 = arith.constant 1 : index
    %c0_95 = arith.constant 0 : index
    %c0_96 = arith.constant 0 : index
    %c0_97 = arith.constant 0 : index
    %76 = vector.load %arg7[%c0_93, %c1_94, %c0_95, %c0_96, %c0_97] : memref<16x2x2x16x4xf32, #tpu.memory_space<vmem>>, vector<16x1x1x16x4xf32>
    %77 = vector.shape_cast %76 : vector<16x1x1x16x4xf32> to vector<16x16x4xf32>
    %78 = vector.shape_cast %75 : vector<16x16x4xf32> to vector<16x1x1x16x4xf32>
    tpu.vector_store %arg7[%c0_93, %c1_94, %c0_95, %c0_96, %c0_97], %78 {strides = array<i32>} : memref<16x2x2x16x4xf32, #tpu.memory_space<vmem>>, vector<16x1x1x16x4xf32>,
    %79 = vector.extract_strided_slice %15 {offsets = [1, 0, 0], sizes = [16, 16, 4], strides = [1, 1, 1]} : vector<18x16x4xf32> to vector<16x16x4xf32>
    %c0_98 = arith.constant 0 : index
    %c0_99 = arith.constant 0 : index
    %c0_100 = arith.constant 0 : index
    %80 = vector.load %arg9[%c0_98, %c0_99, %c0_100] : memref<16x16x16xf32, #tpu.memory_space<vmem>>, vector<16x16x4xf32>
    tpu.vector_store %arg9[%c0_98, %c0_99, %c0_100], %79 {strides = array<i32>} : memref<16x16x16xf32, #tpu.memory_space<vmem>>, vector<16x16x4xf32>,
    %81 = vector.extract_strided_slice %20 {offsets = [1, 0, 0], sizes = [16, 16, 4], strides = [1, 1, 1]} : vector<18x16x4xf32> to vector<16x16x4xf32>
    %c0_101 = arith.constant 0 : index
    %c0_102 = arith.constant 0 : index
    %c4_103 = arith.constant 4 : index
    %82 = vector.load %arg9[%c0_101, %c0_102, %c4_103] : memref<16x16x16xf32, #tpu.memory_space<vmem>>, vector<16x16x4xf32>
    tpu.vector_store %arg9[%c0_101, %c0_102, %c4_103], %81 {strides = array<i32>} : memref<16x16x16xf32, #tpu.memory_space<vmem>>, vector<16x16x4xf32>,
    %83 = vector.extract_strided_slice %15 {offsets = [2, 0, 0], sizes = [16, 16, 4], strides = [1, 1, 1]} : vector<18x16x4xf32> to vector<16x16x4xf32>
    %c0_104 = arith.constant 0 : index
    %c0_105 = arith.constant 0 : index
    %c8_106 = arith.constant 8 : index
    %84 = vector.load %arg9[%c0_104, %c0_105, %c8_106] : memref<16x16x16xf32, #tpu.memory_space<vmem>>, vector<16x16x4xf32>
    tpu.vector_store %arg9[%c0_104, %c0_105, %c8_106], %83 {strides = array<i32>} : memref<16x16x16xf32, #tpu.memory_space<vmem>>, vector<16x16x4xf32>,
    %85 = vector.extract_strided_slice %20 {offsets = [2, 0, 0], sizes = [16, 16, 4], strides = [1, 1, 1]} : vector<18x16x4xf32> to vector<16x16x4xf32>
    %c0_107 = arith.constant 0 : index
    %c0_108 = arith.constant 0 : index
    %c12_109 = arith.constant 12 : index
    %86 = vector.load %arg9[%c0_107, %c0_108, %c12_109] : memref<16x16x16xf32, #tpu.memory_space<vmem>>, vector<16x16x4xf32>
    tpu.vector_store %arg9[%c0_107, %c0_108, %c12_109], %85 {strides = array<i32>} : memref<16x16x16xf32, #tpu.memory_space<vmem>>, vector<16x16x4xf32>,
    %c0_110 = arith.constant 0 : index
    %c0_111 = arith.constant 0 : index
    %c0_112 = arith.constant 0 : index
    %87 = vector.load %arg9[%c0_110, %c0_111, %c0_112] : memref<16x16x16xf32, #tpu.memory_space<vmem>>, vector<16x16x16xf32>
    %88 = vector.shape_cast %87 : vector<16x16x16xf32> to vector<256x16xf32>
    %c1_113 = arith.constant 1 : index
    %c1_114 = arith.constant 1 : index
    %c0_115 = arith.constant 0 : index
    %c0_116 = arith.constant 0 : index
    %89 = vector.load %arg5[%c1_113, %c1_114, %c0_115, %c0_116] : memref<2x2x16x4xf32, #tpu.memory_space<vmem>>, vector<1x1x16x4xf32>
    %90 = vector.shape_cast %89 : vector<1x1x16x4xf32> to vector<16x4xf32>
    %cst_117 = arith.constant dense<0.000000e+00> : vector<256x4xf32>
    %91 = tpu.matmul %88, %90, %cst_117 {dimension_numbers = #tpu.dot_dimension_numbers<[1], [0], [0], [1], [0, 0, 1, 1], [], []>} : vector<256x16xf32>, vector<16x4xf32>, vector<256x4xf32> -> vector<256x4xf32>
    %92 = vector.broadcast %21 : vector<1x4xf32> to vector<256x4xf32>
    %93 = arith.addf %91, %92 : vector<256x4xf32>
    %94 = vector.shape_cast %93 : vector<256x4xf32> to vector<16x16x4xf32>
    %c0_118 = arith.constant 0 : index
    %c1_119 = arith.constant 1 : index
    %c1_120 = arith.constant 1 : index
    %c0_121 = arith.constant 0 : index
    %c0_122 = arith.constant 0 : index
    %95 = vector.load %arg7[%c0_118, %c1_119, %c1_120, %c0_121, %c0_122] : memref<16x2x2x16x4xf32, #tpu.memory_space<vmem>>, vector<16x1x1x16x4xf32>
    %96 = vector.shape_cast %95 : vector<16x1x1x16x4xf32> to vector<16x16x4xf32>
    %97 = vector.shape_cast %94 : vector<16x16x4xf32> to vector<16x1x1x16x4xf32>
    tpu.vector_store %arg7[%c0_118, %c1_119, %c1_120, %c0_121, %c0_122], %97 {strides = array<i32>} : memref<16x2x2x16x4xf32, #tpu.memory_space<vmem>>, vector<16x1x1x16x4xf32>,
    return
  }
  func.func @transform_0(%arg0: i32, %arg1: i32) -> (i32, i32, i32, i32) {
    %c0_i32 = arith.constant 0 : i32
    %c0_i32_0 = arith.constant 0 : i32
    %c0_i32_1 = arith.constant 0 : i32
    return %arg1, %arg0, %c0_i32, %c0_i32_0 : i32, i32, i32, i32
  }
  func.func @transform_1(%arg0: i32, %arg1: i32) -> (i32, i32, i32, i32) {
    %c16_i32 = arith.constant 16 : i32
    %0 = arith.muli %arg0, %c16_i32 : i32
    %c1_i32 = arith.constant 1 : i32
    %1 = arith.subi %0, %c1_i32 : i32
    %c0_i32 = arith.constant 0 : i32
    %2 = arith.maxsi %1, %c0_i32 : i32
    %c0_i32_0 = arith.constant 0 : i32
    %c0_i32_1 = arith.constant 0 : i32
    %c0_i32_2 = arith.constant 0 : i32
    return %arg1, %2, %c0_i32_0, %c0_i32_1 : i32, i32, i32, i32
  }
  func.func @transform_2(%arg0: i32, %arg1: i32) -> (i32, i32, i32, i32) {
    %c16_i32 = arith.constant 16 : i32
    %0 = arith.muli %arg0, %c16_i32 : i32
    %c16_i32_0 = arith.constant 16 : i32
    %1 = arith.addi %0, %c16_i32_0 : i32
    %c15_i32 = arith.constant 15 : i32
    %2 = arith.minsi %1, %c15_i32 : i32
    %c0_i32 = arith.constant 0 : i32
    %c0_i32_1 = arith.constant 0 : i32
    %c0_i32_2 = arith.constant 0 : i32
    return %arg1, %2, %c0_i32, %c0_i32_1 : i32, i32, i32, i32
  }
  func.func @transform_3(%arg0: i32, %arg1: i32) -> (i32, i32, i32, i32) {
    %c0_i32 = arith.constant 0 : i32
    %c0_i32_0 = arith.constant 0 : i32
    %c0_i32_1 = arith.constant 0 : i32
    %c0_i32_2 = arith.constant 0 : i32
    %c0_i32_3 = arith.constant 0 : i32
    return %c0_i32, %c0_i32_0, %c0_i32_1, %c0_i32_2 : i32, i32, i32, i32
  }
  func.func @transform_4(%arg0: i32, %arg1: i32) -> (i32, i32) {
    %c0_i32 = arith.constant 0 : i32
    %c0_i32_0 = arith.constant 0 : i32
    %c0_i32_1 = arith.constant 0 : i32
    return %c0_i32, %c0_i32_0 : i32, i32
  }
  func.func @transform_5(%arg0: i32, %arg1: i32) -> (i32, i32, i32, i32, i32) {
    %c1_i32 = arith.constant 1 : i32
    %0 = arith.muli %arg1, %c1_i32 : i32
    %1 = arith.addi %0, %arg0 : i32
    %c0_i32 = arith.constant 0 : i32
    %c0_i32_0 = arith.constant 0 : i32
    %c0_i32_1 = arith.constant 0 : i32
    %c0_i32_2 = arith.constant 0 : i32
    %c0_i32_3 = arith.constant 0 : i32
    return %1, %c0_i32, %c0_i32_0, %c0_i32_1, %c0_i32_2 : i32, i32, i32, i32, i32
  }
}

</mosaic_0001>

<bundles_post_ra>
// kernel: tpu_custom_call.1
= control target key start
LH: loop header
LB: loop body
LE: loop exit
PB: predicated region body
PF: predicated region fallthrough
CT: control target
= control target key end

     0   :  { %s4284_s18 = smov 0   ;;  %s4286_s19 = smov 0   ;;  %s6687_s0 = inlined_call_operand.vmem [shape: f32[2,16,16,4], index: 0, kind: input, shape index: {}]   ;;  %s6688_s1 = inlined_call_operand.vmem [shape: f32[2,16,16,4], index: 1, kind: input, shape index: {}]   ;;  %s6689_s2 = inlined_call_operand.vmem [shape: f32[2,16,16,4], index: 2, kind: input, shape index: {}]   ;;  %s6690_s3 = inlined_call_operand.vmem [shape: f32[2,2,16,4], index: 3, kind: input, shape index: {}]   ;;  %s6691_s4 = inlined_call_operand.vmem [shape: f32[1,4], index: 4, kind: input, shape index: {}]   ;;  %s6692_s5 = inlined_call_operand.vmem [shape: f32[32,2,2,16,4], index: 5, kind: output, shape index: {}]  }
   0x1   :  { %s4288_s20 = smov 0  }
   0x2 LB: > { %s24_s1 = sadd.s32 1, %s4244_s19  ;;  %p3595_p0 = scmp.ge.s32.totalorder %s4248_s20, 1  ;;  %s4248_s20 = sphi %s4288_s20, %s15_s20   ;;  %s4244_s19 = sphi %s4286_s19, %s6782_s19   ;;  %s4240_s18 = sphi %s4284_s18, %s6781_s18  }
   0x3   : > { %p25_p1 = scmp.ge.s32.totalorder %s24_s1, 2  ;;  %p273_p2 = scmp.lt.s32.totalorder %s4248_s20, 3 }
   0x5   : > { %s6784_s1 = smov (%p25_p1, %s24_s1), 0  ;;  %p274_p3 = pnand %p3595_p0, %p273_p2 }
   0x7   : > { %277 = sbr.rel (%p274_p3) target bundleno = 821 (0x335), region = 40 }
   0xc   : > { %vm421_vm0 = vcmask 31744   ;;  %p335_p4 = scmp.lt.s32.totalorder %s4240_s18, 1  ;;  %v4250_v0 = vmov 0.0   ;;  %s4251_s25 = smov 4   ;;  %vm547_vm1 = vcmask 1040384   ;;  %v1215_v52 = vld [vmem:[%s6690_s3 + $0x8] sm:$0xff] }
   0xd   : > { %464 = vst.msk [vmem:[#allocation2] sm:$0xff] %vm421_vm0, %v4250_v0  ;;  %474 = vst.msk [vmem:[#allocation2 + $0x118] sm:$0xff] %vm421_vm0, %v4250_v0  ;;  %s4252_s26 = smov 12   ;;  %3979 = vmatprep.subr.mxu0 %v1215_v52  ;;  %v1214_v56 = vld [vmem:[%s6690_s3] sm:$0xff]  ;;  %s4253_s6 = smov 8   ;;  %vm655_vm2 = vcmask 1046528  }
   0xe   : > { %465 = vst.msk [vmem:[#allocation2 + $0x8] sm:$0xff] %vm421_vm0, %v4250_v0  ;;  %473 = vst.msk [vmem:[#allocation2 + $0x110] sm:$0xff] %vm421_vm0, %v4250_v0  ;;  %s336_s2 = scalar_select %p335_p4, %s4240_s18, 1  ;;  %3980 = vmatpush3.msra.mxu0 %v1215_v52  ;;  %vm875_vm3 = vcmask 64544   ;;  %vm1020_vm4 = vcmask 97344   ;;  %vm1149_vm5 = vcmask 130144  }
   0xf   : > { %3981 = vmatprep.subr.mxu0 %v1214_v56  ;;  %vm1222_vm6 = vcmask 130048   ;;  %s3602_s11 = sshll.u32 %s4240_s18, 4 }
  0x10   : > { %s3838_s21 = sshll.u32 %s336_s2, 8  ;;  %3982 = vmatpush3.msra.mxu0 %v1214_v56  ;;  %p5498_p5 = scmp.lt.s32.totalorder %s3602_s11, 31 }
  0x11   : > { %s4313_s24 = scalar_lea.vmem %s6687_s0, %s3838_s21 }
  0x12   : > { %v388_v1 = vld [vmem:[%s4313_s24] sm:$0xff]  ;;  %v389_v2 = vld [vmem:[%s4313_s24 + $0x8] sm:$0xff]  ;;  %v390_v3 = vld [vmem:[%s4313_s24 + $0x10] sm:$0xff]  ;;  %s6786_s11 = smov (!%p5498_p5, %s3602_s11), 31 }
  0x13   : > { %422 = vst.msk [vmem:[#allocation2 + $0x10] sm:$0xff] %vm421_vm0, %v388_v1  ;;  %423 = vst.msk [vmem:[#allocation2 + $0x18] sm:$0xff] %vm421_vm0, %v389_v2  ;;  %v391_v4 = vld [vmem:[%s4313_s24 + $0x18] sm:$0xff]  ;;  %v392_v5 = vld [vmem:[%s4313_s24 + $0x20] sm:$0xff]  ;;  %s3842_s17 = sshll.u32 %s6786_s11, 6 }
  0x14   : > { %424 = vst.msk [vmem:[#allocation2 + $0x20] sm:$0xff] %vm421_vm0, %v390_v3  ;;  %v393_v6 = vld [vmem:[%s4313_s24 + $0x28] sm:$0xff]  ;;  %v4324_v7 = vld [vmem:[#allocation2] sm:$0xff]  ;;  %425 = vst.msk [vmem:[#allocation2 + $0x28] sm:$0xff] %vm421_vm0, %v391_v4  ;;  %s5575_s23 = scalar_lea.vmem %s6692_s5, %s3842_s17 }
  0x15   : > { %v4326_v8 = vld [vmem:[#allocation2 + $0x8] sm:$0xff]  ;;  %426 = vst.msk [vmem:[#allocation2 + $0x30] sm:$0xff] %vm421_vm0, %v392_v5  ;;  %427 = vst.msk [vmem:[#allocation2 + $0x38] sm:$0xff] %vm421_vm0, %v393_v6  ;;  %v394_v9 = vld [vmem:[%s4313_s24 + $0x30] sm:$0xff]  ;;  %779 = vrot.lane.b32.xlu0 %v4324_v7, %s4251_s25  ;;  %v548_v16 = vrot.slane %v4324_v7, 7 }
  0x16   : > { %v549_v10 = vrot.slane %v4326_v8, 7  ;;  %428 = vst.msk [vmem:[#allocation2 + $0x40] sm:$0xff] %vm421_vm0, %v394_v9  ;;  %v395_v11 = vld [vmem:[%s4313_s24 + $0x38] sm:$0xff]  ;;  %v396_v12 = vld [vmem:[%s4313_s24 + $0x40] sm:$0xff]  ;;  %v397_v13 = vld [vmem:[%s4313_s24 + $0x48] sm:$0xff] }
  0x17   : > { %429 = vst.msk [vmem:[#allocation2 + $0x48] sm:$0xff] %vm421_vm0, %v395_v11  ;;  %430 = vst.msk [vmem:[#allocation2 + $0x50] sm:$0xff] %vm421_vm0, %v396_v12  ;;  %v398_v14 = vld [vmem:[%s4313_s24 + $0x50] sm:$0xff]  ;;  %v399_v15 = vld [vmem:[%s4313_s24 + $0x58] sm:$0xff]  ;;  %v637_v19 = vsel %vm547_vm1, 0.0, %v548_v16  ;;  %v656_v11 = vrot.slane %v4324_v7, 1 }
  0x18   : > { %431 = vst.msk [vmem:[#allocation2 + $0x58] sm:$0xff] %vm421_vm0, %v397_v13  ;;  %v400_v17 = vld [vmem:[%s4313_s24 + $0x60] sm:$0xff]  ;;  %432 = vst.msk [vmem:[#allocation2 + $0x60] sm:$0xff] %vm421_vm0, %v398_v14  ;;  %v401_v18 = vld [vmem:[%s4313_s24 + $0x68] sm:$0xff]  ;;  %v550_v20 = vsel %vm547_vm1, %v548_v16, %v549_v10  ;;  %v657_v12 = vrot.slane %v4326_v8, 1 }
  0x19   : > { %433 = vst.msk [vmem:[#allocation2 + $0x68] sm:$0xff] %vm421_vm0, %v399_v15  ;;  %434 = vst.msk [vmem:[#allocation2 + $0x70] sm:$0xff] %vm421_vm0, %v400_v17  ;;  %781 = vrot.lane.b32.xlu0 %v4326_v8, %s4251_s25  ;;  %v402_v34 = vld [vmem:[%s4313_s24 + $0x70] sm:$0xff]  ;;  %v403_v57 = vld [vmem:[%s4313_s24 + $0x78] sm:$0xff] }
  0x1a   : > { %435 = vst.msk [vmem:[#allocation2 + $0x78] sm:$0xff] %vm421_vm0, %v401_v18  ;;  %747 = vst.msk [vmem:[#allocation3] sm:$0xff] %vm421_vm0, %v637_v19  ;;  %v4357_v21 = vld [vmem:[#allocation2 + $0x10] sm:$0xff]  ;;  %v4359_v22 = vld [vmem:[#allocation2 + $0x18] sm:$0xff]  ;;  %v658_v15 = vsel %vm655_vm2, %v656_v11, %v657_v12  ;;  %v728_v16 = vsel %vm655_vm2, %v657_v12, 0.0 }
  0x1b   : > { %748 = vst.msk [vmem:[#allocation3 + $0x8] sm:$0xff] %vm421_vm0, %v550_v20  ;;  %v4361_v23 = vld [vmem:[#allocation2 + $0x20] sm:$0xff]  ;;  %783 = vrot.lane.b32.xlu1 %v4357_v21, %s4251_s25  ;;  %v551_v24 = vrot.slane %v4357_v21, 7  ;;  %v552_v26 = vrot.slane %v4359_v22, 7  ;;  %v4368_v27 = vld [vmem:[#allocation2 + $0x28] sm:$0xff]  ;;  %436 = vst.msk [vmem:[#allocation2 + $0x80] sm:$0xff] %vm421_vm0, %v402_v34 }
  0x1c   : > { %v554_v25 = vrot.slane %v4361_v23, 7  ;;  %v4370_v28 = vld [vmem:[#allocation2 + $0x30] sm:$0xff]  ;;  %v4372_v29 = vld [vmem:[#allocation2 + $0x38] sm:$0xff]  ;;  %v555_v30 = vrot.slane %v4368_v27, 7  ;;  %437 = vst.msk [vmem:[#allocation2 + $0x88] sm:$0xff] %vm421_vm0, %v403_v57  ;;  %v404_v13 = vld [vmem:[%s4313_s24 + $0x80] sm:$0xff] }
  0x1d   : > { %v557_v31 = vrot.slane %v4370_v28, 7  ;;  %v558_v32 = vrot.slane %v4372_v29, 7  ;;  %v4377_v33 = vld [vmem:[#allocation2 + $0x40] sm:$0xff]  ;;  %1053 = vrot.lane.b32.xlu0 %v4357_v21, %s4252_s26  ;;  %v4383_v35 = vsel %vm547_vm1, 0.0, %v551_v24  ;;  %v4389_v37 = vsel %vm547_vm1, %v551_v24, %v552_v26  ;;  %438 = vst.msk [vmem:[#allocation2 + $0x90] sm:$0xff] %vm421_vm0, %v404_v13  ;;  %v405_v14 = vld [vmem:[%s4313_s24 + $0x88] sm:$0xff] }
  0x1e   : > { %v4386_v36 = vsel %vm547_vm1, 0.0, %v554_v25  ;;  %v560_v38 = vrot.slane %v4377_v33, 7  ;;  %v4392_v39 = vld [vmem:[#allocation2 + $0x48] sm:$0xff]  ;;  %v4394_v40 = vld [vmem:[#allocation2 + $0x50] sm:$0xff]  ;;  %749 = vst.msk [vmem:[#allocation3 + $0x10] sm:$0xff] %vm421_vm0, %v4383_v35  ;;  %750 = vst.msk [vmem:[#allocation3 + $0x18] sm:$0xff] %vm421_vm0, %v4389_v37  ;;  %v4406_v42 = vsel %vm547_vm1, %v554_v25, %v555_v30 }
  0x1f   : > { %v4396_v41 = vld [vmem:[#allocation2 + $0x58] sm:$0xff]  ;;  %751 = vst.msk [vmem:[#allocation3 + $0x20] sm:$0xff] %vm421_vm0, %v4386_v36  ;;  %v4409_v43 = vsel %vm547_vm1, 0.0, %v557_v31  ;;  %v4412_v44 = vsel %vm547_vm1, %v557_v31, %v558_v32  ;;  %v561_v45 = vrot.slane %v4392_v39, 7  ;;  %v4415_v46 = vld [vmem:[#allocation2 + $0x60] sm:$0xff]  ;;  %785 = vrot.lane.b32.xlu1 %v4359_v22, %s4251_s25  ;;  %752 = vst.msk [vmem:[#allocation3 + $0x28] sm:$0xff] %vm421_vm0, %v4406_v42 }
  0x20   : > { %753 = vst.msk [vmem:[#allocation3 + $0x30] sm:$0xff] %vm421_vm0, %v4409_v43  ;;  %754 = vst.msk [vmem:[#allocation3 + $0x38] sm:$0xff] %vm421_vm0, %v4412_v44  ;;  %v4426_v47 = vsel %vm547_vm1, 0.0, %v560_v38  ;;  %v563_v48 = vrot.slane %v4394_v40, 7  ;;  %v564_v49 = vrot.slane %v4396_v41, 7  ;;  %v4430_v50 = vld [vmem:[#allocation2 + $0x68] sm:$0xff] }
  0x21   : > { %v4432_v51 = vld [vmem:[#allocation2 + $0x70] sm:$0xff]  ;;  %755 = vst.msk [vmem:[#allocation3 + $0x40] sm:$0xff] %vm421_vm0, %v4426_v47  ;;  %v4440_v53 = vsel %vm547_vm1, %v560_v38, %v561_v45  ;;  %v566_v54 = vrot.slane %v4415_v46, 7  ;;  %v4443_v55 = vld [vmem:[#allocation2 + $0x78] sm:$0xff]  ;;  %924 = vrot.lane.b32.xlu0 %v4383_v35, %s4253_s6  ;;  %v567_v61 = vrot.slane %v4430_v50, 7  ;;  %439 = vst.msk [vmem:[#allocation2 + $0x98] sm:$0xff] %vm421_vm0, %v405_v14 }
  0x22   : > { %756 = vst.msk [vmem:[#allocation3 + $0x48] sm:$0xff] %vm421_vm0, %v4440_v53  ;;  %v4454_v58 = vsel %vm547_vm1, 0.0, %v563_v48  ;;  %v4457_v59 = vsel %vm547_vm1, %v563_v48, %v564_v49  ;;  %v569_v62 = vrot.slane %v4432_v51, 7  ;;  %v570_v63 = vrot.slane %v4443_v55, 7  ;;  %v4477_v1 = vld [vmem:[#allocation2 + $0x80] sm:$0xff]  ;;  %v3639_v31 = vld [vmem:[%s6690_s3 + $0x18] sm:$0xff] }
  0x23   : > { %6722 = vst [vmem:[#allocation4_spill] sm:$0xff] %v4454_v58  ;;  %6723 = vst [vmem:[#allocation5_spill] sm:$0xff] %v4457_v59  ;;  %v4465_v60 = vsel %vm547_vm1, 0.0, %v566_v54  ;;  %1055 = vrot.lane.b32.xlu1 %v4359_v22, %s4252_s26  ;;  %v4475_v0 = vsel %vm547_vm1, %v566_v54, %v567_v61  ;;  %v572_v4 = vrot.slane %v4477_v1, 7  ;;  %v4499_v6 = vld [vmem:[#allocation2 + $0x88] sm:$0xff]  ;;  %v659_v26 = vrot.slane %v4357_v21, 1  ;;  %4031 = vmatprep.subr.mxu1 %v3639_v31 }
  0x24   : > { %757 = vst.msk [vmem:[#allocation3 + $0x50] sm:$0xff] %vm421_vm0, %v4454_v58  ;;  %758 = vst.msk [vmem:[#allocation3 + $0x58] sm:$0xff] %vm421_vm0, %v4457_v59  ;;  %v4484_v2 = vsel %vm547_vm1, 0.0, %v569_v62  ;;  %v4487_v3 = vsel %vm547_vm1, %v569_v62, %v570_v63  ;;  %v573_v9 = vrot.slane %v4499_v6, 7  ;;  %v4536_v17 = vld [vmem:[#allocation2 + $0x90] sm:$0xff]  ;;  %v660_v30 = vrot.slane %v4359_v22, 1  ;;  %4032 = vmatpush3.msra.mxu1 %v3639_v31 }
  0x25   : > { %6724 = vst [vmem:[#allocation6_spill] sm:$0xff] %v4465_v60  ;;  %759 = vst.msk [vmem:[#allocation3 + $0x60] sm:$0xff] %vm421_vm0, %v4465_v60  ;;  %928 = vrot.lane.b32.xlu0 %v4386_v36, %s4253_s6  ;;  %v4497_v5 = vsel %vm547_vm1, 0.0, %v572_v4  ;;  %v575_v18 = vrot.slane %v4536_v17, 7  ;;  %v3638_v34 = vld [vmem:[%s6690_s3 + $0x10] sm:$0xff]  ;;  %v407_v48 = vld [vmem:[%s4313_s24 + $0x98] sm:$0xff] }
  0x26   : > { %6725 = vst [vmem:[#allocation7_spill] sm:$0xff] %v4475_v0  ;;  %760 = vst.msk [vmem:[#allocation3 + $0x68] sm:$0xff] %vm421_vm0, %v4475_v0  ;;  %v4509_v10 = vsel %vm547_vm1, %v572_v4, %v573_v9  ;;  %v661_v32 = vsel %vm655_vm2, %v659_v26, %v660_v30  ;;  %4033 = vmatprep.subr.mxu1 %v3638_v34  ;;  %v729_v38 = vsel %vm655_vm2, %v660_v30, 0.0  ;;  %v406_v45 = vld [vmem:[%s4313_s24 + $0x90] sm:$0xff]  ;;  %v662_v62 = vrot.slane %v4361_v23, 1  ;;  %v408_v11 = vld [vmem:[%s4313_s24 + $0xa0] sm:$0xff] }
  0x27   : > { %6726 = vst [vmem:[#allocation8_spill] sm:$0xff] %v4484_v2  ;;  %6727 = vst [vmem:[#allocation9_spill] sm:$0xff] %v4487_v3  ;;  %926 = vrot.lane.b32.xlu1 %v4389_v37, %s4253_s6  ;;  %v4543_v20 = vsel %vm547_vm1, 0.0, %v575_v18  ;;  %4034 = vmatpush3.msra.mxu1 %v3638_v34  ;;  %v663_v63 = vrot.slane %v4368_v27, 1  ;;  %v409_v12 = vld [vmem:[%s4313_s24 + $0xa8] sm:$0xff]  ;;  %v665_v26 = vrot.slane %v4370_v28, 1 }
  0x28   : > { %761 = vst.msk [vmem:[#allocation3 + $0x70] sm:$0xff] %vm421_vm0, %v4484_v2  ;;  %762 = vst.msk [vmem:[#allocation3 + $0x78] sm:$0xff] %vm421_vm0, %v4487_v3  ;;  %v4540_v19 = vld [vmem:[#allocation2 + $0x98] sm:$0xff]  ;;  %v666_v30 = vrot.slane %v4372_v29, 1  ;;  %v410_v34 = vld [vmem:[%s4313_s24 + $0xb0] sm:$0xff] }
  0x29   : > { %6728 = vst [vmem:[#allocation10_spill] sm:$0xff] %v4497_v5  ;;  %1057 = vrot.lane.b32.xlu0 %v4361_v23, %s4252_s26  ;;  %763 = vst.msk [vmem:[#allocation3 + $0x80] sm:$0xff] %vm421_vm0, %v4497_v5  ;;  %v576_v24 = vrot.slane %v4540_v19, 7  ;;  %v664_v4 = vsel %vm655_vm2, %v662_v62, %v663_v63  ;;  %v730_v9 = vsel %vm655_vm2, %v663_v63, 0.0 }
  0x2a   : > { %6729 = vst [vmem:[#allocation11_spill] sm:$0xff] %v4509_v10  ;;  %764 = vst.msk [vmem:[#allocation3 + $0x88] sm:$0xff] %vm421_vm0, %v4509_v10  ;;  %v667_v31 = vsel %vm655_vm2, %v665_v26, %v666_v30 }
  0x2b   : > { %930 = vrot.lane.b32.xlu1 %v4406_v42, %s4253_s6  ;;  %765 = vst.msk [vmem:[#allocation3 + $0x90] sm:$0xff] %vm421_vm0, %v4543_v20  ;;  %v4551_v25 = vsel %vm547_vm1, %v575_v18, %v576_v24  ;;  %440 = vst.msk [vmem:[#allocation2 + $0xa0] sm:$0xff] %vm421_vm0, %v406_v45 }
  0x2c   : > { %6730 = vst [vmem:[#allocation12_spill] sm:$0xff] %v4551_v25  ;;  %766 = vst.msk [vmem:[#allocation3 + $0x98] sm:$0xff] %vm421_vm0, %v4551_v25 }
  0x2d   : > { %787 = vrot.lane.b32.xlu0 %v4361_v23, %s4251_s25  ;;  %441 = vst.msk [vmem:[#allocation2 + $0xa8] sm:$0xff] %vm421_vm0, %v407_v48  ;;  %442 = vst.msk [vmem:[#allocation2 + $0xb0] sm:$0xff] %vm421_vm0, %v408_v11  ;;  %v668_v11 = vrot.slane %v4377_v33, 1 }
  0x2e   : > { %443 = vst.msk [vmem:[#allocation2 + $0xb8] sm:$0xff] %vm421_vm0, %v409_v12  ;;  %444 = vst.msk [vmem:[#allocation2 + $0xc0] sm:$0xff] %vm421_vm0, %v410_v34  ;;  %v669_v12 = vrot.slane %v4392_v39, 1  ;;  %v412_v34 = vld [vmem:[%s4313_s24 + $0xc0] sm:$0xff] }
  0x2f   : > { %1059 = vrot.lane.b32.xlu1 %v4368_v27, %s4252_s26  ;;  %446 = vst.msk [vmem:[#allocation2 + $0xd0] sm:$0xff] %vm421_vm0, %v412_v34 }
  0x30   : > { %v670_v26 = vsel %vm655_vm2, %v668_v11, %v669_v12 }
  0x31   : > { %932 = vrot.lane.b32.xlu0 %v4409_v43, %s4253_s6 }
  0x32   : > { %v4586_v49 = vld [vmem:[#allocation2 + $0xa0] sm:$0xff] }
  0x33   : > { %789 = vrot.lane.b32.xlu1 %v4368_v27, %s4251_s25  ;;  %v578_v52 = vrot.slane %v4586_v49, 7 }
  0x34   : > { %v4590_v54 = vld [vmem:[#allocation2 + $0xa8] sm:$0xff]  ;;  %v4630_v13 = vld [vmem:[#allocation2 + $0xb0] sm:$0xff] }
  0x35   : > { %1061 = vrot.lane.b32.xlu0 %v4370_v28, %s4252_s26  ;;  %v4593_v56 = vsel %vm547_vm1, 0.0, %v578_v52  ;;  %v579_v57 = vrot.slane %v4590_v54, 7  ;;  %v581_v14 = vrot.slane %v4630_v13, 7  ;;  %v4674_v45 = vld [vmem:[#allocation2 + $0xc0] sm:$0xff] }
  0x36   : > { %767 = vst.msk [vmem:[#allocation3 + $0xa0] sm:$0xff] %vm421_vm0, %v4593_v56  ;;  %v584_v48 = vrot.slane %v4674_v45, 7  ;;  %v4738_v11 = vld [vmem:[#allocation2 + $0xd0] sm:$0xff] }
  0x37   : > { %934 = vrot.lane.b32.xlu1 %v4412_v44, %s4253_s6  ;;  %v4601_v61 = vsel %vm547_vm1, %v578_v52, %v579_v57  ;;  %6731 = vst [vmem:[#allocation13_spill] sm:$0xff] %v4738_v11 }
  0x38   : > { %768 = vst.msk [vmem:[#allocation3 + $0xa8] sm:$0xff] %vm421_vm0, %v4601_v61  ;;  %v4681_v57 = vsel %vm547_vm1, 0.0, %v584_v48 }
  0x39   : > { %1624 = vrot.lane.b32.xlu0 %v658_v15, %s4251_s25  ;;  %v4634_v15 = vld [vmem:[#allocation2 + $0xb8] sm:$0xff]  ;;  %771 = vst.msk [vmem:[#allocation3 + $0xc0] sm:$0xff] %vm421_vm0, %v4681_v57 }
  0x3a   : > { %v582_v18 = vrot.slane %v4634_v15, 7 }
  0x3b   : > { %1063 = vrot.lane.b32.xlu1 %v4372_v29, %s4252_s26 }
  0x3c   : > { %v4645_v24 = vsel %vm547_vm1, %v581_v14, %v582_v18 }
  0x3d   : > { %1626 = vrot.lane.b32.xlu0 %v728_v16, %s4251_s25  ;;  %v4637_v16 = vsel %vm547_vm1, 0.0, %v581_v14  ;;  %770 = vst.msk [vmem:[#allocation3 + $0xb8] sm:$0xff] %vm421_vm0, %v4645_v24 }
  0x3e   : > { %769 = vst.msk [vmem:[#allocation3 + $0xb0] sm:$0xff] %vm421_vm0, %v4637_v16 }
  0x3f   : > { %791 = vrot.lane.b32.xlu1 %v4370_v28, %s4251_s25 }
  0x41   : > { %793 = vrot.lane.b32.xlu0 %v4372_v29, %s4251_s25 }
  0x43   : > { %1752 = vrot.lane.b32.xlu1 %v4357_v21, %s4253_s6 }
  0x45   : > { %1754 = vrot.lane.b32.xlu0 %v4359_v22, %s4253_s6 }
  0x47   : > { %936 = vrot.lane.b32.xlu1 %v4426_v47, %s4253_s6 }
  0x49   : > { %938 = vrot.lane.b32.xlu0 %v4440_v53, %s4253_s6 }
  0x4b   : > { %1881 = vrot.lane.b32.xlu1 %v661_v32, %s4252_s26 }
  0x4d   : > { %1883 = vrot.lane.b32.xlu0 %v729_v38, %s4252_s26 }
  0x4f   : > { %1065 = vrot.lane.b32.xlu1 %v4377_v33, %s4252_s26 }
  0x51   : > { %1628 = vrot.lane.b32.xlu0 %v661_v32, %s4251_s25  ;;  %v731_v32 = vsel %vm655_vm2, %v666_v30, 0.0 }
  0x53   : > { %1067 = vrot.lane.b32.xlu1 %v4392_v39, %s4252_s26 }
  0x55   : > { %1630 = vrot.lane.b32.xlu0 %v729_v38, %s4251_s25  ;;  %v411_v38 = vld [vmem:[%s4313_s24 + $0xb8] sm:$0xff] }
  0x56   : > { %445 = vst.msk [vmem:[#allocation2 + $0xc8] sm:$0xff] %vm421_vm0, %v411_v38 }
  0x57   : > { %795 = vrot.lane.b32.xlu1 %v4377_v33, %s4251_s25 }
  0x59   : > { %797 = vrot.lane.b32.xlu0 %v4392_v39, %s4251_s25 }
  0x5b   : > { %1756 = vrot.lane.b32.xlu1 %v4361_v23, %s4253_s6 }
  0x5d   : > { %1758 = vrot.lane.b32.xlu0 %v4368_v27, %s4253_s6  ;;  %v4678_v52 = vld [vmem:[#allocation2 + $0xc8] sm:$0xff] }
  0x5e   : > { %v585_v62 = vrot.slane %v4678_v52, 7 }
  0x5f   : > { %940 = vrot.lane.b32.xlu1 %v4454_v58, %s4253_s6 }
  0x61   : > { %942 = vrot.lane.b32.xlu0 %v4457_v59, %s4253_s6 }
  0x63   : > { %1885 = vrot.lane.b32.xlu1 %v664_v4, %s4252_s26 }
  0x65   : > { %1887 = vrot.lane.b32.xlu0 %v730_v9, %s4252_s26 }
  0x67   : > { %1069 = vrot.lane.b32.xlu1 %v4394_v40, %s4252_s26 }
  0x69   : > { %1632 = vrot.lane.b32.xlu0 %v664_v4, %s4251_s25  ;;  %v4690_v4 = vsel %vm547_vm1, %v584_v48, %v585_v62  ;;  %v413_v48 = vld [vmem:[%s4313_s24 + $0xc8] sm:$0xff] }
  0x6a   : > { %772 = vst.msk [vmem:[#allocation3 + $0xc8] sm:$0xff] %vm421_vm0, %v4690_v4  ;;  %447 = vst.msk [vmem:[#allocation2 + $0xd8] sm:$0xff] %vm421_vm0, %v413_v48 }
  0x6b   : > { %1071 = vrot.lane.b32.xlu1 %v4396_v41, %s4252_s26 }
  0x6d   : > { %1634 = vrot.lane.b32.xlu0 %v730_v9, %s4251_s25 }
  0x6f   : > { %799 = vrot.lane.b32.xlu1 %v4394_v40, %s4251_s25 }
  0x71   : > { %801 = vrot.lane.b32.xlu0 %v4396_v41, %s4251_s25 }
  0x73   : > { %1760 = vrot.lane.b32.xlu1 %v4370_v28, %s4253_s6 }
  0x75   : > { %1762 = vrot.lane.b32.xlu0 %v4372_v29, %s4253_s6 }
  0x77   : > { %944 = vrot.lane.b32.xlu1 %v4465_v60, %s4253_s6 }
  0x79   : > { %946 = vrot.lane.b32.xlu0 %v4475_v0, %s4253_s6 }
  0x7b   : > { %1889 = vrot.lane.b32.xlu1 %v667_v31, %s4252_s26 }
  0x7d   : > { %1891 = vrot.lane.b32.xlu0 %v731_v32, %s4252_s26 }
  0x7f   : > { %1073 = vrot.lane.b32.xlu1 %v4415_v46, %s4252_s26 }
  0x81   : > { %1636 = vrot.lane.b32.xlu0 %v667_v31, %s4251_s25  ;;  %v732_v31 = vsel %vm655_vm2, %v669_v12, 0.0 }
  0x83   : > { %1075 = vrot.lane.b32.xlu1 %v4430_v50, %s4252_s26 }
  0x85   : > { %1638 = vrot.lane.b32.xlu0 %v731_v32, %s4251_s25 }
  0x87   : > { %v780_v63 = vpop.permute.xlu0 %779  ;;  %803 = vrot.lane.b32.xlu1 %v4415_v46, %s4251_s25 }
  0x88   : > { %876 = vst.msk [vmem:[#allocation3] sm:$0xff] %vm875_vm3, %v780_v63 }
  0x89   : > { %805 = vrot.lane.b32.xlu0 %v4430_v50, %s4251_s25 }
  0x8b   : > { %v782_v9 = vpop.permute.xlu0 %781  ;;  %1764 = vrot.lane.b32.xlu1 %v4377_v33, %s4253_s6 }
  0x8c   : > { %877 = vst.msk [vmem:[#allocation3 + $0x8] sm:$0xff] %vm875_vm3, %v782_v9 }
  0x8d   : > { %v4701_v14 = vpop.permute.xlu1 %783  ;;  %1766 = vrot.lane.b32.xlu0 %v4392_v39, %s4253_s6 }
  0x8e   : > { %878 = vst.msk [vmem:[#allocation3 + $0x10] sm:$0xff] %vm875_vm3, %v4701_v14 }
  0x8f   : > { %v1054_v18 = vpop.permute.xlu0 %1053  ;;  %948 = vrot.lane.b32.xlu1 %v4484_v2, %s4253_s6 }
  0x91   : > { %v4710_v30 = vpop.permute.xlu1 %785  ;;  %950 = vrot.lane.b32.xlu0 %v4487_v3, %s4253_s6  ;;  %v672_v3 = vrot.slane %v4396_v41, 1 }
  0x92   : > { %879 = vst.msk [vmem:[#allocation3 + $0x18] sm:$0xff] %vm875_vm3, %v4710_v30 }
  0x93   : > { %v925_v32 = vpop.permute.xlu0 %924  ;;  %1893 = vrot.lane.b32.xlu1 %v670_v26, %s4252_s26 }
  0x94   : > { %1021 = vst.msk [vmem:[#allocation3] sm:$0xff] %vm1020_vm4, %v925_v32  ;;  %v4749_v32 = vld [vmem:[#allocation2 + $0xd8] sm:$0xff] }
  0x95   : > { %1150 = vst.msk [vmem:[#allocation3] sm:$0xff] %vm1149_vm5, %v1054_v18  ;;  %v1056_v38 = vpop.permute.xlu1 %1055  ;;  %1895 = vrot.lane.b32.xlu0 %v732_v31, %s4252_s26  ;;  %v587_v18 = vrot.slane %v4738_v11, 7  ;;  %6732 = vst [vmem:[#allocation14_spill] sm:$0xff] %v4749_v32 }
  0x97   : > { %v4725_v62 = vpop.permute.xlu0 %928  ;;  %1077 = vrot.lane.b32.xlu1 %v4432_v51, %s4252_s26  ;;  %v4754_v34 = vsel %vm547_vm1, 0.0, %v587_v18 }
  0x98   : > { %1023 = vst.msk [vmem:[#allocation3 + $0x10] sm:$0xff] %vm1020_vm4, %v4725_v62  ;;  %6733 = vst [vmem:[#allocation15_spill] sm:$0xff] %v4754_v34 }
  0x99   : > { %1640 = vrot.lane.b32.xlu0 %v670_v26, %s4251_s25  ;;  %v927_v63 = vpop.permute.xlu1 %926  ;;  %773 = vst.msk [vmem:[#allocation3 + $0xd0] sm:$0xff] %vm421_vm0, %v4754_v34  ;;  %v416_v34 = vld [vmem:[%s4313_s24 + $0xe0] sm:$0xff] }
  0x9a   : > { %1022 = vst.msk [vmem:[#allocation3 + $0x8] sm:$0xff] %vm1020_vm4, %v927_v63 }
  0x9b   : > { %1151 = vst.msk [vmem:[#allocation3 + $0x8] sm:$0xff] %vm1149_vm5, %v1056_v38  ;;  %v4734_v9 = vpop.permute.xlu0 %1057  ;;  %1079 = vrot.lane.b32.xlu1 %v4443_v55, %s4252_s26  ;;  %v588_v38 = vrot.slane %v4749_v32, 7  ;;  %v415_v32 = vld [vmem:[%s4313_s24 + $0xd8] sm:$0xff] }
  0x9c   : > { %1152 = vst.msk [vmem:[#allocation3 + $0x10] sm:$0xff] %vm1149_vm5, %v4734_v9  ;;  %v1182_v12 = vld [vmem:[#allocation3] sm:$0xff] }
  0x9d   : > { %1642 = vrot.lane.b32.xlu0 %v732_v31, %s4251_s25  ;;  %3983 = vmatprep.mubr.msk.f32.mxu0 %vm1222_vm6, %v1182_v12  ;;  %1576 = vst.msk [vmem:[#allocation3] sm:$0xff] %vm421_vm0, %v4324_v7  ;;  %v4747_v26 = vpop.permute.xlu1 %930  ;;  %v4766_v7 = vsel %vm547_vm1, %v587_v18, %v588_v38  ;;  %v671_v38 = vrot.slane %v4394_v40, 1  ;;  %449 = vst.msk [vmem:[#allocation2 + $0xe8] sm:$0xff] %vm421_vm0, %v415_v32 }
  0x9e   : > { %1024 = vst.msk [vmem:[#allocation3 + $0x18] sm:$0xff] %vm1020_vm4, %v4747_v26  ;;  %6734 = vst [vmem:[#allocation16_spill] sm:$0xff] %v4766_v7 }
  0x9f   : > { %v4757_v48 = vpop.permute.xlu0 %787  ;;  %807 = vrot.lane.b32.xlu1 %v4432_v51, %s4251_s25  ;;  %774 = vst.msk [vmem:[#allocation3 + $0xd8] sm:$0xff] %vm421_vm0, %v4766_v7  ;;  %450 = vst.msk [vmem:[#allocation2 + $0xf0] sm:$0xff] %vm421_vm0, %v416_v34 }
  0xa0   : > { %880 = vst.msk [vmem:[#allocation3 + $0x20] sm:$0xff] %vm875_vm3, %v4757_v48 }
  0xa1   : > { %809 = vrot.lane.b32.xlu0 %v4443_v55, %s4251_s25  ;;  %v4770_v31 = vpop.permute.xlu1 %1059 }
  0xa2   : > { %1153 = vst.msk [vmem:[#allocation3 + $0x18] sm:$0xff] %vm1149_vm5, %v4770_v31  ;;  %v1183_v63 = vld [vmem:[#allocation3 + $0x8] sm:$0xff] }
  0xa3   : > { %v4776_v12 = vpop.permute.xlu0 %932  ;;  %1768 = vrot.lane.b32.xlu1 %v4394_v40, %s4253_s6  ;;  %3984 = vmatmul.mubr.msk.f32.vlgmr.msra.gmra.mxu0 %vm1222_vm6, %v1183_v63  ;;  %1577 = vst.msk [vmem:[#allocation3 + $0x8] sm:$0xff] %vm421_vm0, %v4326_v8  ;;  %v1184_v18 = vld [vmem:[#allocation3 + $0x10] sm:$0xff] }
  0xa4   : > { %1025 = vst.msk [vmem:[#allocation3 + $0x20] sm:$0xff] %vm1020_vm4, %v4776_v12  ;;  %3986 = vmatprep.mubr.msk.f32.mxu0 %vm1222_vm6, %v1184_v18  ;;  %v673_v18 = vsel %vm655_vm2, %v671_v38, %v672_v3  ;;  %v414_v38 = vld [vmem:[%s4313_s24 + $0xd0] sm:$0xff]  ;;  %v4845_v59 = vld [vmem:[#allocation2 + $0xe8] sm:$0xff] }
  0xa5   : > { %1578 = vst.msk [vmem:[#allocation3 + $0x10] sm:$0xff] %vm421_vm0, %v4357_v21  ;;  %1770 = vrot.lane.b32.xlu0 %v4396_v41, %s4253_s6  ;;  %v4792_v63 = vpop.permute.xlu1 %789  ;;  %448 = vst.msk [vmem:[#allocation2 + $0xe0] sm:$0xff] %vm421_vm0, %v414_v38  ;;  %v591_v58 = vrot.slane %v4845_v59, 7 }
  0xa6   : > { %881 = vst.msk [vmem:[#allocation3 + $0x28] sm:$0xff] %vm875_vm3, %v4792_v63  ;;  %6736 = vst [vmem:[#allocation18_spill] sm:$0xff] %v4845_v59 }
  0xa7   : > { %v4796_v8 = vpop.permute.xlu0 %1061  ;;  %952 = vrot.lane.b32.xlu1 %v4497_v5, %s4253_s6  ;;  %v733_v5 = vsel %vm655_vm2, %v672_v3, 0.0 }
  0xa8   : > { %1154 = vst.msk [vmem:[#allocation3 + $0x20] sm:$0xff] %vm1149_vm5, %v4796_v8 }
  0xa9   : > { %954 = vrot.lane.b32.xlu0 %v4509_v10, %s4253_s6  ;;  %v4805_v2 = vpop.permute.xlu1 %934  ;;  %v1185_v0 = vld [vmem:[#allocation3 + $0x18] sm:$0xff] }
  0xaa   : > { %1026 = vst.msk [vmem:[#allocation3 + $0x28] sm:$0xff] %vm1020_vm4, %v4805_v2  ;;  %3987 = vmatmul.mubr.msk.f32.gmra.mxu0 %vm1222_vm6, %v1185_v0 }
  0xab   : > { %1579 = vst.msk [vmem:[#allocation3 + $0x18] sm:$0xff] %vm421_vm0, %v4359_v22  ;;  %v1625_v60 = vpop.permute.xlu0 %1624  ;;  %1897 = vrot.lane.b32.xlu1 %v673_v18, %s4252_s26 }
  0xac   : > { %1720 = vst.msk [vmem:[#allocation3] sm:$0xff] %vm875_vm3, %v1625_v60  ;;  %v4839_v38 = vld [vmem:[#allocation2 + $0xe0] sm:$0xff] }
  0xad   : > { %1899 = vrot.lane.b32.xlu0 %v733_v5, %s4252_s26  ;;  %v4818_v10 = vpop.permute.xlu1 %1063  ;;  %6735 = vst [vmem:[#allocation17_spill] sm:$0xff] %v4839_v38 }
  0xae   : > { %1155 = vst.msk [vmem:[#allocation3 + $0x28] sm:$0xff] %vm1149_vm5, %v4818_v10 }
  0xaf   : > { %v1627_v0 = vpop.permute.xlu0 %1626  ;;  %1081 = vrot.lane.b32.xlu1 %v4477_v1, %s4252_s26  ;;  %v1186_v3 = vld [vmem:[#allocation3 + $0x20] sm:$0xff] }
  0xb0   : > { %1721 = vst.msk [vmem:[#allocation3 + $0x8] sm:$0xff] %vm875_vm3, %v1627_v0  ;;  %3989 = vmatprep.mubr.msk.f32.mxu0 %vm1222_vm6, %v1186_v3  ;;  %v590_v0 = vrot.slane %v4839_v38, 7 }
  0xb1   : > { %1580 = vst.msk [vmem:[#allocation3 + $0x20] sm:$0xff] %vm421_vm0, %v4361_v23  ;;  %1644 = vrot.lane.b32.xlu0 %v673_v18, %s4251_s25  ;;  %v4831_v60 = vpop.permute.xlu1 %791 }
  0xb2   : > { %882 = vst.msk [vmem:[#allocation3 + $0x30] sm:$0xff] %vm875_vm3, %v4831_v60  ;;  %v4852_v11 = vsel %vm547_vm1, 0.0, %v590_v0 }
  0xb3   : > { %v4835_v32 = vpop.permute.xlu0 %793  ;;  %1083 = vrot.lane.b32.xlu1 %v4499_v6, %s4252_s26  ;;  %6737 = vst [vmem:[#allocation19_spill] sm:$0xff] %v4852_v11  ;;  %775 = vst.msk [vmem:[#allocation3 + $0xe0] sm:$0xff] %vm421_vm0, %v4852_v11 }
  0xb4   : > { %883 = vst.msk [vmem:[#allocation3 + $0x38] sm:$0xff] %vm875_vm3, %v4835_v32 }
  0xb5   : > { %1646 = vrot.lane.b32.xlu0 %v733_v5, %s4251_s25  ;;  %v1753_v18 = vpop.permute.xlu1 %1752  ;;  %v1187_v3 = vld [vmem:[#allocation3 + $0x28] sm:$0xff]  ;;  %v4861_v5 = vsel %vm547_vm1, %v590_v0, %v591_v58  ;;  %v674_v58 = vrot.slane %v4415_v46, 1 }
  0xb6   : > { %1848 = vst.msk [vmem:[#allocation3] sm:$0xff] %vm1020_vm4, %v1753_v18  ;;  %3990 = vmatmul.mubr.msk.f32.gmra.mxu0 %vm1222_vm6, %v1187_v3  ;;  %6738 = vst [vmem:[#allocation20_spill] sm:$0xff] %v4861_v5 }
  0xb7   : > { %1581 = vst.msk [vmem:[#allocation3 + $0x28] sm:$0xff] %vm421_vm0, %v4368_v27  ;;  %v1755_v7 = vpop.permute.xlu0 %1754  ;;  %811 = vrot.lane.b32.xlu1 %v4477_v1, %s4251_s25  ;;  %776 = vst.msk [vmem:[#allocation3 + $0xe8] sm:$0xff] %vm421_vm0, %v4861_v5 }
  0xb8   : > { %1849 = vst.msk [vmem:[#allocation3 + $0x8] sm:$0xff] %vm1020_vm4, %v1755_v7  ;;  %v675_v7 = vrot.slane %v4430_v50, 1 }
  0xb9   : > { %813 = vrot.lane.b32.xlu0 %v4499_v6, %s4251_s25  ;;  %v4865_v18 = vpop.permute.xlu1 %936 }
  0xba   : > { %1027 = vst.msk [vmem:[#allocation3 + $0x30] sm:$0xff] %vm1020_vm4, %v4865_v18  ;;  %v676_v38 = vsel %vm655_vm2, %v674_v58, %v675_v7  ;;  %v734_v11 = vsel %vm655_vm2, %v675_v7, 0.0 }
  0xbb   : > { %v4871_v3 = vpop.permute.xlu0 %938  ;;  %1772 = vrot.lane.b32.xlu1 %v4415_v46, %s4253_s6 }
  0xbc   : > { %1028 = vst.msk [vmem:[#allocation3 + $0x38] sm:$0xff] %vm1020_vm4, %v4871_v3 }
  0xbd   : > { %1774 = vrot.lane.b32.xlu0 %v4430_v50, %s4253_s6  ;;  %v1882_v0 = vpop.permute.xlu1 %1881 }
  0xbe   : > { %1977 = vst.msk [vmem:[#allocation3] sm:$0xff] %vm1149_vm5, %v1882_v0 }
  0xbf   : > { %v1884_v59 = vpop.permute.xlu0 %1883  ;;  %956 = vrot.lane.b32.xlu1 %v4543_v20, %s4253_s6 }
  0xc0   : > { %1978 = vst.msk [vmem:[#allocation3 + $0x8] sm:$0xff] %vm1149_vm5, %v1884_v59 }
  0xc1   : > { %958 = vrot.lane.b32.xlu0 %v4551_v25, %s4253_s6  ;;  %v4888_v5 = vpop.permute.xlu1 %1065  ;;  %v417_v25 = vld [vmem:[%s4313_s24 + $0xe8] sm:$0xff] }
  0xc2   : > { %1156 = vst.msk [vmem:[#allocation3 + $0x30] sm:$0xff] %vm1149_vm5, %v4888_v5 }
  0xc3   : > { %v1629_v0 = vpop.permute.xlu0 %1628  ;;  %1901 = vrot.lane.b32.xlu1 %v676_v38, %s4252_s26  ;;  %451 = vst.msk [vmem:[#allocation2 + $0xf8] sm:$0xff] %vm421_vm0, %v417_v25 }
  0xc4   : > { %1722 = vst.msk [vmem:[#allocation3 + $0x10] sm:$0xff] %vm875_vm3, %v1629_v0 }
  0xc5   : > { %1903 = vrot.lane.b32.xlu0 %v734_v11, %s4252_s26  ;;  %v4898_v59 = vpop.permute.xlu1 %1067  ;;  %v2009_v58 = vld [vmem:[#allocation3] sm:$0xff] }
  0xc6   : > { %1157 = vst.msk [vmem:[#allocation3 + $0x38] sm:$0xff] %vm1149_vm5, %v4898_v59  ;;  %4035 = vmatprep.mubr.msk.f32.mxu1 %vm1222_vm6, %v2009_v58 }
  0xc7   : > { %2398 = vst.msk [vmem:[#allocation3] sm:$0xff] %vm421_vm0, %v4383_v35  ;;  %v1631_v34 = vpop.permute.xlu0 %1630  ;;  %v2010_v7 = vld [vmem:[#allocation3 + $0x8] sm:$0xff]  ;;  %1085 = vrot.lane.b32.xlu1 %v4536_v17, %s4252_s26 }
  0xc8   : > { %2436 = vst.msk [vmem:[#allocation3] sm:$0xff] %vm875_vm3, %v4701_v14  ;;  %1723 = vst.msk [vmem:[#allocation3 + $0x18] sm:$0xff] %vm875_vm3, %v1631_v34  ;;  %4036 = vmatmul.mubr.msk.f32.vlgmr.msra.gmra.mxu1 %vm1222_vm6, %v2010_v7  ;;  %v4937_v14 = vld [vmem:[#allocation2 + $0xf0] sm:$0xff] }
  0xc9   : > { %2475 = vst.msk [vmem:[#allocation3] sm:$0xff] %vm1020_vm4, %v4725_v62  ;;  %1648 = vrot.lane.b32.xlu0 %v676_v38, %s4251_s25  ;;  %v4922_v35 = vpop.permute.xlu1 %795  ;;  %v1188_v25 = vld [vmem:[#allocation3 + $0x30] sm:$0xff] }
  0xca   : > { %2399 = vst.msk [vmem:[#allocation3 + $0x8] sm:$0xff] %vm421_vm0, %v4389_v37  ;;  %3992 = vmatprep.mubr.msk.f32.mxu0 %vm1222_vm6, %v1188_v25  ;;  %1582 = vst.msk [vmem:[#allocation3 + $0x30] sm:$0xff] %vm421_vm0, %v4370_v28 }
  0xcb   : > { %2513 = vst.msk [vmem:[#allocation3] sm:$0xff] %vm1149_vm5, %v4734_v9  ;;  %v4933_v37 = vpop.permute.xlu0 %797  ;;  %1087 = vrot.lane.b32.xlu1 %v4540_v19, %s4252_s26 }
  0xcc   : > { %2437 = vst.msk [vmem:[#allocation3 + $0x8] sm:$0xff] %vm875_vm3, %v4710_v30  ;;  %884 = vst.msk [vmem:[#allocation3 + $0x40] sm:$0xff] %vm875_vm3, %v4922_v35  ;;  %v593_v30 = vrot.slane %v4937_v14, 7 }
  0xcd   : > { %2476 = vst.msk [vmem:[#allocation3 + $0x8] sm:$0xff] %vm1020_vm4, %v4747_v26  ;;  %1650 = vrot.lane.b32.xlu0 %v734_v11, %s4251_s25  ;;  %v1757_v62 = vpop.permute.xlu1 %1756  ;;  %v1189_v9 = vld [vmem:[#allocation3 + $0x38] sm:$0xff] }
  0xce   : > { %2514 = vst.msk [vmem:[#allocation3 + $0x8] sm:$0xff] %vm1149_vm5, %v4770_v31  ;;  %v4943_v26 = vld [vmem:[#allocation2 + $0xf8] sm:$0xff]  ;;  %3993 = vmatmul.mubr.msk.f32.gmra.mxu0 %vm1222_vm6, %v1189_v9  ;;  %v4950_v31 = vsel %vm547_vm1, 0.0, %v593_v30 }
  0xcf   : > { %885 = vst.msk [vmem:[#allocation3 + $0x48] sm:$0xff] %vm875_vm3, %v4933_v37  ;;  %v594_v38 = vrot.slane %v4943_v26, 7  ;;  %v1759_v58 = vpop.permute.xlu0 %1758  ;;  %815 = vrot.lane.b32.xlu1 %v4536_v17, %s4251_s25 }
  0xd0   : > { %1850 = vst.msk [vmem:[#allocation3 + $0x10] sm:$0xff] %vm1020_vm4, %v1757_v62  ;;  %1851 = vst.msk [vmem:[#allocation3 + $0x18] sm:$0xff] %vm1020_vm4, %v1759_v58 }
  0xd1   : > { %1583 = vst.msk [vmem:[#allocation3 + $0x38] sm:$0xff] %vm421_vm0, %v4372_v29  ;;  %777 = vst.msk [vmem:[#allocation3 + $0xf0] sm:$0xff] %vm421_vm0, %v4950_v31  ;;  %v4961_v7 = vsel %vm547_vm1, %v593_v30, %v594_v38  ;;  %817 = vrot.lane.b32.xlu0 %v4540_v19, %s4251_s25  ;;  %v4967_v25 = vpop.permute.xlu1 %940  ;;  %v678_v30 = vrot.slane %v4443_v55, 1 }
  0xd2   : > { %v4957_v11 = vld [vmem:[#allocation3] sm:$0xff]  ;;  %6740 = vst [vmem:[#allocation22_spill] sm:$0xff] %v4961_v7  ;;  %778 = vst.msk [vmem:[#allocation3 + $0xf8] sm:$0xff] %vm421_vm0, %v4961_v7 }
  0xd3   : > { %6739 = vst [vmem:[#allocation21_spill] sm:$0xff] %v4957_v11  ;;  %2934 = vst.msk [vmem:[#allocation3] sm:$0xff] %vm421_vm0, %v4357_v21  ;;  %v4979_v21 = vpop.permute.xlu0 %942  ;;  %1776 = vrot.lane.b32.xlu1 %v4432_v51, %s4253_s6  ;;  %v419_v11 = vld [vmem:[%s4313_s24 + $0xf8] sm:$0xff] }
  0xd4   : > { %2972 = vst.msk [vmem:[#allocation3] sm:$0xff] %vm875_vm3, %v1629_v0  ;;  %v677_v0 = vrot.slane %v4432_v51, 1 }
  0xd5   : > { %v4971_v9 = vld [vmem:[#allocation3 + $0x8] sm:$0xff]  ;;  %1029 = vst.msk [vmem:[#allocation3 + $0x40] sm:$0xff] %vm1020_vm4, %v4967_v25  ;;  %3010 = vst.msk [vmem:[#allocation3] sm:$0xff] %vm1020_vm4, %v1757_v62  ;;  %1778 = vrot.lane.b32.xlu0 %v4443_v55, %s4253_s6 }
  0xd6   : > { %6741 = vst [vmem:[#allocation23_spill] sm:$0xff] %v4971_v9  ;;  %2935 = vst.msk [vmem:[#allocation3 + $0x8] sm:$0xff] %vm421_vm0, %v4359_v22  ;;  %v1886_v22 = vpop.permute.xlu1 %1885  ;;  %v418_v9 = vld [vmem:[%s4313_s24 + $0xf0] sm:$0xff] }
  0xd7   : > { %2973 = vst.msk [vmem:[#allocation3 + $0x8] sm:$0xff] %vm875_vm3, %v1631_v34  ;;  %v1888_v62 = vpop.permute.xlu0 %1887  ;;  %960 = vrot.lane.b32.xlu1 %v4593_v56, %s4253_s6  ;;  %v679_v34 = vsel %vm655_vm2, %v677_v0, %v678_v30 }
  0xd8   : > { %1030 = vst.msk [vmem:[#allocation3 + $0x48] sm:$0xff] %vm1020_vm4, %v4979_v21  ;;  %3011 = vst.msk [vmem:[#allocation3 + $0x8] sm:$0xff] %vm1020_vm4, %v1759_v58  ;;  %v735_v58 = vsel %vm655_vm2, %v678_v30, 0.0 }
  0xd9   : > { %1979 = vst.msk [vmem:[#allocation3 + $0x10] sm:$0xff] %vm1149_vm5, %v1886_v22  ;;  %3049 = vst.msk [vmem:[#allocation3] sm:$0xff] %vm1149_vm5, %v1886_v22  ;;  %962 = vrot.lane.b32.xlu0 %v4601_v61, %s4253_s6 }
  0xda   : > { %1980 = vst.msk [vmem:[#allocation3 + $0x18] sm:$0xff] %vm1149_vm5, %v1888_v62  ;;  %3050 = vst.msk [vmem:[#allocation3 + $0x8] sm:$0xff] %vm1149_vm5, %v1888_v62  ;;  %v5000_v38 = vpop.permute.xlu1 %1069 }
  0xdb   : > { %1158 = vst.msk [vmem:[#allocation3 + $0x40] sm:$0xff] %vm1149_vm5, %v5000_v38  ;;  %v1633_v22 = vpop.permute.xlu0 %1632  ;;  %1905 = vrot.lane.b32.xlu1 %v679_v34, %s4252_s26 }
  0xdc   : > { %1724 = vst.msk [vmem:[#allocation3 + $0x20] sm:$0xff] %vm875_vm3, %v1633_v22 }
  0xdd   : > { %452 = vst.msk [vmem:[#allocation2 + $0x100] sm:$0xff] %vm421_vm0, %v418_v9  ;;  %1907 = vrot.lane.b32.xlu0 %v735_v58, %s4252_s26  ;;  %453 = vst.msk [vmem:[#allocation2 + $0x108] sm:$0xff] %vm421_vm0, %v419_v11 }
  0xde   : > { %v5010_v0 = vpop.permute.xlu1 %1071 }
  0xdf   : > { %1159 = vst.msk [vmem:[#allocation3 + $0x48] sm:$0xff] %vm1149_vm5, %v5010_v0  ;;  %v1635_v9 = vpop.permute.xlu0 %1634  ;;  %1089 = vrot.lane.b32.xlu1 %v4586_v49, %s4252_s26 }
  0xe0   : > { %v2011_v62 = vld [vmem:[#allocation3 + $0x10] sm:$0xff]  ;;  %1725 = vst.msk [vmem:[#allocation3 + $0x28] sm:$0xff] %vm875_vm3, %v1635_v9 }
  0xe1   : > { %2400 = vst.msk [vmem:[#allocation3 + $0x10] sm:$0xff] %vm421_vm0, %v4386_v36  ;;  %4038 = vmatprep.mubr.msk.f32.mxu1 %vm1222_vm6, %v2011_v62  ;;  %v2012_v30 = vld [vmem:[#allocation3 + $0x18] sm:$0xff]  ;;  %1652 = vrot.lane.b32.xlu0 %v679_v34, %s4251_s25 }
  0xe2   : > { %2438 = vst.msk [vmem:[#allocation3 + $0x10] sm:$0xff] %vm875_vm3, %v4757_v48  ;;  %4039 = vmatmul.mubr.msk.f32.gmra.mxu1 %vm1222_vm6, %v2012_v30  ;;  %v5034_v36 = vpop.permute.xlu1 %799  ;;  %v1190_v48 = vld [vmem:[#allocation3 + $0x40] sm:$0xff] }
  0xe3   : > { %2477 = vst.msk [vmem:[#allocation3 + $0x10] sm:$0xff] %vm1020_vm4, %v4776_v12  ;;  %3995 = vmatprep.mubr.msk.f32.mxu0 %vm1222_vm6, %v1190_v48  ;;  %1091 = vrot.lane.b32.xlu1 %v4590_v54, %s4252_s26 }
  0xe4   : > { %2401 = vst.msk [vmem:[#allocation3 + $0x18] sm:$0xff] %vm421_vm0, %v4406_v42  ;;  %1584 = vst.msk [vmem:[#allocation3 + $0x40] sm:$0xff] %vm421_vm0, %v4377_v33  ;;  %v5045_v42 = vpop.permute.xlu0 %801 }
  0xe5   : > { %2515 = vst.msk [vmem:[#allocation3 + $0x10] sm:$0xff] %vm1149_vm5, %v4796_v8  ;;  %1654 = vrot.lane.b32.xlu0 %v735_v58, %s4251_s25  ;;  %v681_v58 = vrot.slane %v4499_v6, 1 }
  0xe6   : > { %2439 = vst.msk [vmem:[#allocation3 + $0x18] sm:$0xff] %vm875_vm3, %v4792_v63  ;;  %886 = vst.msk [vmem:[#allocation3 + $0x50] sm:$0xff] %vm875_vm3, %v5034_v36  ;;  %v1191_v12 = vld [vmem:[#allocation3 + $0x48] sm:$0xff] }
  0xe7   : > { %2478 = vst.msk [vmem:[#allocation3 + $0x18] sm:$0xff] %vm1020_vm4, %v4805_v2  ;;  %v1761_v2 = vpop.permute.xlu1 %1760  ;;  %3996 = vmatmul.mubr.msk.f32.gmra.mxu0 %vm1222_vm6, %v1191_v12  ;;  %819 = vrot.lane.b32.xlu1 %v4586_v49, %s4251_s25  ;;  %v736_v30 = vsel %vm655_vm2, %v681_v58, 0.0 }
  0xe8   : > { %2516 = vst.msk [vmem:[#allocation3 + $0x18] sm:$0xff] %vm1149_vm5, %v4818_v10  ;;  %v1763_v10 = vpop.permute.xlu0 %1762 }
  0xe9   : > { %887 = vst.msk [vmem:[#allocation3 + $0x58] sm:$0xff] %vm875_vm3, %v5045_v42  ;;  %821 = vrot.lane.b32.xlu0 %v4590_v54, %s4251_s25 }
  0xea   : > { %1852 = vst.msk [vmem:[#allocation3 + $0x20] sm:$0xff] %vm1020_vm4, %v1761_v2  ;;  %1853 = vst.msk [vmem:[#allocation3 + $0x28] sm:$0xff] %vm1020_vm4, %v1763_v10 }
  0xeb   : > { %1585 = vst.msk [vmem:[#allocation3 + $0x48] sm:$0xff] %vm421_vm0, %v4392_v39  ;;  %v5065_v8 = vpop.permute.xlu1 %944  ;;  %1780 = vrot.lane.b32.xlu1 %v4477_v1, %s4253_s6 }
  0xec   : > { %v5058_v63 = vld [vmem:[#allocation3 + $0x10] sm:$0xff]  ;;  %1031 = vst.msk [vmem:[#allocation3 + $0x50] sm:$0xff] %vm1020_vm4, %v5065_v8  ;;  %v5075_v34 = vpop.permute.xlu0 %946 }
  0xed   : > { %2936 = vst.msk [vmem:[#allocation3 + $0x10] sm:$0xff] %vm421_vm0, %v4361_v23  ;;  %v680_v23 = vrot.slane %v4477_v1, 1  ;;  %1782 = vrot.lane.b32.xlu0 %v4499_v6, %s4253_s6 }
  0xee   : > { %2974 = vst.msk [vmem:[#allocation3 + $0x10] sm:$0xff] %vm875_vm3, %v1633_v22 }
  0xef   : > { %v5068_v11 = vld [vmem:[#allocation3 + $0x18] sm:$0xff]  ;;  %3012 = vst.msk [vmem:[#allocation3 + $0x10] sm:$0xff] %vm1020_vm4, %v1761_v2  ;;  %1032 = vst.msk [vmem:[#allocation3 + $0x58] sm:$0xff] %vm1020_vm4, %v5075_v34  ;;  %964 = vrot.lane.b32.xlu1 %v4637_v16, %s4253_s6  ;;  %v682_v62 = vsel %vm655_vm2, %v680_v23, %v681_v58 }
  0xf0   : > { %2937 = vst.msk [vmem:[#allocation3 + $0x18] sm:$0xff] %vm421_vm0, %v4368_v27  ;;  %v1890_v27 = vpop.permute.xlu1 %1889  ;;  %v1892_v22 = vpop.permute.xlu0 %1891 }
  0xf1   : > { %2975 = vst.msk [vmem:[#allocation3 + $0x18] sm:$0xff] %vm875_vm3, %v1635_v9  ;;  %966 = vrot.lane.b32.xlu0 %v4645_v24, %s4253_s6 }
  0xf2   : > { %3013 = vst.msk [vmem:[#allocation3 + $0x18] sm:$0xff] %vm1020_vm4, %v1763_v10 }
  0xf3   : > { %1981 = vst.msk [vmem:[#allocation3 + $0x20] sm:$0xff] %vm1149_vm5, %v1890_v27  ;;  %3051 = vst.msk [vmem:[#allocation3 + $0x10] sm:$0xff] %vm1149_vm5, %v1890_v27  ;;  %1909 = vrot.lane.b32.xlu1 %v682_v62, %s4252_s26 }
  0xf4   : > { %1982 = vst.msk [vmem:[#allocation3 + $0x28] sm:$0xff] %vm1149_vm5, %v1892_v22  ;;  %3052 = vst.msk [vmem:[#allocation3 + $0x18] sm:$0xff] %vm1149_vm5, %v1892_v22  ;;  %v5096_v9 = vpop.permute.xlu1 %1073  ;;  %v1637_v48 = vpop.permute.xlu0 %1636 }
  0xf5   : > { %1160 = vst.msk [vmem:[#allocation3 + $0x50] sm:$0xff] %vm1149_vm5, %v5096_v9  ;;  %1911 = vrot.lane.b32.xlu0 %v736_v30, %s4252_s26 }
  0xf6   : > { %1726 = vst.msk [vmem:[#allocation3 + $0x30] sm:$0xff] %vm875_vm3, %v1637_v48 }
  0xf7   : > { %1093 = vrot.lane.b32.xlu1 %v4630_v13, %s4252_s26 }
  0xf8   : > { %v5104_v12 = vpop.permute.xlu1 %1075  ;;  %v1639_v10 = vpop.permute.xlu0 %1638 }
  0xf9   : > { %1161 = vst.msk [vmem:[#allocation3 + $0x58] sm:$0xff] %vm1149_vm5, %v5104_v12  ;;  %1656 = vrot.lane.b32.xlu0 %v682_v62, %s4251_s25 }
  0xfa   : > { %v2013_v2 = vld [vmem:[#allocation3 + $0x20] sm:$0xff]  ;;  %1727 = vst.msk [vmem:[#allocation3 + $0x38] sm:$0xff] %vm875_vm3, %v1639_v10 }
  0xfb   : > { %2402 = vst.msk [vmem:[#allocation3 + $0x20] sm:$0xff] %vm421_vm0, %v4409_v43  ;;  %4041 = vmatprep.mubr.msk.f32.mxu1 %vm1222_vm6, %v2013_v2  ;;  %v2014_v23 = vld [vmem:[#allocation3 + $0x28] sm:$0xff]  ;;  %1095 = vrot.lane.b32.xlu1 %v4634_v15, %s4252_s26 }
  0xfc   : > { %2440 = vst.msk [vmem:[#allocation3 + $0x20] sm:$0xff] %vm875_vm3, %v4831_v60  ;;  %4042 = vmatmul.mubr.msk.f32.gmra.mxu1 %vm1222_vm6, %v2014_v23  ;;  %v5126_v43 = vpop.permute.xlu1 %803  ;;  %v1192_v60 = vld [vmem:[#allocation3 + $0x50] sm:$0xff] }
  0xfd   : > { %2479 = vst.msk [vmem:[#allocation3 + $0x20] sm:$0xff] %vm1020_vm4, %v4865_v18  ;;  %3998 = vmatprep.mubr.msk.f32.mxu0 %vm1222_vm6, %v1192_v60  ;;  %1658 = vrot.lane.b32.xlu0 %v736_v30, %s4251_s25 }
  0xfe   : > { %2403 = vst.msk [vmem:[#allocation3 + $0x28] sm:$0xff] %vm421_vm0, %v4412_v44  ;;  %1586 = vst.msk [vmem:[#allocation3 + $0x50] sm:$0xff] %vm421_vm0, %v4394_v40  ;;  %v5137_v44 = vpop.permute.xlu0 %805 }
  0xff   : > { %2517 = vst.msk [vmem:[#allocation3 + $0x20] sm:$0xff] %vm1149_vm5, %v4888_v5  ;;  %823 = vrot.lane.b32.xlu1 %v4630_v13, %s4251_s25 }
 0x100   : > { %2441 = vst.msk [vmem:[#allocation3 + $0x28] sm:$0xff] %vm875_vm3, %v4835_v32  ;;  %888 = vst.msk [vmem:[#allocation3 + $0x60] sm:$0xff] %vm875_vm3, %v5126_v43  ;;  %v1765_v32 = vpop.permute.xlu1 %1764  ;;  %v1193_v5 = vld [vmem:[#allocation3 + $0x58] sm:$0xff] }
 0x101   : > { %2480 = vst.msk [vmem:[#allocation3 + $0x28] sm:$0xff] %vm1020_vm4, %v4871_v3  ;;  %1854 = vst.msk [vmem:[#allocation3 + $0x30] sm:$0xff] %vm1020_vm4, %v1765_v32  ;;  %3999 = vmatmul.mubr.msk.f32.gmra.mxu0 %vm1222_vm6, %v1193_v5  ;;  %825 = vrot.lane.b32.xlu0 %v4634_v15, %s4251_s25  ;;  %v684_v15 = vrot.slane %v4540_v19, 1 }
 0x102   : > { %2518 = vst.msk [vmem:[#allocation3 + $0x28] sm:$0xff] %vm1149_vm5, %v4898_v59  ;;  %v1767_v18 = vpop.permute.xlu0 %1766 }
 0x103   : > { %889 = vst.msk [vmem:[#allocation3 + $0x68] sm:$0xff] %vm875_vm3, %v5137_v44  ;;  %1784 = vrot.lane.b32.xlu1 %v4536_v17, %s4253_s6  ;;  %v737_v30 = vsel %vm655_vm2, %v684_v15, 0.0 }
 0x104   : > { %1587 = vst.msk [vmem:[#allocation3 + $0x58] sm:$0xff] %vm421_vm0, %v4396_v41  ;;  %v5157_v59 = vpop.permute.xlu1 %948 }
 0x105   : > { %1855 = vst.msk [vmem:[#allocation3 + $0x38] sm:$0xff] %vm1020_vm4, %v1767_v18  ;;  %1033 = vst.msk [vmem:[#allocation3 + $0x60] sm:$0xff] %vm1020_vm4, %v5157_v59  ;;  %1786 = vrot.lane.b32.xlu0 %v4540_v19, %s4253_s6 }
 0x106   : > { %v5150_v3 = vld [vmem:[#allocation3 + $0x20] sm:$0xff]  ;;  %v5167_v13 = vpop.permute.xlu0 %950 }
 0x107   : > { %2938 = vst.msk [vmem:[#allocation3 + $0x20] sm:$0xff] %vm421_vm0, %v4370_v28  ;;  %v683_v28 = vrot.slane %v4536_v17, 1  ;;  %968 = vrot.lane.b32.xlu1 %v4681_v57, %s4253_s6 }
 0x108   : > { %2976 = vst.msk [vmem:[#allocation3 + $0x20] sm:$0xff] %vm875_vm3, %v1637_v48 }
 0x109   : > { %v5160_v58 = vld [vmem:[#allocation3 + $0x28] sm:$0xff]  ;;  %3014 = vst.msk [vmem:[#allocation3 + $0x20] sm:$0xff] %vm1020_vm4, %v1765_v32  ;;  %1034 = vst.msk [vmem:[#allocation3 + $0x68] sm:$0xff] %vm1020_vm4, %v5167_v13  ;;  %v685_v22 = vsel %vm655_vm2, %v683_v28, %v684_v15  ;;  %970 = vrot.lane.b32.xlu0 %v4690_v4, %s4253_s6  ;;  %v6743_v15 = vld [vmem:[#allocation16_spill] sm:$0xff] }
 0x10a   : > { %2939 = vst.msk [vmem:[#allocation3 + $0x28] sm:$0xff] %vm421_vm0, %v4372_v29  ;;  %v1894_v29 = vpop.permute.xlu1 %1893  ;;  %v1896_v27 = vpop.permute.xlu0 %1895 }
 0x10b   : > { %2977 = vst.msk [vmem:[#allocation3 + $0x28] sm:$0xff] %vm875_vm3, %v1639_v10  ;;  %1913 = vrot.lane.b32.xlu1 %v685_v22, %s4252_s26 }
 0x10c   : > { %3015 = vst.msk [vmem:[#allocation3 + $0x28] sm:$0xff] %vm1020_vm4, %v1767_v18  ;;  %v6742_v18 = vld [vmem:[#allocation15_spill] sm:$0xff] }
 0x10d   : > { %1983 = vst.msk [vmem:[#allocation3 + $0x30] sm:$0xff] %vm1149_vm5, %v1894_v29  ;;  %3053 = vst.msk [vmem:[#allocation3 + $0x20] sm:$0xff] %vm1149_vm5, %v1894_v29  ;;  %1915 = vrot.lane.b32.xlu0 %v737_v30, %s4252_s26 }
 0x10e   : > { %1984 = vst.msk [vmem:[#allocation3 + $0x38] sm:$0xff] %vm1149_vm5, %v1896_v27  ;;  %3054 = vst.msk [vmem:[#allocation3 + $0x28] sm:$0xff] %vm1149_vm5, %v1896_v27  ;;  %v5188_v62 = vpop.permute.xlu1 %1077  ;;  %v1641_v48 = vpop.permute.xlu0 %1640 }
 0x10f   : > { %1162 = vst.msk [vmem:[#allocation3 + $0x60] sm:$0xff] %vm1149_vm5, %v5188_v62  ;;  %1097 = vrot.lane.b32.xlu1 %v4674_v45, %s4252_s26 }
 0x110   : > { %1728 = vst.msk [vmem:[#allocation3 + $0x40] sm:$0xff] %vm875_vm3, %v1641_v48 }
 0x111   : > { %1660 = vrot.lane.b32.xlu0 %v685_v22, %s4251_s25 }
 0x112   : > { %v5196_v10 = vpop.permute.xlu1 %1079  ;;  %v1643_v23 = vpop.permute.xlu0 %1642 }
 0x113   : > { %1163 = vst.msk [vmem:[#allocation3 + $0x68] sm:$0xff] %vm1149_vm5, %v5196_v10  ;;  %1099 = vrot.lane.b32.xlu1 %v4678_v52, %s4252_s26 }
 0x114   : > { %v2015_v2 = vld [vmem:[#allocation3 + $0x30] sm:$0xff]  ;;  %1729 = vst.msk [vmem:[#allocation3 + $0x48] sm:$0xff] %vm875_vm3, %v1643_v23 }
 0x115   : > { %2404 = vst.msk [vmem:[#allocation3 + $0x30] sm:$0xff] %vm421_vm0, %v4426_v47  ;;  %4044 = vmatprep.mubr.msk.f32.mxu1 %vm1222_vm6, %v2015_v2  ;;  %v2016_v60 = vld [vmem:[#allocation3 + $0x38] sm:$0xff]  ;;  %1662 = vrot.lane.b32.xlu0 %v737_v30, %s4251_s25  ;;  %v6744_v2 = vld [vmem:[#allocation4_spill] sm:$0xff] }
 0x116   : > { %2442 = vst.msk [vmem:[#allocation3 + $0x30] sm:$0xff] %vm875_vm3, %v4922_v35  ;;  %4045 = vmatmul.mubr.msk.f32.gmra.mxu1 %vm1222_vm6, %v2016_v60  ;;  %v5218_v47 = vpop.permute.xlu1 %807  ;;  %v1194_v35 = vld [vmem:[#allocation3 + $0x60] sm:$0xff] }
 0x117   : > { %2481 = vst.msk [vmem:[#allocation3 + $0x30] sm:$0xff] %vm1020_vm4, %v4967_v25  ;;  %4001 = vmatprep.mubr.msk.f32.mxu0 %vm1222_vm6, %v1194_v35  ;;  %827 = vrot.lane.b32.xlu1 %v4674_v45, %s4251_s25  ;;  %v6745_v35 = vld [vmem:[#allocation13_spill] sm:$0xff] }
 0x118   : > { %2405 = vst.msk [vmem:[#allocation3 + $0x38] sm:$0xff] %vm421_vm0, %v4440_v53  ;;  %1588 = vst.msk [vmem:[#allocation3 + $0x60] sm:$0xff] %vm421_vm0, %v4415_v46  ;;  %v5229_v53 = vpop.permute.xlu0 %809 }
 0x119   : > { %2519 = vst.msk [vmem:[#allocation3 + $0x30] sm:$0xff] %vm1149_vm5, %v5000_v38  ;;  %829 = vrot.lane.b32.xlu0 %v4678_v52, %s4251_s25  ;;  %v687_v52 = vrot.slane %v4590_v54, 1 }
 0x11a   : > { %2443 = vst.msk [vmem:[#allocation3 + $0x38] sm:$0xff] %vm875_vm3, %v4933_v37  ;;  %890 = vst.msk [vmem:[#allocation3 + $0x70] sm:$0xff] %vm875_vm3, %v5218_v47  ;;  %v1769_v37 = vpop.permute.xlu1 %1768  ;;  %v1195_v25 = vld [vmem:[#allocation3 + $0x68] sm:$0xff] }
 0x11b   : > { %2482 = vst.msk [vmem:[#allocation3 + $0x38] sm:$0xff] %vm1020_vm4, %v4979_v21  ;;  %1856 = vst.msk [vmem:[#allocation3 + $0x40] sm:$0xff] %vm1020_vm4, %v1769_v37  ;;  %4002 = vmatmul.mubr.msk.f32.gmra.mxu0 %vm1222_vm6, %v1195_v25  ;;  %1788 = vrot.lane.b32.xlu1 %v4586_v49, %s4253_s6  ;;  %v738_v27 = vsel %vm655_vm2, %v687_v52, 0.0 }
 0x11c   : > { %2520 = vst.msk [vmem:[#allocation3 + $0x38] sm:$0xff] %vm1149_vm5, %v5010_v0  ;;  %v1771_v21 = vpop.permute.xlu0 %1770 }
 0x11d   : > { %891 = vst.msk [vmem:[#allocation3 + $0x78] sm:$0xff] %vm875_vm3, %v5229_v53  ;;  %1790 = vrot.lane.b32.xlu0 %v4590_v54, %s4253_s6 }
 0x11e   : > { %1589 = vst.msk [vmem:[#allocation3 + $0x68] sm:$0xff] %vm421_vm0, %v4430_v50  ;;  %v5249_v0 = vpop.permute.xlu1 %952 }
 0x11f   : > { %1857 = vst.msk [vmem:[#allocation3 + $0x48] sm:$0xff] %vm1020_vm4, %v1771_v21  ;;  %1035 = vst.msk [vmem:[#allocation3 + $0x70] sm:$0xff] %vm1020_vm4, %v5249_v0  ;;  %972 = vrot.lane.b32.xlu1 %v6742_v18, %s4253_s6 }
 0x120   : > { %v5242_v38 = vld [vmem:[#allocation3 + $0x30] sm:$0xff]  ;;  %v5259_v45 = vpop.permute.xlu0 %954 }
 0x121   : > { %2940 = vst.msk [vmem:[#allocation3 + $0x30] sm:$0xff] %vm421_vm0, %v4377_v33  ;;  %v686_v33 = vrot.slane %v4586_v49, 1  ;;  %974 = vrot.lane.b32.xlu0 %v6743_v15, %s4253_s6 }
 0x122   : > { %2978 = vst.msk [vmem:[#allocation3 + $0x30] sm:$0xff] %vm875_vm3, %v1641_v48 }
 0x123   : > { %v5252_v32 = vld [vmem:[#allocation3 + $0x38] sm:$0xff]  ;;  %3016 = vst.msk [vmem:[#allocation3 + $0x30] sm:$0xff] %vm1020_vm4, %v1769_v37  ;;  %1036 = vst.msk [vmem:[#allocation3 + $0x78] sm:$0xff] %vm1020_vm4, %v5259_v45  ;;  %v688_v28 = vsel %vm655_vm2, %v686_v33, %v687_v52  ;;  %v6746_v37 = vld [vmem:[#allocation5_spill] sm:$0xff] }
 0x124   : > { %2941 = vst.msk [vmem:[#allocation3 + $0x38] sm:$0xff] %vm421_vm0, %v4392_v39  ;;  %v1898_v39 = vpop.permute.xlu1 %1897  ;;  %v1900_v5 = vpop.permute.xlu0 %1899  ;;  %1917 = vrot.lane.b32.xlu1 %v688_v28, %s4252_s26 }
 0x125   : > { %2979 = vst.msk [vmem:[#allocation3 + $0x38] sm:$0xff] %vm875_vm3, %v1643_v23  ;;  %1919 = vrot.lane.b32.xlu0 %v738_v27, %s4252_s26 }
 0x126   : > { %3017 = vst.msk [vmem:[#allocation3 + $0x38] sm:$0xff] %vm1020_vm4, %v1771_v21 }
 0x127   : > { %1985 = vst.msk [vmem:[#allocation3 + $0x40] sm:$0xff] %vm1149_vm5, %v1898_v39  ;;  %3055 = vst.msk [vmem:[#allocation3 + $0x30] sm:$0xff] %vm1149_vm5, %v1898_v39 }
 0x128   : > { %1986 = vst.msk [vmem:[#allocation3 + $0x48] sm:$0xff] %vm1149_vm5, %v1900_v5  ;;  %3056 = vst.msk [vmem:[#allocation3 + $0x38] sm:$0xff] %vm1149_vm5, %v1900_v5  ;;  %v5280_v29 = vpop.permute.xlu1 %1081  ;;  %v1645_v22 = vpop.permute.xlu0 %1644  ;;  %1101 = vrot.lane.b32.xlu1 %v6745_v35, %s4252_s26 }
 0x129   : > { %1164 = vst.msk [vmem:[#allocation3 + $0x70] sm:$0xff] %vm1149_vm5, %v5280_v29  ;;  %1664 = vrot.lane.b32.xlu0 %v688_v28, %s4251_s25  ;;  %v5361_v28 = vld [vmem:[#allocation2 + $0xb8] sm:$0xff] }
 0x12a   : > { %1730 = vst.msk [vmem:[#allocation3 + $0x50] sm:$0xff] %vm875_vm3, %v1645_v22 }
 0x12c   : > { %v5288_v48 = vpop.permute.xlu1 %1083  ;;  %v1647_v23 = vpop.permute.xlu0 %1646 }
 0x12d   : > { %1165 = vst.msk [vmem:[#allocation3 + $0x78] sm:$0xff] %vm1149_vm5, %v5288_v48  ;;  %1666 = vrot.lane.b32.xlu0 %v738_v27, %s4251_s25 }
 0x12e   : > { %v2017_v30 = vld [vmem:[#allocation3 + $0x40] sm:$0xff]  ;;  %1731 = vst.msk [vmem:[#allocation3 + $0x58] sm:$0xff] %vm875_vm3, %v1647_v23 }
 0x12f   : > { %2406 = vst.msk [vmem:[#allocation3 + $0x40] sm:$0xff] %vm421_vm0, %v6744_v2  ;;  %4047 = vmatprep.mubr.msk.f32.mxu1 %vm1222_vm6, %v2017_v30  ;;  %v2018_v60 = vld [vmem:[#allocation3 + $0x48] sm:$0xff]  ;;  %v6748_v30 = vld [vmem:[#allocation19_spill] sm:$0xff] }
 0x130   : > { %2444 = vst.msk [vmem:[#allocation3 + $0x40] sm:$0xff] %vm875_vm3, %v5034_v36  ;;  %4048 = vmatmul.mubr.msk.f32.gmra.mxu1 %vm1222_vm6, %v2018_v60  ;;  %v5310_v36 = vpop.permute.xlu1 %811  ;;  %v1196_v25 = vld [vmem:[#allocation3 + $0x70] sm:$0xff] }
 0x131   : > { %2483 = vst.msk [vmem:[#allocation3 + $0x40] sm:$0xff] %vm1020_vm4, %v5065_v8  ;;  %4004 = vmatprep.mubr.msk.f32.mxu0 %vm1222_vm6, %v1196_v25  ;;  %v6747_v8 = vld [vmem:[#allocation14_spill] sm:$0xff] }
 0x132   : > { %2407 = vst.msk [vmem:[#allocation3 + $0x48] sm:$0xff] %vm421_vm0, %v6746_v37  ;;  %1590 = vst.msk [vmem:[#allocation3 + $0x70] sm:$0xff] %vm421_vm0, %v4432_v51  ;;  %1103 = vrot.lane.b32.xlu1 %v6747_v8, %s4252_s26  ;;  %833 = vrot.lane.b32.xlu0 %v6747_v8, %s4251_s25 }
 0x133   : > { %2521 = vst.msk [vmem:[#allocation3 + $0x40] sm:$0xff] %vm1149_vm5, %v5096_v9 }
 0x134   : > { %2445 = vst.msk [vmem:[#allocation3 + $0x48] sm:$0xff] %vm875_vm3, %v5045_v42  ;;  %892 = vst.msk [vmem:[#allocation3 + $0x80] sm:$0xff] %vm875_vm3, %v5310_v36  ;;  %v5321_v42 = vpop.permute.xlu0 %813  ;;  %v1197_v9 = vld [vmem:[#allocation3 + $0x78] sm:$0xff] }
 0x135   : > { %2484 = vst.msk [vmem:[#allocation3 + $0x48] sm:$0xff] %vm1020_vm4, %v5075_v34  ;;  %v1773_v34 = vpop.permute.xlu1 %1772  ;;  %4005 = vmatmul.mubr.msk.f32.gmra.mxu0 %vm1222_vm6, %v1197_v9 }
 0x136   : > { %2522 = vst.msk [vmem:[#allocation3 + $0x48] sm:$0xff] %vm1149_vm5, %v5104_v12  ;;  %831 = vrot.lane.b32.xlu1 %v6745_v35, %s4251_s25  ;;  %1794 = vrot.lane.b32.xlu0 %v5361_v28, %s4253_s6 }
 0x137   : > { %893 = vst.msk [vmem:[#allocation3 + $0x88] sm:$0xff] %vm875_vm3, %v5321_v42 }
 0x138   : > { %1858 = vst.msk [vmem:[#allocation3 + $0x50] sm:$0xff] %vm1020_vm4, %v1773_v34  ;;  %v1775_v12 = vpop.permute.xlu0 %1774 }
 0x139   : > { %1591 = vst.msk [vmem:[#allocation3 + $0x78] sm:$0xff] %vm421_vm0, %v4443_v55  ;;  %v5341_v33 = vpop.permute.xlu1 %956 }
 0x13a   : > { %v5334_v21 = vld [vmem:[#allocation3 + $0x40] sm:$0xff]  ;;  %1859 = vst.msk [vmem:[#allocation3 + $0x58] sm:$0xff] %vm1020_vm4, %v1775_v12  ;;  %1037 = vst.msk [vmem:[#allocation3 + $0x80] sm:$0xff] %vm1020_vm4, %v5341_v33 }
 0x13b   : > { %2942 = vst.msk [vmem:[#allocation3 + $0x40] sm:$0xff] %vm421_vm0, %v4394_v40  ;;  %v5353_v40 = vld [vmem:[#allocation2 + $0xb0] sm:$0xff] }
 0x13c   : > { %2980 = vst.msk [vmem:[#allocation3 + $0x40] sm:$0xff] %vm875_vm3, %v1645_v22  ;;  %v5351_v39 = vpop.permute.xlu0 %958  ;;  %1792 = vrot.lane.b32.xlu1 %v5353_v40, %s4253_s6  ;;  %v689_v5 = vrot.slane %v5353_v40, 1 }
 0x13d   : > { %v5344_v52 = vld [vmem:[#allocation3 + $0x48] sm:$0xff]  ;;  %3018 = vst.msk [vmem:[#allocation3 + $0x40] sm:$0xff] %vm1020_vm4, %v1773_v34  ;;  %1038 = vst.msk [vmem:[#allocation3 + $0x88] sm:$0xff] %vm1020_vm4, %v5351_v39  ;;  %v1902_v27 = vpop.permute.xlu1 %1901  ;;  %v6750_v34 = vld [vmem:[#allocation6_spill] sm:$0xff] }
 0x13e   : > { %2943 = vst.msk [vmem:[#allocation3 + $0x48] sm:$0xff] %vm421_vm0, %v4396_v41  ;;  %v690_v41 = vrot.slane %v5361_v28, 1 }
 0x13f   : > { %2981 = vst.msk [vmem:[#allocation3 + $0x48] sm:$0xff] %vm875_vm3, %v1647_v23  ;;  %v6749_v23 = vld [vmem:[#allocation20_spill] sm:$0xff] }
 0x140   : > { %3019 = vst.msk [vmem:[#allocation3 + $0x48] sm:$0xff] %vm1020_vm4, %v1775_v12  ;;  %v1904_v22 = vpop.permute.xlu0 %1903  ;;  %976 = vrot.lane.b32.xlu1 %v6748_v30, %s4253_s6  ;;  %v691_v2 = vsel %vm655_vm2, %v689_v5, %v690_v41  ;;  %978 = vrot.lane.b32.xlu0 %v6749_v23, %s4253_s6  ;;  %v739_v35 = vsel %vm655_vm2, %v690_v41, 0.0  ;;  %v6751_v5 = vld [vmem:[#allocation17_spill] sm:$0xff]  ;;  %v6752_v41 = vld [vmem:[#allocation7_spill] sm:$0xff] }
 0x141   : > { %1987 = vst.msk [vmem:[#allocation3 + $0x50] sm:$0xff] %vm1149_vm5, %v1902_v27  ;;  %3057 = vst.msk [vmem:[#allocation3 + $0x40] sm:$0xff] %vm1149_vm5, %v1902_v27  ;;  %v5376_v60 = vpop.permute.xlu1 %1085 }
 0x142   : > { %1988 = vst.msk [vmem:[#allocation3 + $0x58] sm:$0xff] %vm1149_vm5, %v1904_v22  ;;  %3058 = vst.msk [vmem:[#allocation3 + $0x48] sm:$0xff] %vm1149_vm5, %v1904_v22 }
 0x143   : > { %1166 = vst.msk [vmem:[#allocation3 + $0x80] sm:$0xff] %vm1149_vm5, %v5376_v60 }
 0x144   : > { %v1649_v37 = vpop.permute.xlu0 %1648  ;;  %1921 = vrot.lane.b32.xlu1 %v691_v2, %s4252_s26  ;;  %1923 = vrot.lane.b32.xlu0 %v739_v35, %s4252_s26 }
 0x145   : > { %1732 = vst.msk [vmem:[#allocation3 + $0x60] sm:$0xff] %vm875_vm3, %v1649_v37  ;;  %v5384_v8 = vpop.permute.xlu1 %1087 }
 0x146   : > { %1167 = vst.msk [vmem:[#allocation3 + $0x88] sm:$0xff] %vm1149_vm5, %v5384_v8 }
 0x148   : > { %v2019_v25 = vld [vmem:[#allocation3 + $0x50] sm:$0xff]  ;;  %v1651_v9 = vpop.permute.xlu0 %1650  ;;  %1105 = vrot.lane.b32.xlu1 %v6751_v5, %s4252_s26  ;;  %1668 = vrot.lane.b32.xlu0 %v691_v2, %s4251_s25 }
 0x149   : > { %2408 = vst.msk [vmem:[#allocation3 + $0x50] sm:$0xff] %vm421_vm0, %v6750_v34  ;;  %4050 = vmatprep.mubr.msk.f32.mxu1 %vm1222_vm6, %v2019_v25  ;;  %v2020_v12 = vld [vmem:[#allocation3 + $0x58] sm:$0xff]  ;;  %v5457_v34 = vld [vmem:[#allocation2 + $0xc8] sm:$0xff] }
 0x14a   : > { %2446 = vst.msk [vmem:[#allocation3 + $0x50] sm:$0xff] %vm875_vm3, %v5126_v43  ;;  %1733 = vst.msk [vmem:[#allocation3 + $0x68] sm:$0xff] %vm875_vm3, %v1651_v9  ;;  %4051 = vmatmul.mubr.msk.f32.gmra.mxu1 %vm1222_vm6, %v2020_v12  ;;  %v5406_v43 = vpop.permute.xlu1 %815  ;;  %v1198_v27 = vld [vmem:[#allocation3 + $0x80] sm:$0xff] }
 0x14b   : > { %2485 = vst.msk [vmem:[#allocation3 + $0x50] sm:$0xff] %vm1020_vm4, %v5157_v59  ;;  %4007 = vmatprep.mubr.msk.f32.mxu0 %vm1222_vm6, %v1198_v27  ;;  %v6753_v59 = vld [vmem:[#allocation18_spill] sm:$0xff] }
 0x14c   : > { %2409 = vst.msk [vmem:[#allocation3 + $0x58] sm:$0xff] %vm421_vm0, %v6752_v41  ;;  %1592 = vst.msk [vmem:[#allocation3 + $0x80] sm:$0xff] %vm421_vm0, %v4477_v1  ;;  %1107 = vrot.lane.b32.xlu1 %v6753_v59, %s4252_s26  ;;  %1670 = vrot.lane.b32.xlu0 %v739_v35, %s4251_s25 }
 0x14d   : > { %2523 = vst.msk [vmem:[#allocation3 + $0x50] sm:$0xff] %vm1149_vm5, %v5188_v62  ;;  %v1199_v62 = vld [vmem:[#allocation3 + $0x88] sm:$0xff] }
 0x14e   : > { %2447 = vst.msk [vmem:[#allocation3 + $0x58] sm:$0xff] %vm875_vm3, %v5137_v44  ;;  %894 = vst.msk [vmem:[#allocation3 + $0x90] sm:$0xff] %vm875_vm3, %v5406_v43  ;;  %v5417_v44 = vpop.permute.xlu0 %817  ;;  %4008 = vmatmul.mubr.msk.f32.gmra.mxu0 %vm1222_vm6, %v1199_v62 }
 0x14f   : > { %2486 = vst.msk [vmem:[#allocation3 + $0x58] sm:$0xff] %vm1020_vm4, %v5167_v13  ;;  %v1777_v13 = vpop.permute.xlu1 %1776 }
 0x150   : > { %2524 = vst.msk [vmem:[#allocation3 + $0x58] sm:$0xff] %vm1149_vm5, %v5196_v10  ;;  %835 = vrot.lane.b32.xlu1 %v6751_v5, %s4251_s25  ;;  %837 = vrot.lane.b32.xlu0 %v6753_v59, %s4251_s25 }
 0x151   : > { %895 = vst.msk [vmem:[#allocation3 + $0x98] sm:$0xff] %vm875_vm3, %v5417_v44 }
 0x152   : > { %1860 = vst.msk [vmem:[#allocation3 + $0x60] sm:$0xff] %vm1020_vm4, %v1777_v13  ;;  %v1779_v10 = vpop.permute.xlu0 %1778 }
 0x153   : > { %1593 = vst.msk [vmem:[#allocation3 + $0x88] sm:$0xff] %vm421_vm0, %v4499_v6  ;;  %v5437_v2 = vpop.permute.xlu1 %960 }
 0x154   : > { %v5430_v22 = vld [vmem:[#allocation3 + $0x50] sm:$0xff]  ;;  %1861 = vst.msk [vmem:[#allocation3 + $0x68] sm:$0xff] %vm1020_vm4, %v1779_v10  ;;  %1039 = vst.msk [vmem:[#allocation3 + $0x90] sm:$0xff] %vm1020_vm4, %v5437_v2  ;;  %1798 = vrot.lane.b32.xlu0 %v5457_v34, %s4253_s6 }
 0x155   : > { %6754 = vst [vmem:[#allocation15_spill] sm:$0xff] %v5430_v22  ;;  %2944 = vst.msk [vmem:[#allocation3 + $0x50] sm:$0xff] %vm421_vm0, %v4415_v46  ;;  %v5449_v46 = vld [vmem:[#allocation2 + $0xc0] sm:$0xff] }
 0x156   : > { %2982 = vst.msk [vmem:[#allocation3 + $0x50] sm:$0xff] %vm875_vm3, %v1649_v37  ;;  %v5447_v25 = vpop.permute.xlu0 %962  ;;  %1796 = vrot.lane.b32.xlu1 %v5449_v46, %s4253_s6  ;;  %v692_v37 = vrot.slane %v5449_v46, 1 }
 0x157   : > { %v5440_v35 = vld [vmem:[#allocation3 + $0x58] sm:$0xff]  ;;  %3020 = vst.msk [vmem:[#allocation3 + $0x50] sm:$0xff] %vm1020_vm4, %v1777_v13  ;;  %1040 = vst.msk [vmem:[#allocation3 + $0x98] sm:$0xff] %vm1020_vm4, %v5447_v25  ;;  %v1906_v12 = vpop.permute.xlu1 %1905 }
 0x158   : > { %6755 = vst [vmem:[#allocation16_spill] sm:$0xff] %v5440_v35  ;;  %2945 = vst.msk [vmem:[#allocation3 + $0x58] sm:$0xff] %vm421_vm0, %v4430_v50  ;;  %v693_v50 = vrot.slane %v5457_v34, 1  ;;  %982 = vrot.lane.b32.xlu0 %v4961_v7, %s4253_s6 }
 0x159   : > { %2983 = vst.msk [vmem:[#allocation3 + $0x58] sm:$0xff] %vm875_vm3, %v1651_v9 }
 0x15a   : > { %3021 = vst.msk [vmem:[#allocation3 + $0x58] sm:$0xff] %vm1020_vm4, %v1779_v10  ;;  %v1908_v9 = vpop.permute.xlu0 %1907  ;;  %980 = vrot.lane.b32.xlu1 %v4950_v31, %s4253_s6  ;;  %v694_v5 = vsel %vm655_vm2, %v692_v37, %v693_v50  ;;  %v740_v27 = vsel %vm655_vm2, %v693_v50, 0.0  ;;  %v6756_v10 = vld [vmem:[#allocation8_spill] sm:$0xff] }
 0x15b   : > { %1989 = vst.msk [vmem:[#allocation3 + $0x60] sm:$0xff] %vm1149_vm5, %v1906_v12  ;;  %3059 = vst.msk [vmem:[#allocation3 + $0x50] sm:$0xff] %vm1149_vm5, %v1906_v12  ;;  %v5472_v41 = vpop.permute.xlu1 %1089  ;;  %v6757_v12 = vld [vmem:[#allocation9_spill] sm:$0xff] }
 0x15c   : > { %1990 = vst.msk [vmem:[#allocation3 + $0x68] sm:$0xff] %vm1149_vm5, %v1908_v9  ;;  %3060 = vst.msk [vmem:[#allocation3 + $0x58] sm:$0xff] %vm1149_vm5, %v1908_v9  ;;  %1927 = vrot.lane.b32.xlu0 %v740_v27, %s4252_s26 }
 0x15d   : > { %1168 = vst.msk [vmem:[#allocation3 + $0x90] sm:$0xff] %vm1149_vm5, %v5472_v41 }
 0x15e   : > { %v1653_v59 = vpop.permute.xlu0 %1652  ;;  %1925 = vrot.lane.b32.xlu1 %v694_v5, %s4252_s26 }
 0x15f   : > { %1734 = vst.msk [vmem:[#allocation3 + $0x70] sm:$0xff] %vm875_vm3, %v1653_v59  ;;  %v5480_v62 = vpop.permute.xlu1 %1091 }
 0x160   : > { %1169 = vst.msk [vmem:[#allocation3 + $0x98] sm:$0xff] %vm1149_vm5, %v5480_v62  ;;  %1672 = vrot.lane.b32.xlu0 %v694_v5, %s4251_s25  ;;  %v5535_v5 = vld [vmem:[#allocation2 + $0x100] sm:$0xff] }
 0x161   : > { %6759 = vst [vmem:[#allocation4_spill] sm:$0xff] %v5535_v5 }
 0x162   : > { %v2021_v13 = vld [vmem:[#allocation3 + $0x60] sm:$0xff]  ;;  %v1655_v37 = vpop.permute.xlu0 %1654  ;;  %1109 = vrot.lane.b32.xlu1 %v4937_v14, %s4252_s26 }
 0x163   : > { %2410 = vst.msk [vmem:[#allocation3 + $0x60] sm:$0xff] %vm421_vm0, %v6756_v10  ;;  %4053 = vmatprep.mubr.msk.f32.mxu1 %vm1222_vm6, %v2021_v13  ;;  %v2022_v50 = vld [vmem:[#allocation3 + $0x68] sm:$0xff] }
 0x164   : > { %2448 = vst.msk [vmem:[#allocation3 + $0x60] sm:$0xff] %vm875_vm3, %v5218_v47  ;;  %1735 = vst.msk [vmem:[#allocation3 + $0x78] sm:$0xff] %vm875_vm3, %v1655_v37  ;;  %4054 = vmatmul.mubr.msk.f32.gmra.mxu1 %vm1222_vm6, %v2022_v50  ;;  %v5507_v47 = vpop.permute.xlu1 %819  ;;  %1674 = vrot.lane.b32.xlu0 %v740_v27, %s4251_s25  ;;  %v5543_v10 = vld [vmem:[#allocation2 + $0x108] sm:$0xff]  ;;  %v596_v50 = vrot.slane %v5535_v5, 7 }
 0x165   : > { %2487 = vst.msk [vmem:[#allocation3 + $0x60] sm:$0xff] %vm1020_vm4, %v5249_v0  ;;  %v1200_v0 = vld [vmem:[#allocation3 + $0x90] sm:$0xff] }
 0x166   : > { %2411 = vst.msk [vmem:[#allocation3 + $0x68] sm:$0xff] %vm421_vm0, %v6757_v12  ;;  %4010 = vmatprep.mubr.msk.f32.mxu0 %vm1222_vm6, %v1200_v0  ;;  %1594 = vst.msk [vmem:[#allocation3 + $0x90] sm:$0xff] %vm421_vm0, %v4536_v17  ;;  %1111 = vrot.lane.b32.xlu1 %v4943_v26, %s4252_s26 }
 0x167   : > { %2525 = vst.msk [vmem:[#allocation3 + $0x60] sm:$0xff] %vm1149_vm5, %v5280_v29  ;;  %v3771_v29 = vld [vmem:[%s6690_s3 + $0x38] sm:$0xff] }
 0x168   : > { %2449 = vst.msk [vmem:[#allocation3 + $0x68] sm:$0xff] %vm875_vm3, %v5229_v53  ;;  %896 = vst.msk [vmem:[#allocation3 + $0xa0] sm:$0xff] %vm875_vm3, %v5507_v47  ;;  %v5518_v53 = vpop.permute.xlu0 %821  ;;  %v1201_v9 = vld [vmem:[#allocation3 + $0x98] sm:$0xff]  ;;  %4135 = vmatprep.subr.mxu1 %v3771_v29  ;;  %841 = vrot.lane.b32.xlu0 %v4943_v26, %s4251_s25  ;;  %v3985_v26 = vpop.f32.mrf.mxu0 }
 0x169   : > { %2488 = vst.msk [vmem:[#allocation3 + $0x68] sm:$0xff] %vm1020_vm4, %v5259_v45  ;;  %v3705_v45 = vld [vmem:[%s6690_s3 + $0x28] sm:$0xff]  ;;  %4011 = vmatmul.mubr.msk.f32.gmra.mxu0 %vm1222_vm6, %v1201_v9  ;;  %4136 = vmatpush3.msra.mxu1 %v3771_v29  ;;  %v5586_v29 = vsel %vm547_vm1, 0.0, %v596_v50  ;;  %v5589_v9 = vld [vmem:[#allocation2 + $0xd8] sm:$0xff] }
 0x16a   : > { %2526 = vst.msk [vmem:[#allocation3 + $0x68] sm:$0xff] %vm1149_vm5, %v5288_v48  ;;  %v1781_v48 = vpop.permute.xlu1 %1780  ;;  %4083 = vmatprep.subr.mxu0 %v3705_v45  ;;  %839 = vrot.lane.b32.xlu1 %v4937_v14, %s4251_s25  ;;  %v5559_v14 = vld [vmem:[%s6691_s4] ss:$0 sm:$0xff]  ;;  %6762 = vst [vmem:[#allocation14_spill] sm:$0xff] %v5586_v29 }
 0x16b   : > { %897 = vst.msk [vmem:[#allocation3 + $0xa8] sm:$0xff] %vm875_vm3, %v5518_v53  ;;  %4084 = vmatpush3.msra.mxu0 %v3705_v45  ;;  %v597_v45 = vrot.slane %v5543_v10, 7 }
 0x16c   : > { %1862 = vst.msk [vmem:[#allocation3 + $0x70] sm:$0xff] %vm1020_vm4, %v1781_v48  ;;  %v1783_v13 = vpop.permute.xlu0 %1782  ;;  %1802 = vrot.lane.b32.xlu0 %v5589_v9, %s4253_s6 }
 0x16d   : > { %1595 = vst.msk [vmem:[#allocation3 + $0x98] sm:$0xff] %vm421_vm0, %v4540_v19  ;;  %v5601_v35 = vsel %vm547_vm1, %v596_v50, %v597_v45 }
 0x16e   : > { %v5545_v27 = vld [vmem:[#allocation3 + $0x60] sm:$0xff]  ;;  %1863 = vst.msk [vmem:[#allocation3 + $0x78] sm:$0xff] %vm1020_vm4, %v1783_v13  ;;  %v5554_v12 = vpop.permute.xlu1 %964  ;;  %6763 = vst [vmem:[#allocation19_spill] sm:$0xff] %v5601_v35 }
 0x16f   : > { %6760 = vst [vmem:[#allocation13_spill] sm:$0xff] %v5545_v27  ;;  %2946 = vst.msk [vmem:[#allocation3 + $0x60] sm:$0xff] %vm421_vm0, %v4432_v51 }
 0x170   : > { %2984 = vst.msk [vmem:[#allocation3 + $0x60] sm:$0xff] %vm875_vm3, %v1653_v59  ;;  %v5570_v51 = vpop.permute.xlu0 %966  ;;  %v5577_v59 = vld [vmem:[#allocation2 + $0xd0] sm:$0xff]  ;;  %986 = vrot.lane.b32.xlu0 %v5601_v35, %s4253_s6 }
 0x171   : > { %v5562_v0 = vld [vmem:[#allocation3 + $0x68] sm:$0xff]  ;;  %1041 = vst.msk [vmem:[#allocation3 + $0xa0] sm:$0xff] %vm1020_vm4, %v5554_v12  ;;  %3022 = vst.msk [vmem:[#allocation3 + $0x60] sm:$0xff] %vm1020_vm4, %v1781_v48  ;;  %1800 = vrot.lane.b32.xlu1 %v5577_v59, %s4253_s6  ;;  %v695_v48 = vrot.slane %v5577_v59, 1 }
 0x172   : > { %6761 = vst [vmem:[#allocation5_spill] sm:$0xff] %v5562_v0  ;;  %2947 = vst.msk [vmem:[#allocation3 + $0x68] sm:$0xff] %vm421_vm0, %v4443_v55  ;;  %v1391_v55 = vadd.f32 %v3985_v26, %v5559_v14  ;;  %v696_v0 = vrot.slane %v5589_v9, 1  ;;  %v1910_v27 = vpop.permute.xlu1 %1909 }
 0x173   : > { %2985 = vst.msk [vmem:[#allocation3 + $0x68] sm:$0xff] %vm875_vm3, %v1655_v37  ;;  %v1385_v37 = vpop.f32.mrf.mxu0 }
 0x174   : > { %1042 = vst.msk [vmem:[#allocation3 + $0xa8] sm:$0xff] %vm1020_vm4, %v5570_v51  ;;  %3023 = vst.msk [vmem:[#allocation3 + $0x68] sm:$0xff] %vm1020_vm4, %v1783_v13  ;;  %v1386_v26 = vadd.f32 %v5559_v14, %v1385_v37  ;;  %v1912_v7 = vpop.permute.xlu0 %1911  ;;  %v697_v13 = vsel %vm655_vm2, %v695_v48, %v696_v0  ;;  %v741_v45 = vsel %vm655_vm2, %v696_v0, 0.0 }
 0x175   : > { %1545 = vst.msk [vmem:[%s5575_s23 + $0x8] sm:$0xff] %vm421_vm0, %v1391_v55  ;;  %984 = vrot.lane.b32.xlu1 %v5586_v29, %s4253_s6  ;;  %v3988_v50 = vpop.f32.mrf.mxu0  ;;  %1931 = vrot.lane.b32.xlu0 %v741_v45, %s4252_s26  ;;  %v6764_v29 = vld [vmem:[#allocation10_spill] sm:$0xff] }
 0x176   : > { %1991 = vst.msk [vmem:[#allocation3 + $0x70] sm:$0xff] %vm1149_vm5, %v1910_v27  ;;  %3061 = vst.msk [vmem:[#allocation3 + $0x60] sm:$0xff] %vm1149_vm5, %v1910_v27  ;;  %v5612_v27 = vpop.permute.xlu1 %1093  ;;  %v1401_v55 = vadd.f32 %v3988_v50, %v5559_v14 }
 0x177   : > { %1544 = vst.msk [vmem:[%s5575_s23] sm:$0xff] %vm421_vm0, %v1386_v26 }
 0x178   : > { %1992 = vst.msk [vmem:[#allocation3 + $0x78] sm:$0xff] %vm1149_vm5, %v1912_v7  ;;  %3062 = vst.msk [vmem:[#allocation3 + $0x68] sm:$0xff] %vm1149_vm5, %v1912_v7  ;;  %v1657_v37 = vpop.permute.xlu0 %1656  ;;  %v1395_v7 = vpop.f32.mrf.mxu0 }
 0x179   : > { %1170 = vst.msk [vmem:[#allocation3 + $0xa0] sm:$0xff] %vm1149_vm5, %v5612_v27  ;;  %1929 = vrot.lane.b32.xlu1 %v697_v13, %s4252_s26  ;;  %v1396_v26 = vadd.f32 %v5559_v14, %v1395_v7  ;;  %1676 = vrot.lane.b32.xlu0 %v697_v13, %s4251_s25 }
 0x17a   : > { %1736 = vst.msk [vmem:[#allocation3 + $0x80] sm:$0xff] %vm875_vm3, %v1657_v37  ;;  %v5624_v35 = vpop.permute.xlu1 %1095 }
 0x17b   : > { %1547 = vst.msk [vmem:[%s5575_s23 + $0x48] sm:$0xff] %vm421_vm0, %v1401_v55  ;;  %1546 = vst.msk [vmem:[%s5575_s23 + $0x40] sm:$0xff] %vm421_vm0, %v1396_v26  ;;  %v3704_v55 = vld [vmem:[%s6690_s3 + $0x20] sm:$0xff] }
 0x17c   : > { %1171 = vst.msk [vmem:[#allocation3 + $0xa8] sm:$0xff] %vm1149_vm5, %v5624_v35  ;;  %v1659_v0 = vpop.permute.xlu0 %1658  ;;  %4085 = vmatprep.subr.mxu0 %v3704_v55 }
 0x17d   : > { %v2023_v48 = vld [vmem:[#allocation3 + $0x70] sm:$0xff]  ;;  %1113 = vrot.lane.b32.xlu1 %v5535_v5, %s4252_s26  ;;  %1737 = vst.msk [vmem:[#allocation3 + $0x88] sm:$0xff] %vm875_vm3, %v1659_v0  ;;  %4086 = vmatpush3.msra.mxu0 %v3704_v55 }
 0x17e   : > { %2412 = vst.msk [vmem:[#allocation3 + $0x70] sm:$0xff] %vm421_vm0, %v6764_v29  ;;  %4056 = vmatprep.mubr.msk.f32.mxu1 %vm1222_vm6, %v2023_v48  ;;  %v6765_v29 = vld [vmem:[#allocation11_spill] sm:$0xff] }
 0x17f   : > { %2450 = vst.msk [vmem:[#allocation3 + $0x70] sm:$0xff] %vm875_vm3, %v5310_v36  ;;  %v2024_v50 = vld [vmem:[#allocation3 + $0x78] sm:$0xff]  ;;  %v5651_v36 = vpop.permute.xlu1 %823 }
 0x180   : > { %2489 = vst.msk [vmem:[#allocation3 + $0x70] sm:$0xff] %vm1020_vm4, %v5341_v33  ;;  %4057 = vmatmul.mubr.msk.f32.gmra.mxu1 %vm1222_vm6, %v2024_v50  ;;  %v1202_v7 = vld [vmem:[#allocation3 + $0xa0] sm:$0xff]  ;;  %v3991_v50 = vpop.f32.mrf.mxu0 }
 0x181   : > { %2413 = vst.msk [vmem:[#allocation3 + $0x78] sm:$0xff] %vm421_vm0, %v6765_v29  ;;  %4013 = vmatprep.mubr.msk.f32.mxu0 %vm1222_vm6, %v1202_v7  ;;  %1596 = vst.msk [vmem:[#allocation3 + $0xa0] sm:$0xff] %vm421_vm0, %v4586_v49  ;;  %v5660_v33 = vld [vmem:[#allocation2 + $0xe0] sm:$0xff]  ;;  %1115 = vrot.lane.b32.xlu1 %v5543_v10, %s4252_s26  ;;  %v1411_v55 = vadd.f32 %v3991_v50, %v5559_v14 }
 0x182   : > { %2527 = vst.msk [vmem:[#allocation3 + $0x70] sm:$0xff] %vm1149_vm5, %v5376_v60  ;;  %v5663_v60 = vld [vmem:[#allocation2 + $0xe8] sm:$0xff]  ;;  %1804 = vrot.lane.b32.xlu0 %v5660_v33, %s4253_s6  ;;  %v1405_v22 = vpop.f32.mrf.mxu0 }
 0x183   : > { %2451 = vst.msk [vmem:[#allocation3 + $0x78] sm:$0xff] %vm875_vm3, %v5321_v42  ;;  %898 = vst.msk [vmem:[#allocation3 + $0xb0] sm:$0xff] %vm875_vm3, %v5651_v36  ;;  %v698_v42 = vrot.slane %v5660_v33, 1  ;;  %v699_v13 = vrot.slane %v5663_v60, 1  ;;  %v1785_v48 = vpop.permute.xlu1 %1784  ;;  %v1203_v26 = vld [vmem:[#allocation3 + $0xa8] sm:$0xff] }
 0x184   : > { %2490 = vst.msk [vmem:[#allocation3 + $0x78] sm:$0xff] %vm1020_vm4, %v5351_v39  ;;  %v5668_v39 = vpop.permute.xlu0 %825  ;;  %1864 = vst.msk [vmem:[#allocation3 + $0x80] sm:$0xff] %vm1020_vm4, %v1785_v48  ;;  %4014 = vmatmul.mubr.msk.f32.gmra.mxu0 %vm1222_vm6, %v1203_v26  ;;  %v1406_v26 = vadd.f32 %v5559_v14, %v1405_v22 }
 0x185   : > { %2528 = vst.msk [vmem:[#allocation3 + $0x78] sm:$0xff] %vm1149_vm5, %v5384_v8  ;;  %v700_v8 = vsel %vm655_vm2, %v698_v42, %v699_v13  ;;  %1678 = vrot.lane.b32.xlu1 %v741_v45, %s4251_s25  ;;  %v742_v22 = vsel %vm655_vm2, %v699_v13, 0.0  ;;  %v5716_v45 = vld [vmem:[#allocation2 + $0xf0] sm:$0xff] }
 0x186   : > { %899 = vst.msk [vmem:[#allocation3 + $0xb8] sm:$0xff] %vm875_vm3, %v5668_v39  ;;  %1933 = vrot.lane.b32.xlu0 %v700_v8, %s4252_s26 }
 0x187   : > { %1597 = vst.msk [vmem:[#allocation3 + $0xa8] sm:$0xff] %vm421_vm0, %v4590_v54  ;;  %1549 = vst.msk [vmem:[%s5575_s23 + $0x88] sm:$0xff] %vm421_vm0, %v1411_v55  ;;  %v5692_v42 = vpop.permute.xlu1 %968 }
 0x188   : > { %v1787_v29 = vpop.permute.xlu0 %1786  ;;  %1043 = vst.msk [vmem:[#allocation3 + $0xb0] sm:$0xff] %vm1020_vm4, %v5692_v42 }
 0x189   : > { %v5683_v7 = vld [vmem:[#allocation3 + $0x70] sm:$0xff]  ;;  %1865 = vst.msk [vmem:[#allocation3 + $0x88] sm:$0xff] %vm1020_vm4, %v1787_v29  ;;  %1806 = vrot.lane.b32.xlu1 %v5663_v60, %s4253_s6 }
 0x18a   : > { %6766 = vst [vmem:[#allocation20_spill] sm:$0xff] %v5683_v7  ;;  %2948 = vst.msk [vmem:[#allocation3 + $0x70] sm:$0xff] %vm421_vm0, %v4477_v1  ;;  %1680 = vrot.lane.b32.xlu0 %v700_v8, %s4251_s25  ;;  %v3770_v8 = vld [vmem:[%s6690_s3 + $0x30] sm:$0xff] }
 0x18b   : > { %2986 = vst.msk [vmem:[#allocation3 + $0x70] sm:$0xff] %vm875_vm3, %v1657_v37  ;;  %v701_v37 = vrot.slane %v5716_v45, 1  ;;  %4137 = vmatprep.subr.mxu1 %v3770_v8 }
 0x18c   : > { %v5695_v50 = vld [vmem:[#allocation3 + $0x78] sm:$0xff]  ;;  %3024 = vst.msk [vmem:[#allocation3 + $0x70] sm:$0xff] %vm1020_vm4, %v1785_v48  ;;  %v5704_v1 = vpop.permute.xlu0 %970  ;;  %4138 = vmatpush3.msra.mxu1 %v3770_v8  ;;  %v6768_v8 = vld [vmem:[#allocation12_spill] sm:$0xff] }
 0x18d   : > { %6767 = vst [vmem:[#allocation6_spill] sm:$0xff] %v5695_v50  ;;  %2949 = vst.msk [vmem:[#allocation3 + $0x78] sm:$0xff] %vm421_vm0, %v4499_v6  ;;  %v1914_v6 = vpop.permute.xlu1 %1913  ;;  %v5719_v48 = vld [vmem:[#allocation2 + $0xf8] sm:$0xff]  ;;  %1935 = vrot.lane.b32.xlu1 %v742_v22, %s4252_s26 }
 0x18e   : > { %1548 = vst.msk [vmem:[%s5575_s23 + $0x80] sm:$0xff] %vm421_vm0, %v1406_v26  ;;  %1808 = vrot.lane.b32.xlu0 %v5716_v45, %s4253_s6 }
 0x18f   : > { %2987 = vst.msk [vmem:[#allocation3 + $0x78] sm:$0xff] %vm875_vm3, %v1659_v0  ;;  %v702_v0 = vrot.slane %v5719_v48, 1 }
 0x190   : > { %1044 = vst.msk [vmem:[#allocation3 + $0xb8] sm:$0xff] %vm1020_vm4, %v5704_v1  ;;  %3025 = vst.msk [vmem:[#allocation3 + $0x78] sm:$0xff] %vm1020_vm4, %v1787_v29  ;;  %v1916_v55 = vpop.permute.xlu0 %1915 }
 0x191   : > { %1993 = vst.msk [vmem:[#allocation3 + $0x80] sm:$0xff] %vm1149_vm5, %v1914_v6  ;;  %3063 = vst.msk [vmem:[#allocation3 + $0x70] sm:$0xff] %vm1149_vm5, %v1914_v6  ;;  %v5727_v13 = vpop.permute.xlu1 %1097  ;;  %v703_v29 = vsel %vm655_vm2, %v701_v37, %v702_v0  ;;  %1682 = vrot.lane.b32.xlu1 %v742_v22, %s4251_s25  ;;  %v743_v50 = vsel %vm655_vm2, %v702_v0, 0.0  ;;  %v705_v0 = vrot.slane %v5543_v10, 1 }
 0x192   : > { %1994 = vst.msk [vmem:[#allocation3 + $0x88] sm:$0xff] %vm1149_vm5, %v1916_v55  ;;  %3064 = vst.msk [vmem:[#allocation3 + $0x78] sm:$0xff] %vm1149_vm5, %v1916_v55  ;;  %1937 = vrot.lane.b32.xlu0 %v703_v29, %s4252_s26 }
 0x193   : > { %1172 = vst.msk [vmem:[#allocation3 + $0xb0] sm:$0xff] %vm1149_vm5, %v5727_v13 }
 0x194   : > { %v1661_v26 = vpop.permute.xlu0 %1660 }
 0x195   : > { %1738 = vst.msk [vmem:[#allocation3 + $0x90] sm:$0xff] %vm875_vm3, %v1661_v26  ;;  %v5738_v55 = vpop.permute.xlu1 %1099  ;;  %1810 = vrot.lane.b32.xlu1 %v5719_v48, %s4253_s6 }
 0x196   : > { %1173 = vst.msk [vmem:[#allocation3 + $0xb8] sm:$0xff] %vm1149_vm5, %v5738_v55  ;;  %1684 = vrot.lane.b32.xlu0 %v703_v29, %s4251_s25 }
 0x198   : > { %v2025_v6 = vld [vmem:[#allocation3 + $0x80] sm:$0xff]  ;;  %v1663_v22 = vpop.permute.xlu0 %1662 }
 0x199   : > { %2414 = vst.msk [vmem:[#allocation3 + $0x80] sm:$0xff] %vm421_vm0, %v4543_v20  ;;  %4059 = vmatprep.mubr.msk.f32.mxu1 %vm1222_vm6, %v2025_v6  ;;  %v2026_v37 = vld [vmem:[#allocation3 + $0x88] sm:$0xff]  ;;  %v4037_v20 = vpop.f32.mrf.mxu1  ;;  %1939 = vrot.lane.b32.xlu1 %v743_v50, %s4252_s26 }
 0x19a   : > { %2452 = vst.msk [vmem:[#allocation3 + $0x80] sm:$0xff] %vm875_vm3, %v5406_v43  ;;  %1739 = vst.msk [vmem:[#allocation3 + $0x98] sm:$0xff] %vm875_vm3, %v1663_v22  ;;  %4060 = vmatmul.mubr.msk.f32.gmra.mxu1 %vm1222_vm6, %v2026_v37  ;;  %v5760_v43 = vpop.permute.xlu1 %827  ;;  %v2212_v6 = vadd.f32 %v4037_v20, %v5559_v14  ;;  %1812 = vrot.lane.b32.xlu0 %v5535_v5, %s4253_s6 }
 0x19b   : > { %2491 = vst.msk [vmem:[#allocation3 + $0x80] sm:$0xff] %vm1020_vm4, %v5437_v2  ;;  %v1204_v2 = vld [vmem:[#allocation3 + $0xb0] sm:$0xff] }
 0x19c   : > { %2415 = vst.msk [vmem:[#allocation3 + $0x88] sm:$0xff] %vm421_vm0, %v6768_v8  ;;  %4016 = vmatprep.mubr.msk.f32.mxu0 %vm1222_vm6, %v1204_v2  ;;  %1598 = vst.msk [vmem:[#allocation3 + $0xb0] sm:$0xff] %vm421_vm0, %v5353_v40  ;;  %v5775_v29 = vpop.permute.xlu0 %829 }
 0x19d   : > { %2529 = vst.msk [vmem:[#allocation3 + $0x80] sm:$0xff] %vm1149_vm5, %v5472_v41  ;;  %v704_v41 = vrot.slane %v5535_v5, 1  ;;  %v1205_v8 = vld [vmem:[#allocation3 + $0xb8] sm:$0xff]  ;;  %1686 = vrot.lane.b32.xlu1 %v743_v50, %s4251_s25 }
 0x19e   : > { %2453 = vst.msk [vmem:[#allocation3 + $0x88] sm:$0xff] %vm875_vm3, %v5417_v44  ;;  %900 = vst.msk [vmem:[#allocation3 + $0xc0] sm:$0xff] %vm875_vm3, %v5760_v43  ;;  %v2206_v44 = vpop.f32.mrf.mxu1  ;;  %v1789_v37 = vpop.permute.xlu1 %1788  ;;  %4017 = vmatmul.mubr.msk.f32.gmra.mxu0 %vm1222_vm6, %v1205_v8 }
 0x19f   : > { %2492 = vst.msk [vmem:[#allocation3 + $0x88] sm:$0xff] %vm1020_vm4, %v5447_v25  ;;  %v2207_v25 = vadd.f32 %v5559_v14, %v2206_v44  ;;  %1866 = vst.msk [vmem:[#allocation3 + $0x90] sm:$0xff] %vm1020_vm4, %v1789_v37  ;;  %v5792_v20 = vsel %vm655_vm2, %v704_v41, %v705_v0  ;;  %v5796_v44 = vld [vmem:[#allocation2 + $0x110] sm:$0xff] }
 0x1a0   : > { %2530 = vst.msk [vmem:[#allocation3 + $0x88] sm:$0xff] %vm1149_vm5, %v5480_v62  ;;  %v3994_v62 = vpop.f32.mrf.mxu0  ;;  %1941 = vrot.lane.b32.xlu0 %v5792_v20, %s4252_s26 }
 0x1a1   : > { %3673 = vst.msk [vmem:[%s5575_s23 + $0x18] sm:$0xff] %vm421_vm0, %v2212_v6  ;;  %3672 = vst.msk [vmem:[%s5575_s23 + $0x10] sm:$0xff] %vm421_vm0, %v2207_v25  ;;  %v1421_v2 = vadd.f32 %v3994_v62, %v5559_v14  ;;  %v1791_v6 = vpop.permute.xlu0 %1790  ;;  %v599_v62 = vrot.slane %v5796_v44, 7  ;;  %1814 = vrot.lane.b32.xlu1 %v5543_v10, %s4253_s6 }
 0x1a2   : > { %901 = vst.msk [vmem:[#allocation3 + $0xc8] sm:$0xff] %vm875_vm3, %v5775_v29  ;;  %v1415_v7 = vpop.f32.mrf.mxu0  ;;  %v5806_v8 = vpop.permute.xlu1 %972 }
 0x1a3   : > { %1599 = vst.msk [vmem:[#allocation3 + $0xb8] sm:$0xff] %vm421_vm0, %v5361_v28  ;;  %1551 = vst.msk [vmem:[%s5575_s23 + $0xc8] sm:$0xff] %vm421_vm0, %v1421_v2  ;;  %v1416_v41 = vadd.f32 %v5559_v14, %v1415_v7  ;;  %v5829_v7 = vsel %vm655_vm2, %v705_v0, 0.0 }
 0x1a4   : > { %v5798_v25 = vld [vmem:[#allocation3 + $0x80] sm:$0xff]  ;;  %1867 = vst.msk [vmem:[#allocation3 + $0x98] sm:$0xff] %vm1020_vm4, %v1791_v6  ;;  %1045 = vst.msk [vmem:[#allocation3 + $0xc0] sm:$0xff] %vm1020_vm4, %v5806_v8  ;;  %2430 = vrot.lane.b32.xlu0 %v5535_v5, %s4251_s25 }
 0x1a5   : > { %2950 = vst.msk [vmem:[#allocation3 + $0x80] sm:$0xff] %vm421_vm0, %v4536_v17  ;;  %1550 = vst.msk [vmem:[%s5575_s23 + $0xc0] sm:$0xff] %vm421_vm0, %v1416_v41  ;;  %v5821_v17 = vpop.permute.xlu0 %974  ;;  %1943 = vrot.lane.b32.xlu1 %v5829_v7, %s4252_s26 }
 0x1a6   : > { %2988 = vst.msk [vmem:[#allocation3 + $0x80] sm:$0xff] %vm875_vm3, %v1661_v26  ;;  %v5834_v26 = vld [vmem:[#allocation2 + $0x118] sm:$0xff] }
 0x1a7   : > { %v5811_v50 = vld [vmem:[#allocation3 + $0x88] sm:$0xff]  ;;  %3026 = vst.msk [vmem:[#allocation3 + $0x80] sm:$0xff] %vm1020_vm4, %v1789_v37  ;;  %1046 = vst.msk [vmem:[#allocation3 + $0xc8] sm:$0xff] %vm1020_vm4, %v5821_v17  ;;  %v600_v0 = vrot.slane %v5834_v26, 7 }
 0x1a8   : > { %2951 = vst.msk [vmem:[#allocation3 + $0x88] sm:$0xff] %vm421_vm0, %v4540_v19  ;;  %v1918_v19 = vpop.permute.xlu1 %1917 }
 0x1a9   : > { %2989 = vst.msk [vmem:[#allocation3 + $0x88] sm:$0xff] %vm875_vm3, %v1663_v22  ;;  %v654_v22 = vsel %vm547_vm1, 0.0, %v599_v62  ;;  %v1920_v37 = vpop.permute.xlu0 %1919  ;;  %2432 = vrot.lane.b32.xlu1 %v5543_v10, %s4251_s25  ;;  %v601_v41 = vsel %vm547_vm1, %v599_v62, %v600_v0 }
 0x1aa   : > { %3027 = vst.msk [vmem:[#allocation3 + $0x88] sm:$0xff] %vm1020_vm4, %v1791_v6  ;;  %2469 = vrot.lane.b32.xlu0 %v654_v22, %s4253_s6 }
 0x1ab   : > { %1995 = vst.msk [vmem:[#allocation3 + $0x90] sm:$0xff] %vm1149_vm5, %v1918_v19  ;;  %3065 = vst.msk [vmem:[#allocation3 + $0x80] sm:$0xff] %vm1149_vm5, %v1918_v19 }
 0x1ac   : > { %1996 = vst.msk [vmem:[#allocation3 + $0x98] sm:$0xff] %vm1149_vm5, %v1920_v37  ;;  %3066 = vst.msk [vmem:[#allocation3 + $0x88] sm:$0xff] %vm1149_vm5, %v1920_v37  ;;  %v5844_v2 = vpop.permute.xlu1 %1101 }
 0x1ad   : > { %1174 = vst.msk [vmem:[#allocation3 + $0xc0] sm:$0xff] %vm1149_vm5, %v5844_v2  ;;  %v1665_v6 = vpop.permute.xlu0 %1664  ;;  %2471 = vrot.lane.b32.xlu1 %v601_v41, %s4253_s6 }
 0x1ae   : > { %1740 = vst.msk [vmem:[#allocation3 + $0xa0] sm:$0xff] %vm875_vm3, %v1665_v6  ;;  %2507 = vrot.lane.b32.xlu0 %v5796_v44, %s4252_s26 }
 0x1b0   : > { %v5853_v5 = vpop.permute.xlu1 %1103 }
 0x1b1   : > { %1175 = vst.msk [vmem:[#allocation3 + $0xc8] sm:$0xff] %vm1149_vm5, %v5853_v5  ;;  %v1667_v22 = vpop.permute.xlu0 %1666  ;;  %2509 = vrot.lane.b32.xlu1 %v5834_v26, %s4252_s26 }
 0x1b2   : > { %v2027_v19 = vld [vmem:[#allocation3 + $0x90] sm:$0xff]  ;;  %1741 = vst.msk [vmem:[#allocation3 + $0xa8] sm:$0xff] %vm875_vm3, %v1667_v22  ;;  %2966 = vrot.lane.b32.xlu0 %v5792_v20, %s4251_s25 }
 0x1b3   : > { %2416 = vst.msk [vmem:[#allocation3 + $0x90] sm:$0xff] %vm421_vm0, %v4593_v56  ;;  %4062 = vmatprep.mubr.msk.f32.mxu1 %vm1222_vm6, %v2027_v19  ;;  %v2028_v37 = vld [vmem:[#allocation3 + $0x98] sm:$0xff]  ;;  %v4040_v56 = vpop.f32.mrf.mxu1 }
 0x1b4   : > { %2454 = vst.msk [vmem:[#allocation3 + $0x90] sm:$0xff] %vm875_vm3, %v5507_v47  ;;  %4063 = vmatmul.mubr.msk.f32.gmra.mxu1 %vm1222_vm6, %v2028_v37  ;;  %v5875_v47 = vpop.permute.xlu1 %831  ;;  %v1206_v62 = vld [vmem:[#allocation3 + $0xc0] sm:$0xff] }
 0x1b5   : > { %2493 = vst.msk [vmem:[#allocation3 + $0x90] sm:$0xff] %vm1020_vm4, %v5554_v12  ;;  %v2222_v12 = vadd.f32 %v4040_v56, %v5559_v14  ;;  %4019 = vmatprep.mubr.msk.f32.mxu0 %vm1222_vm6, %v1206_v62  ;;  %v5891_v20 = vpop.permute.xlu0 %833  ;;  %2968 = vrot.lane.b32.xlu1 %v5829_v7, %s4251_s25 }
 0x1b6   : > { %2417 = vst.msk [vmem:[#allocation3 + $0x98] sm:$0xff] %vm421_vm0, %v4601_v61  ;;  %1600 = vst.msk [vmem:[#allocation3 + $0xc0] sm:$0xff] %vm421_vm0, %v5449_v46  ;;  %v2216_v61 = vpop.f32.mrf.mxu1  ;;  %3004 = vrot.lane.b32.xlu0 %v5796_v44, %s4253_s6 }
 0x1b7   : > { %2531 = vst.msk [vmem:[#allocation3 + $0x90] sm:$0xff] %vm1149_vm5, %v5612_v27  ;;  %v708_v27 = vrot.slane %v5834_v26, 1 }
 0x1b8   : > { %2455 = vst.msk [vmem:[#allocation3 + $0x98] sm:$0xff] %vm875_vm3, %v5518_v53  ;;  %902 = vst.msk [vmem:[#allocation3 + $0xd0] sm:$0xff] %vm875_vm3, %v5875_v47  ;;  %v707_v53 = vrot.slane %v5796_v44, 1  ;;  %v1793_v0 = vpop.permute.xlu1 %1792  ;;  %v1207_v41 = vld [vmem:[#allocation3 + $0xc8] sm:$0xff] }
 0x1b9   : > { %2494 = vst.msk [vmem:[#allocation3 + $0x98] sm:$0xff] %vm1020_vm4, %v5570_v51  ;;  %v2217_v51 = vadd.f32 %v5559_v14, %v2216_v61  ;;  %1868 = vst.msk [vmem:[#allocation3 + $0xa0] sm:$0xff] %vm1020_vm4, %v1793_v0  ;;  %4020 = vmatmul.mubr.msk.f32.gmra.mxu0 %vm1222_vm6, %v1207_v41  ;;  %v1795_v56 = vpop.permute.xlu0 %1794  ;;  %3006 = vrot.lane.b32.xlu1 %v5834_v26, %s4253_s6  ;;  %v745_v7 = vsel %vm655_vm2, %v708_v27, 0.0 }
 0x1ba   : > { %2532 = vst.msk [vmem:[#allocation3 + $0x98] sm:$0xff] %vm1149_vm5, %v5624_v35  ;;  %v3997_v35 = vpop.f32.mrf.mxu0  ;;  %v709_v19 = vsel %vm655_vm2, %v707_v53, %v708_v27 }
 0x1bb   : > { %3675 = vst.msk [vmem:[%s5575_s23 + $0x58] sm:$0xff] %vm421_vm0, %v2222_v12  ;;  %3674 = vst.msk [vmem:[%s5575_s23 + $0x50] sm:$0xff] %vm421_vm0, %v2217_v51  ;;  %v1431_v37 = vadd.f32 %v3997_v35, %v5559_v14  ;;  %3043 = vrot.lane.b32.xlu0 %v709_v19, %s4252_s26 }
 0x1bc   : > { %903 = vst.msk [vmem:[#allocation3 + $0xd8] sm:$0xff] %vm875_vm3, %v5891_v20  ;;  %v1425_v44 = vpop.f32.mrf.mxu0  ;;  %v5920_v61 = vpop.permute.xlu1 %976 }
 0x1bd   : > { %1601 = vst.msk [vmem:[#allocation3 + $0xc8] sm:$0xff] %vm421_vm0, %v5457_v34  ;;  %1553 = vst.msk [vmem:[%s5575_s23 + $0x108] sm:$0xff] %vm421_vm0, %v1431_v37  ;;  %v1426_v12 = vadd.f32 %v5559_v14, %v1425_v44  ;;  %3045 = vrot.lane.b32.xlu1 %v745_v7, %s4252_s26 }
 0x1be   : > { %v5912_v62 = vld [vmem:[#allocation3 + $0x90] sm:$0xff]  ;;  %1869 = vst.msk [vmem:[#allocation3 + $0xa8] sm:$0xff] %vm1020_vm4, %v1795_v56  ;;  %1047 = vst.msk [vmem:[#allocation3 + $0xd0] sm:$0xff] %vm1020_vm4, %v5920_v61 }
 0x1bf   : > { %2952 = vst.msk [vmem:[#allocation3 + $0x90] sm:$0xff] %vm421_vm0, %v4586_v49  ;;  %1552 = vst.msk [vmem:[%s5575_s23 + $0x100] sm:$0xff] %vm421_vm0, %v1426_v12  ;;  %v5933_v49 = vpop.permute.xlu0 %978 }
 0x1c0   : > { %2990 = vst.msk [vmem:[#allocation3 + $0x90] sm:$0xff] %vm875_vm3, %v1665_v6  ;;  %v1922_v6 = vpop.permute.xlu1 %1921 }
 0x1c1   : > { %v5924_v53 = vld [vmem:[#allocation3 + $0x98] sm:$0xff]  ;;  %3028 = vst.msk [vmem:[#allocation3 + $0x90] sm:$0xff] %vm1020_vm4, %v1793_v0  ;;  %1048 = vst.msk [vmem:[#allocation3 + $0xd8] sm:$0xff] %vm1020_vm4, %v5933_v49  ;;  %v4000_v37 = vpop.f32.mrf.mxu0 }
 0x1c2   : > { %2953 = vst.msk [vmem:[#allocation3 + $0x98] sm:$0xff] %vm421_vm0, %v4590_v54 }
 0x1c3   : > { %2991 = vst.msk [vmem:[#allocation3 + $0x98] sm:$0xff] %vm875_vm3, %v1667_v22  ;;  %v1924_v54 = vpop.permute.xlu0 %1923  ;;  %v1435_v12 = vpop.f32.mrf.mxu0 }
 0x1c4   : > { %3029 = vst.msk [vmem:[#allocation3 + $0x98] sm:$0xff] %vm1020_vm4, %v1795_v56  ;;  %v5947_v26 = vpop.permute.xlu1 %1105  ;;  %v1436_v7 = vadd.f32 %v5559_v14, %v1435_v12 }
 0x1c5   : > { %1997 = vst.msk [vmem:[#allocation3 + $0xa0] sm:$0xff] %vm1149_vm5, %v1922_v6  ;;  %3067 = vst.msk [vmem:[#allocation3 + $0x90] sm:$0xff] %vm1149_vm5, %v1922_v6 }
 0x1c6   : > { %1998 = vst.msk [vmem:[#allocation3 + $0xa8] sm:$0xff] %vm1149_vm5, %v1924_v54  ;;  %3068 = vst.msk [vmem:[#allocation3 + $0x98] sm:$0xff] %vm1149_vm5, %v1924_v54 }
 0x1c7   : > { %1176 = vst.msk [vmem:[#allocation3 + $0xd0] sm:$0xff] %vm1149_vm5, %v5947_v26  ;;  %v1669_v22 = vpop.permute.xlu0 %1668 }
 0x1c8   : > { %1742 = vst.msk [vmem:[#allocation3 + $0xb0] sm:$0xff] %vm875_vm3, %v1669_v22  ;;  %v5952_v51 = vpop.permute.xlu1 %1107 }
 0x1c9   : > { %1177 = vst.msk [vmem:[#allocation3 + $0xd8] sm:$0xff] %vm1149_vm5, %v5952_v51 }
 0x1ca   : > { %1554 = vst.msk [vmem:[%s5575_s23 + $0x140] sm:$0xff] %vm421_vm0, %v1436_v7 }
 0x1cb   : > { %v1671_v0 = vpop.permute.xlu0 %1670 }
 0x1cc   : > { %v2029_v27 = vld [vmem:[#allocation3 + $0xa0] sm:$0xff]  ;;  %1743 = vst.msk [vmem:[#allocation3 + $0xb8] sm:$0xff] %vm875_vm3, %v1671_v0 }
 0x1cd   : > { %2418 = vst.msk [vmem:[#allocation3 + $0xa0] sm:$0xff] %vm421_vm0, %v4637_v16  ;;  %4065 = vmatprep.mubr.msk.f32.mxu1 %vm1222_vm6, %v2029_v27  ;;  %v2030_v41 = vld [vmem:[#allocation3 + $0xa8] sm:$0xff]  ;;  %v4043_v16 = vpop.f32.mrf.mxu1 }
 0x1ce   : > { %2456 = vst.msk [vmem:[#allocation3 + $0xa0] sm:$0xff] %vm875_vm3, %v5651_v36  ;;  %4066 = vmatmul.mubr.msk.f32.gmra.mxu1 %vm1222_vm6, %v2030_v41  ;;  %v5971_v36 = vpop.permute.xlu1 %835  ;;  %v1208_v35 = vld [vmem:[#allocation3 + $0xd0] sm:$0xff] }
 0x1cf   : > { %2495 = vst.msk [vmem:[#allocation3 + $0xa0] sm:$0xff] %vm1020_vm4, %v5692_v42  ;;  %v2232_v42 = vadd.f32 %v4043_v16, %v5559_v14  ;;  %4022 = vmatprep.mubr.msk.f32.mxu0 %vm1222_vm6, %v1208_v35 }
 0x1d0   : > { %2419 = vst.msk [vmem:[#allocation3 + $0xa8] sm:$0xff] %vm421_vm0, %v4645_v24  ;;  %1602 = vst.msk [vmem:[#allocation3 + $0xd0] sm:$0xff] %vm421_vm0, %v5577_v59  ;;  %v2226_v24 = vpop.f32.mrf.mxu1  ;;  %v1209_v19 = vld [vmem:[#allocation3 + $0xd8] sm:$0xff] }
 0x1d1   : > { %2533 = vst.msk [vmem:[#allocation3 + $0xa0] sm:$0xff] %vm1149_vm5, %v5727_v13  ;;  %v2227_v13 = vadd.f32 %v5559_v14, %v2226_v24  ;;  %4023 = vmatmul.mubr.msk.f32.gmra.mxu0 %vm1222_vm6, %v1209_v19 }
 0x1d2   : > { %2457 = vst.msk [vmem:[#allocation3 + $0xa8] sm:$0xff] %vm875_vm3, %v5668_v39  ;;  %904 = vst.msk [vmem:[#allocation3 + $0xe0] sm:$0xff] %vm875_vm3, %v5971_v36  ;;  %v5983_v39 = vpop.permute.xlu0 %837 }
 0x1d3   : > { %2496 = vst.msk [vmem:[#allocation3 + $0xa8] sm:$0xff] %vm1020_vm4, %v5704_v1  ;;  %v1797_v1 = vpop.permute.xlu1 %1796 }
 0x1d4   : > { %2534 = vst.msk [vmem:[#allocation3 + $0xa8] sm:$0xff] %vm1149_vm5, %v5738_v55  ;;  %v1441_v55 = vadd.f32 %v4000_v37, %v5559_v14 }
 0x1d5   : > { %3677 = vst.msk [vmem:[%s5575_s23 + $0x98] sm:$0xff] %vm421_vm0, %v2232_v42  ;;  %3676 = vst.msk [vmem:[%s5575_s23 + $0x90] sm:$0xff] %vm421_vm0, %v2227_v13 }
 0x1d6   : > { %905 = vst.msk [vmem:[#allocation3 + $0xe8] sm:$0xff] %vm875_vm3, %v5983_v39  ;;  %v1799_v56 = vpop.permute.xlu0 %1798 }
 0x1d7   : > { %1870 = vst.msk [vmem:[#allocation3 + $0xb0] sm:$0xff] %vm1020_vm4, %v1797_v1  ;;  %1871 = vst.msk [vmem:[#allocation3 + $0xb8] sm:$0xff] %vm1020_vm4, %v1799_v56  ;;  %v6005_v6 = vpop.permute.xlu1 %980 }
 0x1d8   : > { %1603 = vst.msk [vmem:[#allocation3 + $0xd8] sm:$0xff] %vm421_vm0, %v5589_v9  ;;  %v5997_v44 = vld [vmem:[#allocation3 + $0xa0] sm:$0xff]  ;;  %1555 = vst.msk [vmem:[%s5575_s23 + $0x148] sm:$0xff] %vm421_vm0, %v1441_v55 }
 0x1d9   : > { %2954 = vst.msk [vmem:[#allocation3 + $0xa0] sm:$0xff] %vm421_vm0, %v5353_v40 }
 0x1da   : > { %2992 = vst.msk [vmem:[#allocation3 + $0xa0] sm:$0xff] %vm875_vm3, %v1669_v22  ;;  %v6017_v40 = vpop.permute.xlu0 %982 }
 0x1db   : > { %v6008_v54 = vld [vmem:[#allocation3 + $0xa8] sm:$0xff]  ;;  %1049 = vst.msk [vmem:[#allocation3 + $0xe0] sm:$0xff] %vm1020_vm4, %v6005_v6  ;;  %3030 = vst.msk [vmem:[#allocation3 + $0xa0] sm:$0xff] %vm1020_vm4, %v1797_v1  ;;  %v1926_v22 = vpop.permute.xlu1 %1925  ;;  %v4003_v1 = vpop.f32.mrf.mxu0 }
 0x1dc   : > { %2955 = vst.msk [vmem:[#allocation3 + $0xa8] sm:$0xff] %vm421_vm0, %v5361_v28 }
 0x1dd   : > { %2993 = vst.msk [vmem:[#allocation3 + $0xa8] sm:$0xff] %vm875_vm3, %v1671_v0  ;;  %v1445_v55 = vpop.f32.mrf.mxu0 }
 0x1de   : > { %1050 = vst.msk [vmem:[#allocation3 + $0xe8] sm:$0xff] %vm1020_vm4, %v6017_v40  ;;  %3031 = vst.msk [vmem:[#allocation3 + $0xa8] sm:$0xff] %vm1020_vm4, %v1799_v56  ;;  %v1928_v27 = vpop.permute.xlu0 %1927  ;;  %v1446_v56 = vadd.f32 %v5559_v14, %v1445_v55 }
 0x1df   : > { %1999 = vst.msk [vmem:[#allocation3 + $0xb0] sm:$0xff] %vm1149_vm5, %v1926_v22  ;;  %3069 = vst.msk [vmem:[#allocation3 + $0xa0] sm:$0xff] %vm1149_vm5, %v1926_v22  ;;  %v6027_v28 = vpop.permute.xlu1 %1109 }
 0x1e0   : > { %2000 = vst.msk [vmem:[#allocation3 + $0xb8] sm:$0xff] %vm1149_vm5, %v1928_v27  ;;  %3070 = vst.msk [vmem:[#allocation3 + $0xa8] sm:$0xff] %vm1149_vm5, %v1928_v27 }
 0x1e1   : > { %1178 = vst.msk [vmem:[#allocation3 + $0xe0] sm:$0xff] %vm1149_vm5, %v6027_v28 }
 0x1e2   : > { %v1673_v0 = vpop.permute.xlu0 %1672  ;;  %1556 = vst.msk [vmem:[%s5575_s23 + $0x180] sm:$0xff] %vm421_vm0, %v1446_v56  ;;  %v6770_v56 = vld [vmem:[#allocation23_spill] sm:$0xff] }
 0x1e3   : > { %1744 = vst.msk [vmem:[#allocation3 + $0xc0] sm:$0xff] %vm875_vm3, %v1673_v0  ;;  %v6032_v16 = vpop.permute.xlu1 %1111 }
 0x1e4   : > { %1179 = vst.msk [vmem:[#allocation3 + $0xe8] sm:$0xff] %vm1149_vm5, %v6032_v16 }
 0x1e6   : > { %v2031_v41 = vld [vmem:[#allocation3 + $0xb0] sm:$0xff]  ;;  %v1675_v35 = vpop.permute.xlu0 %1674 }
 0x1e7   : > { %2420 = vst.msk [vmem:[#allocation3 + $0xb0] sm:$0xff] %vm421_vm0, %v4681_v57  ;;  %4068 = vmatprep.mubr.msk.f32.mxu1 %vm1222_vm6, %v2031_v41  ;;  %v2032_v42 = vld [vmem:[#allocation3 + $0xb8] sm:$0xff]  ;;  %v4046_v57 = vpop.f32.mrf.mxu1 }
 0x1e8   : > { %2458 = vst.msk [vmem:[#allocation3 + $0xb0] sm:$0xff] %vm875_vm3, %v5760_v43  ;;  %1745 = vst.msk [vmem:[#allocation3 + $0xc8] sm:$0xff] %vm875_vm3, %v1675_v35  ;;  %4069 = vmatmul.mubr.msk.f32.gmra.mxu1 %vm1222_vm6, %v2032_v42  ;;  %v6051_v43 = vpop.permute.xlu1 %839  ;;  %v1210_v24 = vld [vmem:[#allocation3 + $0xe0] sm:$0xff] }
 0x1e9   : > { %2497 = vst.msk [vmem:[#allocation3 + $0xb0] sm:$0xff] %vm1020_vm4, %v5806_v8  ;;  %v2242_v8 = vadd.f32 %v4046_v57, %v5559_v14  ;;  %4025 = vmatprep.mubr.msk.f32.mxu0 %vm1222_vm6, %v1210_v24 }
 0x1ea   : > { %2421 = vst.msk [vmem:[#allocation3 + $0xb8] sm:$0xff] %vm421_vm0, %v4690_v4  ;;  %1604 = vst.msk [vmem:[#allocation3 + $0xe0] sm:$0xff] %vm421_vm0, %v5660_v33  ;;  %v2236_v4 = vpop.f32.mrf.mxu1 }
 0x1eb   : > { %2535 = vst.msk [vmem:[#allocation3 + $0xb0] sm:$0xff] %vm1149_vm5, %v5844_v2  ;;  %v2237_v2 = vadd.f32 %v5559_v14, %v2236_v4  ;;  %v1211_v13 = vld [vmem:[#allocation3 + $0xe8] sm:$0xff] }
 0x1ec   : > { %2459 = vst.msk [vmem:[#allocation3 + $0xb8] sm:$0xff] %vm875_vm3, %v5775_v29  ;;  %906 = vst.msk [vmem:[#allocation3 + $0xf0] sm:$0xff] %vm875_vm3, %v6051_v43  ;;  %v6063_v29 = vpop.permute.xlu0 %841  ;;  %4026 = vmatmul.mubr.msk.f32.gmra.mxu0 %vm1222_vm6, %v1211_v13 }
 0x1ed   : > { %2498 = vst.msk [vmem:[#allocation3 + $0xb8] sm:$0xff] %vm1020_vm4, %v5821_v17  ;;  %v1801_v17 = vpop.permute.xlu1 %1800 }
 0x1ee   : > { %2536 = vst.msk [vmem:[#allocation3 + $0xb8] sm:$0xff] %vm1149_vm5, %v5853_v5  ;;  %v1451_v5 = vadd.f32 %v4003_v1, %v5559_v14 }
 0x1ef   : > { %3679 = vst.msk [vmem:[%s5575_s23 + $0xd8] sm:$0xff] %vm421_vm0, %v2242_v8  ;;  %3678 = vst.msk [vmem:[%s5575_s23 + $0xd0] sm:$0xff] %vm421_vm0, %v2237_v2 }
 0x1f0   : > { %907 = vst.msk [vmem:[#allocation3 + $0xf8] sm:$0xff] %vm875_vm3, %v6063_v29  ;;  %v1803_v19 = vpop.permute.xlu0 %1802 }
 0x1f1   : > { %1872 = vst.msk [vmem:[#allocation3 + $0xc0] sm:$0xff] %vm1020_vm4, %v1801_v17  ;;  %1873 = vst.msk [vmem:[#allocation3 + $0xc8] sm:$0xff] %vm1020_vm4, %v1803_v19  ;;  %v6085_v12 = vpop.permute.xlu1 %984 }
 0x1f2   : > { %1605 = vst.msk [vmem:[#allocation3 + $0xe8] sm:$0xff] %vm421_vm0, %v5663_v60  ;;  %v6077_v37 = vld [vmem:[#allocation3 + $0xb0] sm:$0xff]  ;;  %1557 = vst.msk [vmem:[%s5575_s23 + $0x188] sm:$0xff] %vm421_vm0, %v1451_v5 }
 0x1f3   : > { %2956 = vst.msk [vmem:[#allocation3 + $0xb0] sm:$0xff] %vm421_vm0, %v5449_v46 }
 0x1f4   : > { %2994 = vst.msk [vmem:[#allocation3 + $0xb0] sm:$0xff] %vm875_vm3, %v1673_v0  ;;  %v6097_v46 = vpop.permute.xlu0 %986 }
 0x1f5   : > { %v6088_v7 = vld [vmem:[#allocation3 + $0xb8] sm:$0xff]  ;;  %1051 = vst.msk [vmem:[#allocation3 + $0xf0] sm:$0xff] %vm1020_vm4, %v6085_v12  ;;  %3032 = vst.msk [vmem:[#allocation3 + $0xb0] sm:$0xff] %vm1020_vm4, %v1801_v17  ;;  %v1930_v22 = vpop.permute.xlu1 %1929  ;;  %v4006_v4 = vpop.f32.mrf.mxu0  ;;  %v6769_v17 = vld [vmem:[#allocation21_spill] sm:$0xff] }
 0x1f6   : > { %2957 = vst.msk [vmem:[#allocation3 + $0xb8] sm:$0xff] %vm421_vm0, %v5457_v34 }
 0x1f7   : > { %2995 = vst.msk [vmem:[#allocation3 + $0xb8] sm:$0xff] %vm875_vm3, %v1675_v35  ;;  %v1455_v1 = vpop.f32.mrf.mxu0 }
 0x1f8   : > { %1052 = vst.msk [vmem:[#allocation3 + $0xf8] sm:$0xff] %vm1020_vm4, %v6097_v46  ;;  %3033 = vst.msk [vmem:[#allocation3 + $0xb8] sm:$0xff] %vm1020_vm4, %v1803_v19  ;;  %v1932_v27 = vpop.permute.xlu0 %1931  ;;  %v1456_v5 = vadd.f32 %v5559_v14, %v1455_v1  ;;  %v6780_v1 = vld [vmem:[#allocation4_spill] sm:$0xff] }
 0x1f9   : > { %2001 = vst.msk [vmem:[#allocation3 + $0xc0] sm:$0xff] %vm1149_vm5, %v1930_v22  ;;  %3071 = vst.msk [vmem:[#allocation3 + $0xb0] sm:$0xff] %vm1149_vm5, %v1930_v22  ;;  %v6107_v34 = vpop.permute.xlu1 %1113 }
 0x1fa   : > { %2002 = vst.msk [vmem:[#allocation3 + $0xc8] sm:$0xff] %vm1149_vm5, %v1932_v27  ;;  %3072 = vst.msk [vmem:[#allocation3 + $0xb8] sm:$0xff] %vm1149_vm5, %v1932_v27  ;;  %v6773_v27 = vld [vmem:[#allocation16_spill] sm:$0xff] }
 0x1fb   : > { %1180 = vst.msk [vmem:[#allocation3 + $0xf0] sm:$0xff] %vm1149_vm5, %v6107_v34 }
 0x1fc   : > { %v1677_v0 = vpop.permute.xlu0 %1676  ;;  %1558 = vst.msk [vmem:[%s5575_s23 + $0x1c0] sm:$0xff] %vm421_vm0, %v1456_v5  ;;  %v3084_v5 = vld [vmem:[#allocation3 + $0x18] sm:$0xff] }
 0x1fd   : > { %1746 = vst.msk [vmem:[#allocation3 + $0xd0] sm:$0xff] %vm875_vm3, %v1677_v0  ;;  %v6112_v35 = vpop.permute.xlu1 %1115 }
 0x1fe   : > { %1181 = vst.msk [vmem:[#allocation3 + $0xf8] sm:$0xff] %vm1149_vm5, %v6112_v35 }
 0x200   : > { %v2033_v41 = vld [vmem:[#allocation3 + $0xc0] sm:$0xff]  ;;  %v1805_v42 = vpop.permute.xlu0 %1804 }
 0x201   : > { %2422 = vst.msk [vmem:[#allocation3 + $0xc0] sm:$0xff] %vm421_vm0, %v6742_v18  ;;  %4071 = vmatprep.mubr.msk.f32.mxu1 %vm1222_vm6, %v2033_v41  ;;  %v2034_v57 = vld [vmem:[#allocation3 + $0xc8] sm:$0xff]  ;;  %v4049_v18 = vpop.f32.mrf.mxu1 }
 0x202   : > { %2460 = vst.msk [vmem:[#allocation3 + $0xc0] sm:$0xff] %vm875_vm3, %v5875_v47  ;;  %4072 = vmatmul.mubr.msk.f32.gmra.mxu1 %vm1222_vm6, %v2034_v57  ;;  %v1679_v47 = vpop.permute.xlu1 %1678  ;;  %v1212_v24 = vld [vmem:[#allocation3 + $0xf0] sm:$0xff] }
 0x203   : > { %2499 = vst.msk [vmem:[#allocation3 + $0xc0] sm:$0xff] %vm1020_vm4, %v5920_v61  ;;  %1874 = vst.msk [vmem:[#allocation3 + $0xd0] sm:$0xff] %vm1020_vm4, %v1805_v42  ;;  %v2252_v61 = vadd.f32 %v4049_v18, %v5559_v14  ;;  %4028 = vmatprep.mubr.msk.f32.mxu0 %vm1222_vm6, %v1212_v24  ;;  %v6775_v18 = vld [vmem:[#allocation5_spill] sm:$0xff]  ;;  %v6777_v24 = vld [vmem:[#allocation14_spill] sm:$0xff] }
 0x204   : > { %2423 = vst.msk [vmem:[#allocation3 + $0xc8] sm:$0xff] %vm421_vm0, %v6743_v15  ;;  %1606 = vst.msk [vmem:[#allocation3 + $0xf0] sm:$0xff] %vm421_vm0, %v5716_v45  ;;  %v2246_v15 = vpop.f32.mrf.mxu1 }
 0x205   : > { %2537 = vst.msk [vmem:[#allocation3 + $0xc0] sm:$0xff] %vm1149_vm5, %v5947_v26  ;;  %v1934_v26 = vpop.permute.xlu0 %1933  ;;  %v1213_v8 = vld [vmem:[#allocation3 + $0xf8] sm:$0xff] }
 0x206   : > { %2461 = vst.msk [vmem:[#allocation3 + $0xc8] sm:$0xff] %vm875_vm3, %v5891_v20  ;;  %1747 = vst.msk [vmem:[#allocation3 + $0xd8] sm:$0xff] %vm875_vm3, %v1679_v47  ;;  %v2247_v20 = vadd.f32 %v5559_v14, %v2246_v15  ;;  %4029 = vmatmul.mubr.msk.f32.gmra.mxu0 %vm1222_vm6, %v1213_v8  ;;  %v6779_v8 = vld [vmem:[#allocation19_spill] sm:$0xff] }
 0x207   : > { %2500 = vst.msk [vmem:[#allocation3 + $0xc8] sm:$0xff] %vm1020_vm4, %v5933_v49  ;;  %v1807_v49 = vpop.permute.xlu1 %1806  ;;  %4087 = vmatprep.mubr.msk.f32.mxu0 %vm1222_vm6, %v6769_v17 }
 0x208   : > { %2538 = vst.msk [vmem:[#allocation3 + $0xc8] sm:$0xff] %vm1149_vm5, %v5952_v51  ;;  %2003 = vst.msk [vmem:[#allocation3 + $0xd0] sm:$0xff] %vm1149_vm5, %v1934_v26  ;;  %v1461_v51 = vadd.f32 %v4006_v4, %v5559_v14  ;;  %v3082_v4 = vld [vmem:[#allocation3 + $0x8] sm:$0xff] }
 0x209   : > { %3681 = vst.msk [vmem:[%s5575_s23 + $0x118] sm:$0xff] %vm421_vm0, %v2252_v61  ;;  %3680 = vst.msk [vmem:[%s5575_s23 + $0x110] sm:$0xff] %vm421_vm0, %v2247_v20  ;;  %v1681_v2 = vpop.permute.xlu0 %1680  ;;  %v6778_v61 = vld [vmem:[#allocation6_spill] sm:$0xff] }
 0x20a   : > { %1875 = vst.msk [vmem:[#allocation3 + $0xd8] sm:$0xff] %vm1020_vm4, %v1807_v49  ;;  %4088 = vmatmul.mubr.msk.f32.vlgmr.msra.gmra.mxu0 %vm1222_vm6, %v6770_v56 }
 0x20b   : > { %1607 = vst.msk [vmem:[#allocation3 + $0xf8] sm:$0xff] %vm421_vm0, %v5719_v48  ;;  %1559 = vst.msk [vmem:[%s5575_s23 + $0x1c8] sm:$0xff] %vm421_vm0, %v1461_v51  ;;  %v1936_v19 = vpop.permute.xlu1 %1935  ;;  %4090 = vmatprep.mubr.msk.f32.mxu0 %vm1222_vm6, %v5058_v63 }
 0x20c   : > { %v6153_v13 = vld [vmem:[#allocation3 + $0xc0] sm:$0xff]  ;;  %1748 = vst.msk [vmem:[#allocation3 + $0xe0] sm:$0xff] %vm875_vm3, %v1681_v2 }
 0x20d   : > { %2958 = vst.msk [vmem:[#allocation3 + $0xc0] sm:$0xff] %vm421_vm0, %v5577_v59  ;;  %v1809_v22 = vpop.permute.xlu0 %1808 }
 0x20e   : > { %2996 = vst.msk [vmem:[#allocation3 + $0xc0] sm:$0xff] %vm875_vm3, %v1677_v0  ;;  %4091 = vmatmul.mubr.msk.f32.gmra.mxu0 %vm1222_vm6, %v5068_v11 }
 0x20f   : > { %v6162_v55 = vld [vmem:[#allocation3 + $0xc8] sm:$0xff]  ;;  %2004 = vst.msk [vmem:[#allocation3 + $0xd8] sm:$0xff] %vm1149_vm5, %v1936_v19  ;;  %v2035_v59 = vld [vmem:[#allocation3 + $0xd0] sm:$0xff]  ;;  %v1683_v14 = vpop.permute.xlu1 %1682  ;;  %4093 = vmatprep.mubr.msk.f32.mxu0 %vm1222_vm6, %v5150_v3 }
 0x210   : > { %3034 = vst.msk [vmem:[#allocation3 + $0xc0] sm:$0xff] %vm1020_vm4, %v1805_v42  ;;  %1876 = vst.msk [vmem:[#allocation3 + $0xe0] sm:$0xff] %vm1020_vm4, %v1809_v22  ;;  %4074 = vmatprep.mubr.msk.f32.mxu1 %vm1222_vm6, %v2035_v59 }
 0x211   : > { %2959 = vst.msk [vmem:[#allocation3 + $0xc8] sm:$0xff] %vm421_vm0, %v5589_v9  ;;  %2424 = vst.msk [vmem:[#allocation3 + $0xd0] sm:$0xff] %vm421_vm0, %v6748_v30  ;;  %v1938_v63 = vpop.permute.xlu0 %1937 }
 0x212   : > { %2997 = vst.msk [vmem:[#allocation3 + $0xc8] sm:$0xff] %vm875_vm3, %v1679_v47  ;;  %2462 = vst.msk [vmem:[#allocation3 + $0xd0] sm:$0xff] %vm875_vm3, %v5971_v36  ;;  %4094 = vmatmul.mubr.msk.f32.gmra.mxu0 %vm1222_vm6, %v5160_v58  ;;  %v4052_v36 = vpop.f32.mrf.mxu1 }
 0x213   : > { %3073 = vst.msk [vmem:[#allocation3 + $0xc0] sm:$0xff] %vm1149_vm5, %v1934_v26  ;;  %2005 = vst.msk [vmem:[#allocation3 + $0xe0] sm:$0xff] %vm1149_vm5, %v1938_v63  ;;  %v1811_v9 = vpop.permute.xlu1 %1810  ;;  %4096 = vmatprep.mubr.msk.f32.mxu0 %vm1222_vm6, %v5242_v38 }
 0x214   : > { %3035 = vst.msk [vmem:[#allocation3 + $0xc8] sm:$0xff] %vm1020_vm4, %v1807_v49  ;;  %2501 = vst.msk [vmem:[#allocation3 + $0xd0] sm:$0xff] %vm1020_vm4, %v6005_v6 }
 0x215   : > { %3074 = vst.msk [vmem:[#allocation3 + $0xc8] sm:$0xff] %vm1149_vm5, %v1936_v19  ;;  %2539 = vst.msk [vmem:[#allocation3 + $0xd0] sm:$0xff] %vm1149_vm5, %v6027_v28  ;;  %v6204_v11 = vpop.permute.xlu0 %1684 }
 0x216   : > { %1749 = vst.msk [vmem:[#allocation3 + $0xe8] sm:$0xff] %vm875_vm3, %v1683_v14  ;;  %v2036_v30 = vld [vmem:[#allocation3 + $0xd8] sm:$0xff]  ;;  %1750 = vst.msk [vmem:[#allocation3 + $0xf0] sm:$0xff] %vm875_vm3, %v6204_v11  ;;  %4097 = vmatmul.mubr.msk.f32.gmra.mxu0 %vm1222_vm6, %v5252_v32 }
 0x217   : > { %2425 = vst.msk [vmem:[#allocation3 + $0xd8] sm:$0xff] %vm421_vm0, %v6749_v23  ;;  %4075 = vmatmul.mubr.msk.f32.gmra.mxu1 %vm1222_vm6, %v2036_v30  ;;  %v1940_v3 = vpop.permute.xlu1 %1939  ;;  %4099 = vmatprep.mubr.msk.f32.mxu0 %vm1222_vm6, %v5334_v21  ;;  %v6232_v21 = vld [vmem:[%s6691_s4] ss:$0 sm:$0xff] }
 0x218   : > { %1877 = vst.msk [vmem:[#allocation3 + $0xe8] sm:$0xff] %vm1020_vm4, %v1811_v9 }
 0x219   : > { %2463 = vst.msk [vmem:[#allocation3 + $0xd8] sm:$0xff] %vm875_vm3, %v5983_v39  ;;  %v1813_v38 = vpop.permute.xlu0 %1812  ;;  %v6771_v39 = vld [vmem:[#allocation15_spill] sm:$0xff] }
 0x21a   : > { %2502 = vst.msk [vmem:[#allocation3 + $0xd8] sm:$0xff] %vm1020_vm4, %v6017_v40  ;;  %v2037_v58 = vld [vmem:[#allocation3 + $0xe0] sm:$0xff]  ;;  %1878 = vst.msk [vmem:[#allocation3 + $0xf0] sm:$0xff] %vm1020_vm4, %v1813_v38  ;;  %4100 = vmatmul.mubr.msk.f32.gmra.mxu0 %vm1222_vm6, %v5344_v52 }
 0x21b   : > { %2540 = vst.msk [vmem:[#allocation3 + $0xd8] sm:$0xff] %vm1149_vm5, %v6032_v16  ;;  %2006 = vst.msk [vmem:[#allocation3 + $0xe8] sm:$0xff] %vm1149_vm5, %v1940_v3  ;;  %4077 = vmatprep.mubr.msk.f32.mxu1 %vm1222_vm6, %v2037_v58  ;;  %v1687_v32 = vpop.permute.xlu1 %1686  ;;  %4102 = vmatprep.mubr.msk.f32.mxu0 %vm1222_vm6, %v6771_v39 }
 0x21c   : > { %v6212_v23 = vld [vmem:[#allocation3 + $0xd0] sm:$0xff]  ;;  %2426 = vst.msk [vmem:[#allocation3 + $0xe0] sm:$0xff] %vm421_vm0, %v4950_v31  ;;  %v2256_v31 = vpop.f32.mrf.mxu1 }
 0x21d   : > { %2960 = vst.msk [vmem:[#allocation3 + $0xd0] sm:$0xff] %vm421_vm0, %v5660_v33  ;;  %v2262_v33 = vadd.f32 %v6232_v21, %v4052_v36  ;;  %v2257_v6 = vadd.f32 %v6232_v21, %v2256_v31  ;;  %v1942_v40 = vpop.permute.xlu0 %1941  ;;  %v3094_v36 = vld [vmem:[#allocation3 + $0x68] sm:$0xff]  ;;  %v3096_v31 = vld [vmem:[#allocation3 + $0x78] sm:$0xff] }
 0x21e   : > { %2998 = vst.msk [vmem:[#allocation3 + $0xd0] sm:$0xff] %vm875_vm3, %v1681_v2  ;;  %2464 = vst.msk [vmem:[#allocation3 + $0xe0] sm:$0xff] %vm875_vm3, %v6051_v43  ;;  %v6772_v43 = vld [vmem:[#allocation22_spill] sm:$0xff]  ;;  %4103 = vmatmul.mubr.msk.f32.gmra.mxu0 %vm1222_vm6, %v6773_v27 }
 0x21f   : > { %3036 = vst.msk [vmem:[#allocation3 + $0xd0] sm:$0xff] %vm1020_vm4, %v1809_v22  ;;  %2503 = vst.msk [vmem:[#allocation3 + $0xe0] sm:$0xff] %vm1020_vm4, %v6085_v12  ;;  %v1815_v16 = vpop.permute.xlu1 %1814  ;;  %v4009_v12 = vpop.f32.mrf.mxu0 }
 0x220   : > { %3075 = vst.msk [vmem:[#allocation3 + $0xd0] sm:$0xff] %vm1149_vm5, %v1938_v63  ;;  %2541 = vst.msk [vmem:[#allocation3 + $0xe0] sm:$0xff] %vm1149_vm5, %v6107_v34  ;;  %v6774_v34 = vld [vmem:[#allocation13_spill] sm:$0xff] }
 0x221   : > { %1751 = vst.msk [vmem:[#allocation3 + $0xf8] sm:$0xff] %vm875_vm3, %v1687_v32  ;;  %4105 = vmatprep.mubr.msk.f32.mxu0 %vm1222_vm6, %v6774_v34  ;;  %v2431_v0 = vpop.permute.xlu0 %2430  ;;  %v1465_v41 = vpop.f32.mrf.mxu0  ;;  %v3100_v34 = vld [vmem:[#allocation3 + $0x98] sm:$0xff] }
 0x222   : > { %3683 = vst.msk [vmem:[%s5575_s23 + $0x158] sm:$0xff] %vm421_vm0, %v2262_v33  ;;  %v6248_v28 = vld [vmem:[#allocation3 + $0xd8] sm:$0xff]  ;;  %v2038_v52 = vld [vmem:[#allocation3 + $0xe8] sm:$0xff]  ;;  %3682 = vst.msk [vmem:[%s5575_s23 + $0x150] sm:$0xff] %vm421_vm0, %v2257_v6  ;;  %v1466_v42 = vadd.f32 %v6232_v21, %v1465_v41  ;;  %4106 = vmatmul.mubr.msk.f32.gmra.mxu0 %vm1222_vm6, %v6775_v18 }
 0x223   : > { %2007 = vst.msk [vmem:[#allocation3 + $0xf0] sm:$0xff] %vm1149_vm5, %v1942_v40  ;;  %4078 = vmatmul.mubr.msk.f32.gmra.mxu1 %vm1222_vm6, %v2038_v52  ;;  %v3097_v6 = vld [vmem:[#allocation3 + $0x80] sm:$0xff]  ;;  %v3098_v52 = vld [vmem:[#allocation3 + $0x88] sm:$0xff] }
 0x224   : > { %2961 = vst.msk [vmem:[#allocation3 + $0xd8] sm:$0xff] %vm421_vm0, %v5663_v60  ;;  %2427 = vst.msk [vmem:[#allocation3 + $0xe8] sm:$0xff] %vm421_vm0, %v6772_v43  ;;  %v1471_v60 = vadd.f32 %v6232_v21, %v4009_v12  ;;  %v4055_v17 = vpop.f32.mrf.mxu1  ;;  %v3099_v43 = vld [vmem:[#allocation3 + $0x90] sm:$0xff]  ;;  %v3102_v41 = vld [vmem:[#allocation3 + $0xa8] sm:$0xff] }
 0x225   : > { %2999 = vst.msk [vmem:[#allocation3 + $0xd8] sm:$0xff] %vm875_vm3, %v1683_v14  ;;  %2465 = vst.msk [vmem:[#allocation3 + $0xe8] sm:$0xff] %vm875_vm3, %v6063_v29  ;;  %v1944_v29 = vpop.permute.xlu1 %1943  ;;  %v2470_v47 = vpop.permute.xlu0 %2469  ;;  %v3106_v18 = vld [vmem:[#allocation3 + $0xc8] sm:$0xff] }
 0x226   : > { %1879 = vst.msk [vmem:[#allocation3 + $0xf8] sm:$0xff] %vm1020_vm4, %v1815_v16  ;;  %3037 = vst.msk [vmem:[#allocation3 + $0xd8] sm:$0xff] %vm1020_vm4, %v1811_v9  ;;  %v2266_v56 = vpop.f32.mrf.mxu1 }
 0x227   : > { %3076 = vst.msk [vmem:[#allocation3 + $0xd8] sm:$0xff] %vm1149_vm5, %v1940_v3  ;;  %v6276_v57 = vld [vmem:[#allocation3 + $0xe0] sm:$0xff]  ;;  %2008 = vst.msk [vmem:[#allocation3 + $0xf8] sm:$0xff] %vm1149_vm5, %v1944_v29  ;;  %v2267_v59 = vadd.f32 %v6232_v21, %v2266_v56  ;;  %v3088_v3 = vld [vmem:[#allocation3 + $0x38] sm:$0xff] }
 0x228   : > { %2504 = vst.msk [vmem:[#allocation3 + $0xe8] sm:$0xff] %vm1020_vm4, %v6097_v46  ;;  %v6776_v46 = vld [vmem:[#allocation20_spill] sm:$0xff] }
 0x229   : > { %2542 = vst.msk [vmem:[#allocation3 + $0xe8] sm:$0xff] %vm1149_vm5, %v6112_v35  ;;  %4108 = vmatprep.mubr.msk.f32.mxu0 %vm1222_vm6, %v6776_v46  ;;  %v2508_v15 = vpop.permute.xlu0 %2507  ;;  %v4012_v30 = vpop.f32.mrf.mxu0  ;;  %v3107_v46 = vld [vmem:[#allocation3 + $0xd0] sm:$0xff] }
 0x22a   : > { %1561 = vst.msk [vmem:[%s5575_s23 + $0x208] sm:$0xff] %vm421_vm0, %v1471_v60  ;;  %2962 = vst.msk [vmem:[#allocation3 + $0xe0] sm:$0xff] %vm421_vm0, %v5716_v45  ;;  %v2039_v35 = vld [vmem:[#allocation3 + $0xf0] sm:$0xff]  ;;  %v2433_v45 = vpop.permute.xlu1 %2432  ;;  %4109 = vmatmul.mubr.msk.f32.gmra.mxu0 %vm1222_vm6, %v6778_v61  ;;  %v1481_v9 = vadd.f32 %v6232_v21, %v4012_v30 }
 0x22b   : > { %1560 = vst.msk [vmem:[%s5575_s23 + $0x200] sm:$0xff] %vm421_vm0, %v1466_v42  ;;  %4080 = vmatprep.mubr.msk.f32.mxu1 %vm1222_vm6, %v2039_v35  ;;  %2428 = vst.msk [vmem:[#allocation3 + $0xf0] sm:$0xff] %vm421_vm0, %v6777_v24  ;;  %4111 = vmatprep.mubr.msk.f32.mxu0 %vm1222_vm6, %v5798_v25  ;;  %v3081_v25 = vld [vmem:[#allocation3] sm:$0xff]  ;;  %v3103_v42 = vld [vmem:[#allocation3 + $0xb0] sm:$0xff] }
 0x22c   : > { %3000 = vst.msk [vmem:[#allocation3 + $0xe0] sm:$0xff] %vm875_vm3, %v6204_v11  ;;  %2466 = vst.msk [vmem:[#allocation3 + $0xf0] sm:$0xff] %vm875_vm3, %v2431_v0  ;;  %v1475_v11 = vpop.f32.mrf.mxu0  ;;  %v3101_v0 = vld [vmem:[#allocation3 + $0xa0] sm:$0xff] }
 0x22d   : > { %3038 = vst.msk [vmem:[#allocation3 + $0xe0] sm:$0xff] %vm1020_vm4, %v1813_v38  ;;  %2505 = vst.msk [vmem:[#allocation3 + $0xf0] sm:$0xff] %vm1020_vm4, %v2470_v47  ;;  %v3091_v38 = vld [vmem:[#allocation3 + $0x50] sm:$0xff] }
 0x22e   : > { %3077 = vst.msk [vmem:[#allocation3 + $0xe0] sm:$0xff] %vm1149_vm5, %v1942_v40  ;;  %2543 = vst.msk [vmem:[#allocation3 + $0xf0] sm:$0xff] %vm1149_vm5, %v2508_v15  ;;  %v2040_v20 = vld [vmem:[#allocation3 + $0xf8] sm:$0xff]  ;;  %v2472_v49 = vpop.permute.xlu1 %2471  ;;  %4112 = vmatmul.mubr.msk.f32.gmra.mxu0 %vm1222_vm6, %v5811_v50  ;;  %v3083_v50 = vld [vmem:[#allocation3 + $0x10] sm:$0xff] }
 0x22f   : > { %4081 = vmatmul.mubr.msk.f32.gmra.mxu1 %vm1222_vm6, %v2040_v20  ;;  %2429 = vst.msk [vmem:[#allocation3 + $0xf8] sm:$0xff] %vm421_vm0, %v6779_v8  ;;  %4114 = vmatprep.mubr.msk.f32.mxu0 %vm1222_vm6, %v5912_v62  ;;  %3684 = vst.msk [vmem:[%s5575_s23 + $0x190] sm:$0xff] %vm421_vm0, %v2267_v59  ;;  %v3108_v47 = vld [vmem:[#allocation3 + $0xd8] sm:$0xff] }
 0x230   : > { %v6300_v26 = vld [vmem:[#allocation3 + $0xe8] sm:$0xff]  ;;  %4139 = vmatprep.mubr.msk.f32.mxu1 %vm1222_vm6, %v3081_v25  ;;  %2467 = vst.msk [vmem:[#allocation3 + $0xf8] sm:$0xff] %vm875_vm3, %v2433_v45 }
 0x231   : > { %2963 = vst.msk [vmem:[#allocation3 + $0xe8] sm:$0xff] %vm421_vm0, %v5719_v48  ;;  %v2967_v48 = vpop.permute.xlu0 %2966  ;;  %1563 = vst.msk [vmem:[%s5575_s23 + $0x248] sm:$0xff] %vm421_vm0, %v1481_v9 }
 0x232   : > { %3001 = vst.msk [vmem:[#allocation3 + $0xe8] sm:$0xff] %vm875_vm3, %v1687_v32  ;;  %v2510_v51 = vpop.permute.xlu1 %2509  ;;  %4115 = vmatmul.mubr.msk.f32.gmra.mxu0 %vm1222_vm6, %v5924_v53  ;;  %v2272_v53 = vadd.f32 %v6232_v21, %v4055_v17  ;;  %v3095_v32 = vld [vmem:[#allocation3 + $0x70] sm:$0xff] }
 0x233   : > { %3039 = vst.msk [vmem:[#allocation3 + $0xe8] sm:$0xff] %vm1020_vm4, %v1815_v16  ;;  %2506 = vst.msk [vmem:[#allocation3 + $0xf8] sm:$0xff] %vm1020_vm4, %v2472_v49  ;;  %4140 = vmatmul.mubr.msk.f32.vlgmr.msra.gmra.mxu1 %vm1222_vm6, %v3082_v4  ;;  %4117 = vmatprep.mubr.msk.f32.mxu0 %vm1222_vm6, %v5997_v44  ;;  %v3085_v44 = vld [vmem:[#allocation3 + $0x20] sm:$0xff] }
 0x234   : > { %3078 = vst.msk [vmem:[#allocation3 + $0xe8] sm:$0xff] %vm1149_vm5, %v1944_v29  ;;  %2544 = vst.msk [vmem:[#allocation3 + $0xf8] sm:$0xff] %vm1149_vm5, %v2510_v51  ;;  %4142 = vmatprep.mubr.msk.f32.mxu1 %vm1222_vm6, %v3083_v50  ;;  %v3104_v29 = vld [vmem:[#allocation3 + $0xb8] sm:$0xff] }
 0x235   : > { %v2575_v62 = vld [vmem:[#allocation3 + $0xf0] sm:$0xff]  ;;  %v3005_v2 = vpop.permute.xlu0 %3004  ;;  %3685 = vst.msk [vmem:[%s5575_s23 + $0x198] sm:$0xff] %vm421_vm0, %v2272_v53  ;;  %v3109_v45 = vld [vmem:[#allocation3 + $0xe0] sm:$0xff] }
 0x236   : > { %2964 = vst.msk [vmem:[#allocation3 + $0xf0] sm:$0xff] %vm421_vm0, %v6780_v1  ;;  %v2969_v19 = vpop.permute.xlu1 %2968  ;;  %4118 = vmatmul.mubr.msk.f32.gmra.mxu0 %vm1222_vm6, %v6008_v54  ;;  %v3086_v54 = vld [vmem:[#allocation3 + $0x28] sm:$0xff] }
 0x237   : > { %3002 = vst.msk [vmem:[#allocation3 + $0xf0] sm:$0xff] %vm875_vm3, %v2967_v48  ;;  %4143 = vmatmul.mubr.msk.f32.gmra.mxu1 %vm1222_vm6, %v3084_v5  ;;  %4120 = vmatprep.mubr.msk.f32.mxu0 %vm1222_vm6, %v6077_v37  ;;  %v3087_v37 = vld [vmem:[#allocation3 + $0x30] sm:$0xff] }
 0x238   : > { %3040 = vst.msk [vmem:[#allocation3 + $0xf0] sm:$0xff] %vm1020_vm4, %v3005_v2  ;;  %4145 = vmatprep.mubr.msk.f32.mxu1 %vm1222_vm6, %v3085_v44 }
 0x239   : > { %v3044_v22 = vpop.permute.xlu0 %3043 }
 0x23a   : > { %3079 = vst.msk [vmem:[#allocation3 + $0xf0] sm:$0xff] %vm1149_vm5, %v3044_v22  ;;  %v3007_v63 = vpop.permute.xlu1 %3006  ;;  %4121 = vmatmul.mubr.msk.f32.gmra.mxu0 %vm1222_vm6, %v6088_v7  ;;  %v1476_v7 = vadd.f32 %v6232_v21, %v1475_v11 }
 0x23b   : > { %v2576_v14 = vld [vmem:[#allocation3 + $0xf8] sm:$0xff]  ;;  %4146 = vmatmul.mubr.msk.f32.gmra.mxu1 %vm1222_vm6, %v3086_v54  ;;  %4123 = vmatprep.mubr.msk.f32.mxu0 %vm1222_vm6, %v6153_v13  ;;  %v3090_v13 = vld [vmem:[#allocation3 + $0x48] sm:$0xff] }
 0x23c   : > { %2965 = vst.msk [vmem:[#allocation3 + $0xf8] sm:$0xff] %vm421_vm0, %v5543_v10  ;;  %4148 = vmatprep.mubr.msk.f32.mxu1 %vm1222_vm6, %v3087_v37  ;;  %v3089_v10 = vld [vmem:[#allocation3 + $0x40] sm:$0xff]  ;;  %1562 = vst.msk [vmem:[%s5575_s23 + $0x240] sm:$0xff] %vm421_vm0, %v1476_v7  ;;  %v3110_v20 = vld [vmem:[#allocation3 + $0xe8] sm:$0xff] }
 0x23d   : > { %3003 = vst.msk [vmem:[#allocation3 + $0xf8] sm:$0xff] %vm875_vm3, %v2969_v19 }
 0x23e   : > { %3041 = vst.msk [vmem:[#allocation3 + $0xf8] sm:$0xff] %vm1020_vm4, %v3007_v63  ;;  %v3046_v58 = vpop.permute.xlu1 %3045  ;;  %4124 = vmatmul.mubr.msk.f32.gmra.mxu0 %vm1222_vm6, %v6162_v55  ;;  %v3092_v55 = vld [vmem:[#allocation3 + $0x58] sm:$0xff] }
 0x23f   : > { %4149 = vmatmul.mubr.msk.f32.gmra.mxu1 %vm1222_vm6, %v3088_v3  ;;  %3080 = vst.msk [vmem:[#allocation3 + $0xf8] sm:$0xff] %vm1149_vm5, %v3046_v58  ;;  %4126 = vmatprep.mubr.msk.f32.mxu0 %vm1222_vm6, %v6212_v23  ;;  %v3093_v23 = vld [vmem:[#allocation3 + $0x60] sm:$0xff] }
 0x240   : > { %4151 = vmatprep.mubr.msk.f32.mxu1 %vm1222_vm6, %v3089_v10  ;;  %v4058_v33 = vpop.f32.mrf.mxu1 }
 0x241   : > { %v2282_v39 = vadd.f32 %v6232_v21, %v4058_v33 }
 0x242   : > { %4127 = vmatmul.mubr.msk.f32.gmra.mxu0 %vm1222_vm6, %v6248_v28  ;;  %v2276_v40 = vpop.f32.mrf.mxu1 }
 0x243   : > { %4152 = vmatmul.mubr.msk.f32.gmra.mxu1 %vm1222_vm6, %v3090_v13  ;;  %4129 = vmatprep.mubr.msk.f32.mxu0 %vm1222_vm6, %v6276_v57  ;;  %3687 = vst.msk [vmem:[%s5575_s23 + $0x1d8] sm:$0xff] %vm421_vm0, %v2282_v39  ;;  %v2277_v28 = vadd.f32 %v6232_v21, %v2276_v40  ;;  %v3105_v57 = vld [vmem:[#allocation3 + $0xc0] sm:$0xff] }
 0x244   : > { %4154 = vmatprep.mubr.msk.f32.mxu1 %vm1222_vm6, %v3091_v38  ;;  %v4015_v16 = vpop.f32.mrf.mxu0 }
 0x245   : > { %3686 = vst.msk [vmem:[%s5575_s23 + $0x1d0] sm:$0xff] %vm421_vm0, %v2277_v28  ;;  %v1491_v12 = vadd.f32 %v6232_v21, %v4015_v16 }
 0x246   : > { %4130 = vmatmul.mubr.msk.f32.gmra.mxu0 %vm1222_vm6, %v6300_v26  ;;  %v1485_v27 = vpop.f32.mrf.mxu0  ;;  %v3111_v26 = vld [vmem:[#allocation3 + $0xf0] sm:$0xff]  ;;  %v3112_v25 = vld [vmem:[#allocation3 + $0xf8] sm:$0xff] }
 0x247   : > { %4155 = vmatmul.mubr.msk.f32.gmra.mxu1 %vm1222_vm6, %v3092_v55  ;;  %4132 = vmatprep.mubr.msk.f32.mxu0 %vm1222_vm6, %v2575_v62  ;;  %1565 = vst.msk [vmem:[%s5575_s23 + $0x288] sm:$0xff] %vm421_vm0, %v1491_v12  ;;  %v1486_v60 = vadd.f32 %v6232_v21, %v1485_v27 }
 0x248   : > { %4157 = vmatprep.mubr.msk.f32.mxu1 %vm1222_vm6, %v3093_v23 }
 0x249   : > { %1564 = vst.msk [vmem:[%s5575_s23 + $0x280] sm:$0xff] %vm421_vm0, %v1486_v60 }
 0x24a   : > { %4133 = vmatmul.mubr.msk.f32.gmra.mxu0 %vm1222_vm6, %v2576_v14 }
 0x24b   : > { %4158 = vmatmul.mubr.msk.f32.gmra.mxu1 %vm1222_vm6, %v3094_v36 }
 0x24c   : > { %4160 = vmatprep.mubr.msk.f32.mxu1 %vm1222_vm6, %v3095_v32 }
 0x24f   : > { %4161 = vmatmul.mubr.msk.f32.gmra.mxu1 %vm1222_vm6, %v3096_v31 }
 0x250   : > { %4163 = vmatprep.mubr.msk.f32.mxu1 %vm1222_vm6, %v3097_v6 }
 0x253   : > { %4164 = vmatmul.mubr.msk.f32.gmra.mxu1 %vm1222_vm6, %v3098_v52 }
 0x254   : > { %4166 = vmatprep.mubr.msk.f32.mxu1 %vm1222_vm6, %v3099_v43 }
 0x257   : > { %4167 = vmatmul.mubr.msk.f32.gmra.mxu1 %vm1222_vm6, %v3100_v34 }
 0x258   : > { %4169 = vmatprep.mubr.msk.f32.mxu1 %vm1222_vm6, %v3101_v0 }
 0x25a   : > { %v4061_v35 = vpop.f32.mrf.mxu1 }
 0x25b   : > { %4170 = vmatmul.mubr.msk.f32.gmra.mxu1 %vm1222_vm6, %v3102_v41  ;;  %v2292_v24 = vadd.f32 %v6232_v21, %v4061_v35 }
 0x25c   : > { %4172 = vmatprep.mubr.msk.f32.mxu1 %vm1222_vm6, %v3103_v42  ;;  %v2286_v61 = vpop.f32.mrf.mxu1 }
 0x25d   : > { %3689 = vst.msk [vmem:[%s5575_s23 + $0x218] sm:$0xff] %vm421_vm0, %v2292_v24  ;;  %v2287_v15 = vadd.f32 %v6232_v21, %v2286_v61 }
 0x25e   : > { %v4018_v49 = vpop.f32.mrf.mxu0 }
 0x25f   : > { %4173 = vmatmul.mubr.msk.f32.gmra.mxu1 %vm1222_vm6, %v3104_v29  ;;  %3688 = vst.msk [vmem:[%s5575_s23 + $0x210] sm:$0xff] %vm421_vm0, %v2287_v15  ;;  %v1501_v8 = vadd.f32 %v6232_v21, %v4018_v49 }
 0x260   : > { %4175 = vmatprep.mubr.msk.f32.mxu1 %vm1222_vm6, %v3105_v57  ;;  %v1495_v48 = vpop.f32.mrf.mxu0 }
 0x261   : > { %1567 = vst.msk [vmem:[%s5575_s23 + $0x2c8] sm:$0xff] %vm421_vm0, %v1501_v8  ;;  %v1496_v4 = vadd.f32 %v6232_v21, %v1495_v48 }
 0x263   : > { %4176 = vmatmul.mubr.msk.f32.gmra.mxu1 %vm1222_vm6, %v3106_v18  ;;  %1566 = vst.msk [vmem:[%s5575_s23 + $0x2c0] sm:$0xff] %vm421_vm0, %v1496_v4 }
 0x264   : > { %4178 = vmatprep.mubr.msk.f32.mxu1 %vm1222_vm6, %v3107_v46 }
 0x267   : > { %4179 = vmatmul.mubr.msk.f32.gmra.mxu1 %vm1222_vm6, %v3108_v47 }
 0x268   : > { %4181 = vmatprep.mubr.msk.f32.mxu1 %vm1222_vm6, %v3109_v45 }
 0x26b   : > { %4182 = vmatmul.mubr.msk.f32.gmra.mxu1 %vm1222_vm6, %v3110_v20 }
 0x26c   : > { %4184 = vmatprep.mubr.msk.f32.mxu1 %vm1222_vm6, %v3111_v26 }
 0x26f   : > { %4185 = vmatmul.mubr.msk.f32.gmra.mxu1 %vm1222_vm6, %v3112_v25 }
 0x274   : > { %v4064_v51 = vpop.f32.mrf.mxu1 }
 0x275   : > { %v2302_v50 = vadd.f32 %v6232_v21, %v4064_v51 }
 0x276   : > { %v2296_v62 = vpop.f32.mrf.mxu1 }
 0x277   : > { %3691 = vst.msk [vmem:[%s5575_s23 + $0x258] sm:$0xff] %vm421_vm0, %v2302_v50  ;;  %v2297_v2 = vadd.f32 %v6232_v21, %v2296_v62 }
 0x279   : > { %3690 = vst.msk [vmem:[%s5575_s23 + $0x250] sm:$0xff] %vm421_vm0, %v2297_v2  ;;  %v4021_v17 = vpop.f32.mrf.mxu0 }
 0x27a   : > { %v1511_v1 = vadd.f32 %v6232_v21, %v4021_v17 }
 0x27b   : > { %v1505_v5 = vpop.f32.mrf.mxu0 }
 0x27c   : > { %1569 = vst.msk [vmem:[%s5575_s23 + $0x308] sm:$0xff] %vm421_vm0, %v1511_v1  ;;  %v1506_v53 = vadd.f32 %v6232_v21, %v1505_v5 }
 0x27e   : > { %1568 = vst.msk [vmem:[%s5575_s23 + $0x300] sm:$0xff] %vm421_vm0, %v1506_v53 }
 0x28e   : > { %v4067_v19 = vpop.f32.mrf.mxu1 }
 0x28f   : > { %v2312_v44 = vadd.f32 %v6232_v21, %v4067_v19 }
 0x290   : > { %v2306_v56 = vpop.f32.mrf.mxu1 }
 0x291   : > { %3693 = vst.msk [vmem:[%s5575_s23 + $0x298] sm:$0xff] %vm421_vm0, %v2312_v44  ;;  %v2307_v59 = vadd.f32 %v6232_v21, %v2306_v56  ;;  %v4024_v22 = vpop.f32.mrf.mxu0 }
 0x292   : > { %v1521_v54 = vadd.f32 %v6232_v21, %v4024_v22 }
 0x293   : > { %3692 = vst.msk [vmem:[%s5575_s23 + $0x290] sm:$0xff] %vm421_vm0, %v2307_v59  ;;  %v1515_v14 = vpop.f32.mrf.mxu0 }
 0x294   : > { %1571 = vst.msk [vmem:[%s5575_s23 + $0x348] sm:$0xff] %vm421_vm0, %v1521_v54  ;;  %v1516_v63 = vadd.f32 %v6232_v21, %v1515_v14 }
 0x296   : > { %1570 = vst.msk [vmem:[%s5575_s23 + $0x340] sm:$0xff] %vm421_vm0, %v1516_v63 }
 0x2a8   : > { %v4070_v30 = vpop.f32.mrf.mxu1 }
 0x2a9   : > { %v2322_v37 = vadd.f32 %v6232_v21, %v4070_v30 }
 0x2aa   : > { %v2316_v9 = vpop.f32.mrf.mxu1 }
 0x2ab   : > { %3695 = vst.msk [vmem:[%s5575_s23 + $0x2d8] sm:$0xff] %vm421_vm0, %v2322_v37  ;;  %v2317_v11 = vadd.f32 %v6232_v21, %v2316_v9 }
 0x2ac   : > { %v4027_v7 = vpop.f32.mrf.mxu0 }
 0x2ad   : > { %3694 = vst.msk [vmem:[%s5575_s23 + $0x2d0] sm:$0xff] %vm421_vm0, %v2317_v11  ;;  %v1531_v3 = vadd.f32 %v6232_v21, %v4027_v7 }
 0x2ae   : > { %v1525_v58 = vpop.f32.mrf.mxu0 }
 0x2af   : > { %1573 = vst.msk [vmem:[%s5575_s23 + $0x388] sm:$0xff] %vm421_vm0, %v1531_v3  ;;  %v1526_v10 = vadd.f32 %v6232_v21, %v1525_v58 }
 0x2b1   : > { %1572 = vst.msk [vmem:[%s5575_s23 + $0x380] sm:$0xff] %vm421_vm0, %v1526_v10 }
 0x2c2   : > { %v4073_v13 = vpop.f32.mrf.mxu1 }
 0x2c3   : > { %v2332_v38 = vadd.f32 %v6232_v21, %v4073_v13 }
 0x2c4   : > { %v2326_v55 = vpop.f32.mrf.mxu1 }
 0x2c5   : > { %3697 = vst.msk [vmem:[%s5575_s23 + $0x318] sm:$0xff] %vm421_vm0, %v2332_v38  ;;  %v2327_v23 = vadd.f32 %v6232_v21, %v2326_v55 }
 0x2c6   : > { %v4030_v36 = vpop.f32.mrf.mxu0 }
 0x2c7   : > { %3696 = vst.msk [vmem:[%s5575_s23 + $0x310] sm:$0xff] %vm421_vm0, %v2327_v23  ;;  %v1541_v32 = vadd.f32 %v6232_v21, %v4030_v36 }
 0x2c8   : > { %v1535_v33 = vpop.f32.mrf.mxu0 }
 0x2c9   : > { %1575 = vst.msk [vmem:[%s5575_s23 + $0x3c8] sm:$0xff] %vm421_vm0, %v1541_v32  ;;  %v1536_v31 = vadd.f32 %v6232_v21, %v1535_v33 }
 0x2ca   : > { %v4089_v39 = vpop.f32.mrf.mxu0 }
 0x2cb   : > { %1574 = vst.msk [vmem:[%s5575_s23 + $0x3c0] sm:$0xff] %vm421_vm0, %v1536_v31  ;;  %v2748_v6 = vadd.f32 %v6232_v21, %v4089_v39 }
 0x2cc   : > { %v2742_v40 = vpop.f32.mrf.mxu0 }
 0x2cd   : > { %3739 = vst.msk [vmem:[%s5575_s23 + $0x28] sm:$0xff] %vm421_vm0, %v2748_v6  ;;  %v2743_v28 = vadd.f32 %v6232_v21, %v2742_v40 }
 0x2ce   : > { %v4092_v52 = vpop.f32.mrf.mxu0 }
 0x2cf   : > { %3738 = vst.msk [vmem:[%s5575_s23 + $0x20] sm:$0xff] %vm421_vm0, %v2743_v28  ;;  %v2758_v16 = vadd.f32 %v6232_v21, %v4092_v52 }
 0x2d0   : > { %v2752_v43 = vpop.f32.mrf.mxu0 }
 0x2d1   : > { %3741 = vst.msk [vmem:[%s5575_s23 + $0x68] sm:$0xff] %vm421_vm0, %v2758_v16  ;;  %v2753_v12 = vadd.f32 %v6232_v21, %v2752_v43 }
 0x2d2   : > { %v4095_v60 = vpop.f32.mrf.mxu0 }
 0x2d3   : > { %3740 = vst.msk [vmem:[%s5575_s23 + $0x60] sm:$0xff] %vm421_vm0, %v2753_v12  ;;  %v2768_v0 = vadd.f32 %v6232_v21, %v4095_v60 }
 0x2d4   : > { %v2762_v42 = vpop.f32.mrf.mxu0 }
 0x2d5   : > { %3743 = vst.msk [vmem:[%s5575_s23 + $0xa8] sm:$0xff] %vm421_vm0, %v2768_v0  ;;  %v2763_v57 = vadd.f32 %v6232_v21, %v2762_v42 }
 0x2d6   : > { %v4098_v18 = vpop.f32.mrf.mxu0 }
 0x2d7   : > { %v4076_v27 = vpop.f32.mrf.mxu1  ;;  %3742 = vst.msk [vmem:[%s5575_s23 + $0xa0] sm:$0xff] %vm421_vm0, %v2763_v57  ;;  %v2778_v46 = vadd.f32 %v6232_v21, %v4098_v18 }
 0x2d8   : > { %v2342_v34 = vadd.f32 %v6232_v21, %v4076_v27  ;;  %v2772_v35 = vpop.f32.mrf.mxu0 }
 0x2d9   : > { %v2336_v41 = vpop.f32.mrf.mxu1  ;;  %3745 = vst.msk [vmem:[%s5575_s23 + $0xe8] sm:$0xff] %vm421_vm0, %v2778_v46  ;;  %v2773_v47 = vadd.f32 %v6232_v21, %v2772_v35 }
 0x2da   : > { %3699 = vst.msk [vmem:[%s5575_s23 + $0x358] sm:$0xff] %vm421_vm0, %v2342_v34  ;;  %v2337_v29 = vadd.f32 %v6232_v21, %v2336_v41  ;;  %v4101_v24 = vpop.f32.mrf.mxu0 }
 0x2db   : > { %3744 = vst.msk [vmem:[%s5575_s23 + $0xe0] sm:$0xff] %vm421_vm0, %v2773_v47  ;;  %v2788_v45 = vadd.f32 %v6232_v21, %v4101_v24 }
 0x2dc   : > { %3698 = vst.msk [vmem:[%s5575_s23 + $0x350] sm:$0xff] %vm421_vm0, %v2337_v29  ;;  %v2782_v61 = vpop.f32.mrf.mxu0 }
 0x2dd   : > { %3747 = vst.msk [vmem:[%s5575_s23 + $0x128] sm:$0xff] %vm421_vm0, %v2788_v45  ;;  %v2783_v15 = vadd.f32 %v6232_v21, %v2782_v61 }
 0x2de   : > { %v4104_v20 = vpop.f32.mrf.mxu0 }
 0x2df   : > { %3746 = vst.msk [vmem:[%s5575_s23 + $0x120] sm:$0xff] %vm421_vm0, %v2783_v15  ;;  %v2798_v8 = vadd.f32 %v6232_v21, %v4104_v20 }
 0x2e0   : > { %v2792_v48 = vpop.f32.mrf.mxu0 }
 0x2e1   : > { %3749 = vst.msk [vmem:[%s5575_s23 + $0x168] sm:$0xff] %vm421_vm0, %v2798_v8  ;;  %v2793_v51 = vadd.f32 %v6232_v21, %v2792_v48 }
 0x2e2   : > { %v4107_v50 = vpop.f32.mrf.mxu0 }
 0x2e3   : > { %v4079_v26 = vpop.f32.mrf.mxu1  ;;  %3748 = vst.msk [vmem:[%s5575_s23 + $0x160] sm:$0xff] %vm421_vm0, %v2793_v51  ;;  %v2808_v62 = vadd.f32 %v6232_v21, %v4107_v50 }
 0x2e4   : > { %v2352_v49 = vadd.f32 %v6232_v21, %v4079_v26  ;;  %v2802_v2 = vpop.f32.mrf.mxu0 }
 0x2e5   : > { %v2346_v25 = vpop.f32.mrf.mxu1  ;;  %3751 = vst.msk [vmem:[%s5575_s23 + $0x1a8] sm:$0xff] %vm421_vm0, %v2808_v62  ;;  %v2803_v17 = vadd.f32 %v6232_v21, %v2802_v2 }
 0x2e6   : > { %3701 = vst.msk [vmem:[%s5575_s23 + $0x398] sm:$0xff] %vm421_vm0, %v2352_v49  ;;  %v2347_v4 = vadd.f32 %v6232_v21, %v2346_v25 }
 0x2e7   : > { %3750 = vst.msk [vmem:[%s5575_s23 + $0x1a0] sm:$0xff] %vm421_vm0, %v2803_v17 }
 0x2e8   : > { %3700 = vst.msk [vmem:[%s5575_s23 + $0x390] sm:$0xff] %vm421_vm0, %v2347_v4 }
 0x2ea   : > { %v4110_v1 = vpop.f32.mrf.mxu0 }
 0x2eb   : > { %v2818_v5 = vadd.f32 %v6232_v21, %v4110_v1 }
 0x2ec   : > { %v2812_v53 = vpop.f32.mrf.mxu0 }
 0x2ed   : > { %3753 = vst.msk [vmem:[%s5575_s23 + $0x1e8] sm:$0xff] %vm421_vm0, %v2818_v5  ;;  %v2813_v19 = vadd.f32 %v6232_v21, %v2812_v53 }
 0x2ee   : > { %v4113_v56 = vpop.f32.mrf.mxu0 }
 0x2ef   : > { %v4082_v44 = vpop.f32.mrf.mxu1  ;;  %3752 = vst.msk [vmem:[%s5575_s23 + $0x1e0] sm:$0xff] %vm421_vm0, %v2813_v19  ;;  %v2828_v22 = vadd.f32 %v6232_v21, %v4113_v56 }
 0x2f0   : > { %v2362_v59 = vadd.f32 %v6232_v21, %v4082_v44  ;;  %v2822_v14 = vpop.f32.mrf.mxu0 }
 0x2f1   : > { %v2356_v54 = vpop.f32.mrf.mxu1  ;;  %3755 = vst.msk [vmem:[%s5575_s23 + $0x228] sm:$0xff] %vm421_vm0, %v2828_v22  ;;  %v2823_v30 = vadd.f32 %v6232_v21, %v2822_v14 }
 0x2f2   : > { %3703 = vst.msk [vmem:[%s5575_s23 + $0x3d8] sm:$0xff] %vm421_vm0, %v2362_v59  ;;  %v2357_v63 = vadd.f32 %v6232_v21, %v2356_v54  ;;  %v4116_v37 = vpop.f32.mrf.mxu0 }
 0x2f3   : > { %v4141_v9 = vpop.f32.mrf.mxu1  ;;  %3754 = vst.msk [vmem:[%s5575_s23 + $0x220] sm:$0xff] %vm421_vm0, %v2823_v30  ;;  %v2838_v11 = vadd.f32 %v6232_v21, %v4116_v37 }
 0x2f4   : > { %3702 = vst.msk [vmem:[%s5575_s23 + $0x3d0] sm:$0xff] %vm421_vm0, %v2357_v63  ;;  %v3284_v7 = vadd.f32 %v6232_v21, %v4141_v9  ;;  %v2832_v3 = vpop.f32.mrf.mxu0 }
 0x2f5   : > { %v3278_v58 = vpop.f32.mrf.mxu1  ;;  %3757 = vst.msk [vmem:[%s5575_s23 + $0x268] sm:$0xff] %vm421_vm0, %v2838_v11  ;;  %v2833_v10 = vadd.f32 %v6232_v21, %v2832_v3 }
 0x2f6   : > { %3805 = vst.msk [vmem:[%s5575_s23 + $0x38] sm:$0xff] %vm421_vm0, %v3284_v7  ;;  %v3279_v13 = vadd.f32 %v6232_v21, %v3278_v58  ;;  %v4119_v38 = vpop.f32.mrf.mxu0 }
 0x2f7   : > { %v4144_v55 = vpop.f32.mrf.mxu1  ;;  %3756 = vst.msk [vmem:[%s5575_s23 + $0x260] sm:$0xff] %vm421_vm0, %v2833_v10  ;;  %v2848_v23 = vadd.f32 %v6232_v21, %v4119_v38 }
 0x2f8   : > { %3804 = vst.msk [vmem:[%s5575_s23 + $0x30] sm:$0xff] %vm421_vm0, %v3279_v13  ;;  %v3294_v36 = vadd.f32 %v6232_v21, %v4144_v55  ;;  %v2842_v32 = vpop.f32.mrf.mxu0 }
 0x2f9   : > { %v3288_v33 = vpop.f32.mrf.mxu1  ;;  %3759 = vst.msk [vmem:[%s5575_s23 + $0x2a8] sm:$0xff] %vm421_vm0, %v2848_v23  ;;  %v2843_v31 = vadd.f32 %v6232_v21, %v2842_v32 }
 0x2fa   : > { %3807 = vst.msk [vmem:[%s5575_s23 + $0x78] sm:$0xff] %vm421_vm0, %v3294_v36  ;;  %v3289_v39 = vadd.f32 %v6232_v21, %v3288_v33  ;;  %v4122_v6 = vpop.f32.mrf.mxu0 }
 0x2fb   : > { %v4147_v40 = vpop.f32.mrf.mxu1  ;;  %3758 = vst.msk [vmem:[%s5575_s23 + $0x2a0] sm:$0xff] %vm421_vm0, %v2843_v31  ;;  %v2858_v28 = vadd.f32 %v6232_v21, %v4122_v6 }
 0x2fc   : > { %3806 = vst.msk [vmem:[%s5575_s23 + $0x70] sm:$0xff] %vm421_vm0, %v3289_v39  ;;  %v3304_v52 = vadd.f32 %v6232_v21, %v4147_v40  ;;  %v2852_v16 = vpop.f32.mrf.mxu0 }
 0x2fd   : > { %v3298_v43 = vpop.f32.mrf.mxu1  ;;  %3761 = vst.msk [vmem:[%s5575_s23 + $0x2e8] sm:$0xff] %vm421_vm0, %v2858_v28  ;;  %v2853_v12 = vadd.f32 %v6232_v21, %v2852_v16 }
 0x2fe   : > { %3809 = vst.msk [vmem:[%s5575_s23 + $0xb8] sm:$0xff] %vm421_vm0, %v3304_v52  ;;  %v3299_v27 = vadd.f32 %v6232_v21, %v3298_v43  ;;  %v4125_v60 = vpop.f32.mrf.mxu0 }
 0x2ff   : > { %v4150_v34 = vpop.f32.mrf.mxu1  ;;  %3760 = vst.msk [vmem:[%s5575_s23 + $0x2e0] sm:$0xff] %vm421_vm0, %v2853_v12  ;;  %v2868_v0 = vadd.f32 %v6232_v21, %v4125_v60 }
 0x300   : > { %3808 = vst.msk [vmem:[%s5575_s23 + $0xb0] sm:$0xff] %vm421_vm0, %v3299_v27  ;;  %v3314_v41 = vadd.f32 %v6232_v21, %v4150_v34  ;;  %v2862_v42 = vpop.f32.mrf.mxu0 }
 0x301   : > { %v3308_v29 = vpop.f32.mrf.mxu1  ;;  %3763 = vst.msk [vmem:[%s5575_s23 + $0x328] sm:$0xff] %vm421_vm0, %v2868_v0  ;;  %v2863_v57 = vadd.f32 %v6232_v21, %v2862_v42 }
 0x302   : > { %3811 = vst.msk [vmem:[%s5575_s23 + $0xf8] sm:$0xff] %vm421_vm0, %v3314_v41  ;;  %v3309_v18 = vadd.f32 %v6232_v21, %v3308_v29  ;;  %v4128_v46 = vpop.f32.mrf.mxu0 }
 0x303   : > { %v4153_v35 = vpop.f32.mrf.mxu1  ;;  %3762 = vst.msk [vmem:[%s5575_s23 + $0x320] sm:$0xff] %vm421_vm0, %v2863_v57  ;;  %v2878_v47 = vadd.f32 %v6232_v21, %v4128_v46 }
 0x304   : > { %3810 = vst.msk [vmem:[%s5575_s23 + $0xf0] sm:$0xff] %vm421_vm0, %v3309_v18  ;;  %v3324_v24 = vadd.f32 %v6232_v21, %v4153_v35  ;;  %v2872_v45 = vpop.f32.mrf.mxu0 }
 0x305   : > { %v3318_v61 = vpop.f32.mrf.mxu1  ;;  %3765 = vst.msk [vmem:[%s5575_s23 + $0x368] sm:$0xff] %vm421_vm0, %v2878_v47  ;;  %v2873_v15 = vadd.f32 %v6232_v21, %v2872_v45 }
 0x306   : > { %3813 = vst.msk [vmem:[%s5575_s23 + $0x138] sm:$0xff] %vm421_vm0, %v3324_v24  ;;  %v3319_v26 = vadd.f32 %v6232_v21, %v3318_v61  ;;  %v4131_v20 = vpop.f32.mrf.mxu0 }
 0x307   : > { %v4156_v49 = vpop.f32.mrf.mxu1  ;;  %3764 = vst.msk [vmem:[%s5575_s23 + $0x360] sm:$0xff] %vm421_vm0, %v2873_v15  ;;  %v2888_v8 = vadd.f32 %v6232_v21, %v4131_v20 }
 0x308   : > { %3812 = vst.msk [vmem:[%s5575_s23 + $0x130] sm:$0xff] %vm421_vm0, %v3319_v26  ;;  %v3334_v25 = vadd.f32 %v6232_v21, %v4156_v49  ;;  %v2882_v48 = vpop.f32.mrf.mxu0 }
 0x309   : > { %v3328_v4 = vpop.f32.mrf.mxu1  ;;  %3767 = vst.msk [vmem:[%s5575_s23 + $0x3a8] sm:$0xff] %vm421_vm0, %v2888_v8  ;;  %v2883_v51 = vadd.f32 %v6232_v21, %v2882_v48 }
 0x30a   : > { %3815 = vst.msk [vmem:[%s5575_s23 + $0x178] sm:$0xff] %vm421_vm0, %v3334_v25  ;;  %v3329_v50 = vadd.f32 %v6232_v21, %v3328_v4  ;;  %v4134_v2 = vpop.f32.mrf.mxu0 }
 0x30b   : > { %v4159_v62 = vpop.f32.mrf.mxu1  ;;  %3766 = vst.msk [vmem:[%s5575_s23 + $0x3a0] sm:$0xff] %vm421_vm0, %v2883_v51  ;;  %v2898_v1 = vadd.f32 %v6232_v21, %v4134_v2 }
 0x30c   : > { %3814 = vst.msk [vmem:[%s5575_s23 + $0x170] sm:$0xff] %vm421_vm0, %v3329_v50  ;;  %v3344_v17 = vadd.f32 %v6232_v21, %v4159_v62  ;;  %v2892_v53 = vpop.f32.mrf.mxu0 }
 0x30d   : > { %v3338_v5 = vpop.f32.mrf.mxu1  ;;  %3769 = vst.msk [vmem:[%s5575_s23 + $0x3e8] sm:$0xff] %vm421_vm0, %v2898_v1  ;;  %v2893_v44 = vadd.f32 %v6232_v21, %v2892_v53 }
 0x30e   : > { %3817 = vst.msk [vmem:[%s5575_s23 + $0x1b8] sm:$0xff] %vm421_vm0, %v3344_v17  ;;  %v3339_v19 = vadd.f32 %v6232_v21, %v3338_v5 }
 0x30f   : > { %v4162_v56 = vpop.f32.mrf.mxu1  ;;  %3768 = vst.msk [vmem:[%s5575_s23 + $0x3e0] sm:$0xff] %vm421_vm0, %v2893_v44 }
 0x310   : > { %3816 = vst.msk [vmem:[%s5575_s23 + $0x1b0] sm:$0xff] %vm421_vm0, %v3339_v19  ;;  %v3354_v59 = vadd.f32 %v6232_v21, %v4162_v56 }
 0x311   : > { %v3348_v22 = vpop.f32.mrf.mxu1 }
 0x312   : > { %3819 = vst.msk [vmem:[%s5575_s23 + $0x1f8] sm:$0xff] %vm421_vm0, %v3354_v59  ;;  %v3349_v54 = vadd.f32 %v6232_v21, %v3348_v22 }
 0x313   : > { %v4165_v14 = vpop.f32.mrf.mxu1 }
 0x314   : > { %3818 = vst.msk [vmem:[%s5575_s23 + $0x1f0] sm:$0xff] %vm421_vm0, %v3349_v54  ;;  %v3364_v63 = vadd.f32 %v6232_v21, %v4165_v14 }
 0x315   : > { %v3358_v30 = vpop.f32.mrf.mxu1 }
 0x316   : > { %3821 = vst.msk [vmem:[%s5575_s23 + $0x238] sm:$0xff] %vm421_vm0, %v3364_v63  ;;  %v3359_v37 = vadd.f32 %v6232_v21, %v3358_v30 }
 0x317   : > { %v4168_v9 = vpop.f32.mrf.mxu1 }
 0x318   : > { %3820 = vst.msk [vmem:[%s5575_s23 + $0x230] sm:$0xff] %vm421_vm0, %v3359_v37  ;;  %v3374_v11 = vadd.f32 %v6232_v21, %v4168_v9 }
 0x319   : > { %v3368_v7 = vpop.f32.mrf.mxu1 }
 0x31a   : > { %3823 = vst.msk [vmem:[%s5575_s23 + $0x278] sm:$0xff] %vm421_vm0, %v3374_v11  ;;  %v3369_v3 = vadd.f32 %v6232_v21, %v3368_v7 }
 0x31b   : > { %v4171_v58 = vpop.f32.mrf.mxu1 }
 0x31c   : > { %3822 = vst.msk [vmem:[%s5575_s23 + $0x270] sm:$0xff] %vm421_vm0, %v3369_v3  ;;  %v3384_v10 = vadd.f32 %v6232_v21, %v4171_v58 }
 0x31d   : > { %v3378_v13 = vpop.f32.mrf.mxu1 }
 0x31e   : > { %3825 = vst.msk [vmem:[%s5575_s23 + $0x2b8] sm:$0xff] %vm421_vm0, %v3384_v10  ;;  %v3379_v38 = vadd.f32 %v6232_v21, %v3378_v13 }
 0x31f   : > { %v4174_v55 = vpop.f32.mrf.mxu1 }
 0x320   : > { %3824 = vst.msk [vmem:[%s5575_s23 + $0x2b0] sm:$0xff] %vm421_vm0, %v3379_v38  ;;  %v3394_v23 = vadd.f32 %v6232_v21, %v4174_v55 }
 0x321   : > { %v3388_v36 = vpop.f32.mrf.mxu1 }
 0x322   : > { %3827 = vst.msk [vmem:[%s5575_s23 + $0x2f8] sm:$0xff] %vm421_vm0, %v3394_v23  ;;  %v3389_v32 = vadd.f32 %v6232_v21, %v3388_v36 }
 0x323   : > { %v4177_v33 = vpop.f32.mrf.mxu1 }
 0x324   : > { %3826 = vst.msk [vmem:[%s5575_s23 + $0x2f0] sm:$0xff] %vm421_vm0, %v3389_v32  ;;  %v3404_v31 = vadd.f32 %v6232_v21, %v4177_v33 }
 0x325   : > { %v3398_v39 = vpop.f32.mrf.mxu1 }
 0x326   : > { %3829 = vst.msk [vmem:[%s5575_s23 + $0x338] sm:$0xff] %vm421_vm0, %v3404_v31  ;;  %v3399_v6 = vadd.f32 %v6232_v21, %v3398_v39 }
 0x327   : > { %v4180_v40 = vpop.f32.mrf.mxu1 }
 0x328   : > { %3828 = vst.msk [vmem:[%s5575_s23 + $0x330] sm:$0xff] %vm421_vm0, %v3399_v6  ;;  %v3414_v28 = vadd.f32 %v6232_v21, %v4180_v40 }
 0x329   : > { %v3408_v52 = vpop.f32.mrf.mxu1 }
 0x32a   : > { %3831 = vst.msk [vmem:[%s5575_s23 + $0x378] sm:$0xff] %vm421_vm0, %v3414_v28  ;;  %v3409_v16 = vadd.f32 %v6232_v21, %v3408_v52 }
 0x32b   : > { %v4183_v43 = vpop.f32.mrf.mxu1 }
 0x32c   : > { %3830 = vst.msk [vmem:[%s5575_s23 + $0x370] sm:$0xff] %vm421_vm0, %v3409_v16  ;;  %v3424_v12 = vadd.f32 %v6232_v21, %v4183_v43 }
 0x32d   : > { %v3418_v27 = vpop.f32.mrf.mxu1 }
 0x32e   : > { %3833 = vst.msk [vmem:[%s5575_s23 + $0x3b8] sm:$0xff] %vm421_vm0, %v3424_v12  ;;  %v3419_v60 = vadd.f32 %v6232_v21, %v3418_v27 }
 0x32f   : > { %v4186_v34 = vpop.f32.mrf.mxu1 }
 0x330   : > { %3832 = vst.msk [vmem:[%s5575_s23 + $0x3b0] sm:$0xff] %vm421_vm0, %v3419_v60  ;;  %v3434_v0 = vadd.f32 %v6232_v21, %v4186_v34 }
 0x331   : > { %v3428_v41 = vpop.f32.mrf.mxu1 }
 0x332   : > { %3835 = vst.msk [vmem:[%s5575_s23 + $0x3f8] sm:$0xff] %vm421_vm0, %v3434_v0  ;;  %v3429_v42 = vadd.f32 %v6232_v21, %v3428_v41 }
 0x334   : > { %3834 = vst.msk [vmem:[%s5575_s23 + $0x3f0] sm:$0xff] %vm421_vm0, %v3429_v42 }
 0x335 PF: > { %s15_s20 = sadd.s32 1, %s4248_s20   ;;  %s6781_s18 = smov %s4244_s19 }
 0x336   : > { %p12_p6 = scmp.ge.s32.totalorder %s15_s20, 4   ;;  %s6782_s19 = smov %s6784_s1 }
 0x338   :  { %14 = sbr.rel (!%p12_p6) target bundleno = 2 (0x2), region = 84 }

</bundles_post_ra>
